<compile_context>
chip_gen: v5e
topology: v5e:2x2
jax: 0.10.0
libtpu: 0.0.40
codegen_flags: <defaults>
</compile_context>

<pallas_src>
import functools

import numpy as np
import jax
import jax.numpy as jnp
from jax import lax
from jax.experimental import pallas as pl
from jax.experimental.pallas import tpu as pltpu

_BN_EPS = 1e-5


def _ceil_div(a, b):
    return -(-a // b)


def _round_up(x, m):
    return _ceil_div(x, m) * m


# ---------------------------------------------------------------------------
# Host-side constant matrices (pooling + bilinear upsample as matmuls).
# ---------------------------------------------------------------------------
def _pool_matrix(H, W, s):
    """(s*s, H*W) matrix implementing AdaptiveAvgPool2d(s) on a flattened map."""
    m = np.zeros((s * s, H * W), np.float64)
    for i in range(s):
        h0, h1 = (i * H) // s, _ceil_div((i + 1) * H, s)
        for j in range(s):
            w0, w1 = (j * W) // s, _ceil_div((j + 1) * W, s)
            cnt = (h1 - h0) * (w1 - w0)
            for h in range(h0, h1):
                m[i * s + j, h * W + w0:h * W + w1] = 1.0 / cnt
    return m.astype(np.float32)


def _bilinear_matrix(out_size, in_size):
    """PyTorch F.interpolate bilinear, align_corners=False (the None default)."""
    d = np.arange(out_size, dtype=np.float64)
    src = np.maximum((d + 0.5) * (in_size / out_size) - 0.5, 0.0)
    i0 = np.minimum(np.floor(src).astype(np.int64), in_size - 1)
    i1 = np.minimum(i0 + 1, in_size - 1)
    frac = src - i0
    m = np.zeros((out_size, in_size), np.float64)
    m[np.arange(out_size), i0] += 1.0 - frac
    m[np.arange(out_size), i1] += frac
    return m


def _upsample_matrix(H, W, s):
    """(H*W, s*s) bilinear upsample matrix (rows sum to 1)."""
    mh = _bilinear_matrix(H, s)
    mw = _bilinear_matrix(W, s)
    return np.einsum('hi,wj->hwij', mh, mw).reshape(H * W, s * s).astype(np.float32)


# ---------------------------------------------------------------------------
# Fused kernel: pool -> 1x1 conv(+BN) -> bilinear upsample (all bins) ->
#               3x3 conv(+BN) -> ReLU, for one image per grid step.
# ---------------------------------------------------------------------------
def _pp_fused_kernel(x_ref, pool_ref, w1_ref, up_ref, shift1_ref, w3_ref,
                     shift3_ref, out_ref, feat_ref, acc_ref,
                     *, bin_sizes, compute_dtype):
    _, H, W, Cin = x_ref.shape
    Cm = feat_ref.shape[-1]                     # padded inter channels
    HW = H * W

    # --- adaptive average pool over ALL bin sizes: one MXU matmul -----------
    x2 = x_ref[...].reshape(HW, Cin)
    pooled = jnp.dot(pool_ref[...], x2,
                     preferred_element_type=jnp.float32)            # (S2, Cin)

    # --- per-bin 1x1 conv; BN scale already folded into w1 ------------------
    zs, off = [], 0
    for idx, s in enumerate(bin_sizes):
        blk = pooled[off:off + s * s, :].astype(compute_dtype)
        zs.append(jnp.dot(blk, w1_ref[idx],
                          preferred_element_type=jnp.float32))
        off += s * s
    z_all = zs[0] if len(zs) == 1 else jnp.concatenate(zs, axis=0)  # (S2, Cm)

    # --- all-bin bilinear upsample: one matmul; add the summed BN shift -----
    feat = jnp.dot(up_ref[...], z_all.astype(compute_dtype),
                   preferred_element_type=jnp.float32)
    feat = feat + shift1_ref[...]                                   # (HW, Cm) f32

    # --- 'same' padding for the 3x3 conv done in VMEM (no HBM pad pass) -----
    feat_ref[...] = jnp.zeros_like(feat_ref)
    feat_ref[1:H + 1, 1:W + 1, :] = feat.reshape(H, W, Cm)

    # --- 3x3 conv (BN scale folded into w3): 9 tap matmuls, f32 accumulator -
    acc_ref[...] = jnp.zeros_like(acc_ref)
    for kh in range(3):
        for kw in range(3):
            patch = feat_ref[kh:kh + H, kw:kw + W, :].astype(compute_dtype)
            acc_ref[...] += jnp.dot(patch.reshape(HW, Cm), w3_ref[kh, kw],
                                    preferred_element_type=jnp.float32)

    # --- BN shift + ReLU epilogue in f32; lane-dense (128-wide) store -------
    y = jnp.maximum(acc_ref[...] + shift3_ref[...], 0.0)
    out_ref[...] = y.reshape(out_ref.shape)


# ---------------------------------------------------------------------------
# Parameter folding / padding (host side).
# ---------------------------------------------------------------------------
def _prepare_operands(params, H, W, compute_dtype):
    stages = params['stages']
    Cin, Cm = stages[0]['w1'].shape
    Cout = params['w3'].shape[-1]
    Cm_p = _round_up(Cm, 128)
    Cout_p = _round_up(Cout, 128)
    bins = tuple(int(st['s']) for st in stages)

    pool_all = np.concatenate([_pool_matrix(H, W, s) for s in bins], axis=0)
    up_all = np.concatenate([_upsample_matrix(H, W, s) for s in bins], axis=1)

    w1_list = []
    shift1 = jnp.zeros((Cm,), jnp.float32)
    for st in stages:
        scale = st['gamma'] / jnp.sqrt(st['rvar'] + _BN_EPS)
        w1_list.append(jnp.pad(st['w1'] * scale[None, :], ((0, 0), (0, Cm_p - Cm))))
        shift1 = shift1 + st['beta'] + (st['b1'] - st['rmean']) * scale
    w1s = jnp.stack(w1_list, axis=0)                               # (n_bins, Cin, Cm_p)
    shift1 = jnp.pad(shift1, (0, Cm_p - Cm)).reshape(1, Cm_p)

    scale3 = params['gamma3'] / jnp.sqrt(params['rvar3'] + _BN_EPS)
    w3 = jnp.pad(params['w3'] * scale3[None, None, None, :],
                 ((0, 0), (0, 0), (0, Cm_p - Cm), (0, Cout_p - Cout)))
    shift3 = jnp.pad(params['beta3'] - params['rmean3'] * scale3,
                     (0, Cout_p - Cout)).reshape(1, Cout_p)

    return dict(
        bins=bins, Cm_p=Cm_p, Cout_p=Cout_p,
        pool=jnp.asarray(pool_all).astype(compute_dtype),
        up=jnp.asarray(up_all).astype(compute_dtype),
        w1s=w1s.astype(compute_dtype),
        shift1=shift1.astype(jnp.float32),
        w3=w3.astype(compute_dtype),
        shift3=shift3.astype(jnp.float32),
    )


def pp_context_module_forward(x_nchw, params, *, compute_dtype=jnp.float32):
    """PPContextModule forward. Input NCHW, output NCHW (PyTorch convention)."""
    N, Cin, H, W = x_nchw.shape
    Cout = params['w3'].shape[-1]
    ops = _prepare_operands(params, H, W, compute_dtype)
    bins, Cm_p, Cout_p = ops['bins'], ops['Cm_p'], ops['Cout_p']
    n_bins = len(bins)
    S2 = sum(s * s for s in bins)
    HW = H * W

    x = jnp.transpose(x_nchw, (0, 2, 3, 1)).astype(compute_dtype)   # NCHW -> NHWC

    kernel = functools.partial(_pp_fused_kernel, bin_sizes=bins,
                               compute_dtype=compute_dtype)
    out_pad = pl.pallas_call(
        kernel,
        out_shape=jax.ShapeDtypeStruct((N, H, W, Cout_p), jnp.float32),
        grid=(N,),
        in_specs=[
            pl.BlockSpec((1, H, W, Cin), lambda n: (n, 0, 0, 0)),       # x
            pl.BlockSpec((S2, HW), lambda n: (0, 0)),                   # pool_all
            pl.BlockSpec((n_bins, Cin, Cm_p), lambda n: (0, 0, 0)),     # folded w1
            pl.BlockSpec((HW, S2), lambda n: (0, 0)),                   # up_all
            pl.BlockSpec((1, Cm_p), lambda n: (0, 0)),                  # summed shift
            pl.BlockSpec((3, 3, Cm_p, Cout_p), lambda n: (0, 0, 0, 0)), # folded w3
            pl.BlockSpec((1, Cout_p), lambda n: (0, 0)),                # shift3
        ],
        out_specs=pl.BlockSpec((1, H, W, Cout_p), lambda n: (n, 0, 0, 0)),
        scratch_shapes=[
            pltpu.VMEM((H + 2, W + 2, Cm_p), jnp.float32),   # zero-padded stage sum
            pltpu.VMEM((HW, Cout_p), jnp.float32),           # conv accumulator
        ],
        compiler_params=pltpu.CompilerParams(
            dimension_semantics=("parallel",),               # v7x: 2 TCs split batch
            vmem_limit_bytes=32 * 1024 * 1024,
        ),
    )(x, ops['pool'], ops['w1s'], ops['up'], ops['shift1'], ops['w3'], ops['shift3'])

    y = out_pad[..., :Cout]                                  # drop lane padding
    return jnp.transpose(y, (0, 3, 1, 2))                    # NHWC -> NCHW


# ---------------------------------------------------------------------------
# Raw (PyTorch-like) parameter initialisation.
# ---------------------------------------------------------------------------
def init_params(key, in_channels, inter_channels, out_channels, bin_sizes):
    stages = []
    for idx, s in enumerate(bin_sizes):
        k = jax.random.fold_in(key, idx)
        k1, k2, k3, k4, k5, k6 = jax.random.split(k, 6)
        stages.append(dict(
            s=int(s),
            w1=jax.random.normal(k1, (in_channels, inter_channels), jnp.float32) * 0.2,
            b1=0.1 * jax.random.normal(k2, (inter_channels,), jnp.float32),
            gamma=1.0 + 0.1 * jax.random.normal(k3, (inter_channels,), jnp.float32),
            beta=0.1 * jax.random.normal(k4, (inter_channels,), jnp.float32),
            rmean=0.1 * jax.random.normal(k5, (inter_channels,), jnp.float32),
            rvar=jax.random.uniform(k6, (inter_channels,), jnp.float32,
                                    minval=0.5, maxval=1.5),
        ))
    k = jax.random.fold_in(key, 1000)
    k1, k3, k4, k5, k6 = jax.random.split(k, 5)
    return dict(
        stages=stages,
        w3=0.1 * jax.random.normal(k1, (3, 3, inter_channels, out_channels), jnp.float32),
        gamma3=1.0 + 0.1 * jax.random.normal(k3, (out_channels,), jnp.float32),
        beta3=0.1 * jax.random.normal(k4, (out_channels,), jnp.float32),
        rmean3=0.1 * jax.random.normal(k5, (out_channels,), jnp.float32),
        rvar3=jax.random.uniform(k6, (out_channels,), jnp.float32,
                                 minval=0.5, maxval=1.5),
    )


# ---------------------------------------------------------------------------
# Pure-JAX reference (unfused, unfolded BN) used to check the kernel lowering.
# ---------------------------------------------------------------------------
def _reference(x_nchw, params):
    x = jnp.transpose(x_nchw, (0, 2, 3, 1)).astype(jnp.float32)
    N, H, W, _ = x.shape
    out = None
    for st in params['stages']:
        s = st['s']
        rows = []
        for i in range(s):
            h0, h1 = (i * H) // s, _ceil_div((i + 1) * H, s)
            for j in range(s):
                w0, w1e = (j * W) // s, _ceil_div((j + 1) * W, s)
                rows.append(jnp.mean(x[:, h0:h1, w0:w1e, :], axis=(1, 2)))
        pooled = jnp.stack(rows, axis=1)                              # (N, s*s, Cin)
        z = jnp.einsum('nkc,cm->nkm', pooled, st['w1']) + st['b1']
        z = (z - st['rmean']) / jnp.sqrt(st['rvar'] + _BN_EPS) * st['gamma'] + st['beta']
        up = jnp.asarray(_upsample_matrix(H, W, s))
        contrib = jnp.einsum('pk,nkm->npm', up, z).reshape(N, H, W, -1)
        out = contrib if out is None else out + contrib
    conv = lax.conv_general_dilated(out, params['w3'], (1, 1), ((1, 1), (1, 1)),
                                    dimension_numbers=('NHWC', 'HWIO', 'NHWC'))
    y = (conv - params['rmean3']) / jnp.sqrt(params['rvar3'] + _BN_EPS) \
        * params['gamma3'] + params['beta3']
    y = jnp.maximum(y, 0.0)
    return jnp.transpose(y, (0, 3, 1, 2))


if __name__ == "__main__":
    N, Cin, Cinter, Cout = 2, 4, 32, 8
    H = W = 16
    bin_sizes = (1, 3)

    key = jax.random.PRNGKey(0)
    kx, kp = jax.random.split(key)
    x = jax.random.normal(kx, (N, Cin, H, W), jnp.float32)        # NCHW input
    params = init_params(kp, Cin, Cinter, Cout, bin_sizes)

    y_ref = np.asarray(jax.block_until_ready(_reference(x, params)))

    # f32 compute path (tolerance allows for MXU default-precision passes).
    y32 = np.asarray(jax.block_until_ready(
        pp_context_module_forward(x, params, compute_dtype=jnp.float32)))
    assert y32.shape == (N, Cout, H, W), y32.shape
    assert np.allclose(y32, y_ref, rtol=2e-2, atol=2e-2), \
        float(np.max(np.abs(y32 - y_ref)))

    # bf16 matmul-operand path (f32 accumulation + f32 epilogue).
    ybf = np.asarray(jax.block_until_ready(
        pp_context_module_forward(x, params, compute_dtype=jnp.bfloat16)))
    assert ybf.shape == (N, Cout, H, W), ybf.shape
    assert np.allclose(ybf, y_ref, rtol=5e-2, atol=1e-1), \
        float(np.max(np.abs(ybf - y_ref)))

    print("KERNEL_OK")
</pallas_src>

<mosaic_0001>
module attributes {stable_mosaic.version = 11 : i64} {
  func.func @_pp_fused_kernel(%arg0: i32, %arg1: memref<1x16x16x4xf32, #tpu.memory_space<vmem>>, %arg2: memref<10x256xf32, #tpu.memory_space<vmem>>, %arg3: memref<2x4x128xf32, #tpu.memory_space<vmem>>, %arg4: memref<256x10xf32, #tpu.memory_space<vmem>>, %arg5: memref<1x128xf32, #tpu.memory_space<vmem>>, %arg6: memref<3x3x128x128xf32, #tpu.memory_space<vmem>>, %arg7: memref<1x128xf32, #tpu.memory_space<vmem>>, %arg8: memref<1x16x16x128xf32, #tpu.memory_space<vmem>>, %arg9: memref<18x18x128xf32, #tpu.memory_space<vmem>>, %arg10: memref<256x128xf32, #tpu.memory_space<vmem>>) attributes {dimension_semantics = [#tpu.dimension_semantics<parallel>], iteration_bounds = array<i64: 2>, scalar_prefetch = 0 : i64, scratch_operands = 2 : i64, tpu.core_type = #tpu.core_type<tc>, window_params = [{transform_indices = @transform_0, window_bounds = array<i64: 1, 16, 16, 4>}, {pipeline_mode = #tpu.pipeline_mode<synchronous>, transform_indices = @transform_1, window_bounds = array<i64: 10, 256>}, {pipeline_mode = #tpu.pipeline_mode<synchronous>, transform_indices = @transform_2, window_bounds = array<i64: 2, 4, 128>}, {pipeline_mode = #tpu.pipeline_mode<synchronous>, transform_indices = @transform_3, window_bounds = array<i64: 256, 10>}, {pipeline_mode = #tpu.pipeline_mode<synchronous>, transform_indices = @transform_4, window_bounds = array<i64: 1, 128>}, {pipeline_mode = #tpu.pipeline_mode<synchronous>, transform_indices = @transform_5, window_bounds = array<i64: 3, 3, 128, 128>}, {pipeline_mode = #tpu.pipeline_mode<synchronous>, transform_indices = @transform_6, window_bounds = array<i64: 1, 128>}, {transform_indices = @transform_7, window_bounds = array<i64: 1, 16, 16, 128>}]} {
    %c0 = arith.constant 0 : index
    %c0_0 = arith.constant 0 : index
    %c0_1 = arith.constant 0 : index
    %c0_2 = arith.constant 0 : index
    %0 = vector.load %arg1[%c0, %c0_0, %c0_1, %c0_2] : memref<1x16x16x4xf32, #tpu.memory_space<vmem>>, vector<1x16x16x4xf32>
    %1 = vector.shape_cast %0 : vector<1x16x16x4xf32> to vector<256x4xf32>
    %c0_3 = arith.constant 0 : index
    %c0_4 = arith.constant 0 : index
    %2 = vector.load %arg2[%c0_3, %c0_4] : memref<10x256xf32, #tpu.memory_space<vmem>>, vector<10x256xf32>
    %cst = arith.constant dense<0.000000e+00> : vector<10x4xf32>
    %3 = tpu.matmul %2, %1, %cst {dimension_numbers = #tpu.dot_dimension_numbers<[1], [0], [0], [1], [0, 0, 1, 1], [], []>} : vector<10x256xf32>, vector<256x4xf32>, vector<10x4xf32> -> vector<10x4xf32>
    %4 = vector.extract_strided_slice %3 {offsets = [0, 0], sizes = [1, 4], strides = [1, 1]} : vector<10x4xf32> to vector<1x4xf32>
    %c0_5 = arith.constant 0 : index
    %c0_6 = arith.constant 0 : index
    %c0_7 = arith.constant 0 : index
    %5 = vector.load %arg3[%c0_5, %c0_6, %c0_7] : memref<2x4x128xf32, #tpu.memory_space<vmem>>, vector<1x4x128xf32>
    %6 = vector.shape_cast %5 : vector<1x4x128xf32> to vector<4x128xf32>
    %cst_8 = arith.constant dense<0.000000e+00> : vector<1x128xf32>
    %7 = tpu.matmul %4, %6, %cst_8 {dimension_numbers = #tpu.dot_dimension_numbers<[1], [0], [0], [1], [0, 0, 1, 1], [], []>} : vector<1x4xf32>, vector<4x128xf32>, vector<1x128xf32> -> vector<1x128xf32>
    %8 = vector.extract_strided_slice %3 {offsets = [1, 0], sizes = [9, 4], strides = [1, 1]} : vector<10x4xf32> to vector<9x4xf32>
    %c1 = arith.constant 1 : index
    %c0_9 = arith.constant 0 : index
    %c0_10 = arith.constant 0 : index
    %9 = vector.load %arg3[%c1, %c0_9, %c0_10] : memref<2x4x128xf32, #tpu.memory_space<vmem>>, vector<1x4x128xf32>
    %10 = vector.shape_cast %9 : vector<1x4x128xf32> to vector<4x128xf32>
    %cst_11 = arith.constant dense<0.000000e+00> : vector<9x128xf32>
    %11 = tpu.matmul %8, %10, %cst_11 {dimension_numbers = #tpu.dot_dimension_numbers<[1], [0], [0], [1], [0, 0, 1, 1], [], []>} : vector<9x4xf32>, vector<4x128xf32>, vector<9x128xf32> -> vector<9x128xf32>
    %12 = tpu.concatenate %7, %11 in 0 : vector<1x128xf32>, vector<9x128xf32> -> vector<10x128xf32>
    %c0_12 = arith.constant 0 : index
    %c0_13 = arith.constant 0 : index
    %13 = vector.load %arg4[%c0_12, %c0_13] : memref<256x10xf32, #tpu.memory_space<vmem>>, vector<256x10xf32>
    %cst_14 = arith.constant dense<0.000000e+00> : vector<256x128xf32>
    %14 = tpu.matmul %13, %12, %cst_14 {dimension_numbers = #tpu.dot_dimension_numbers<[1], [0], [0], [1], [0, 0, 1, 1], [], []>} : vector<256x10xf32>, vector<10x128xf32>, vector<256x128xf32> -> vector<256x128xf32>
    %c0_15 = arith.constant 0 : index
    %c0_16 = arith.constant 0 : index
    %15 = vector.load %arg5[%c0_15, %c0_16] : memref<1x128xf32, #tpu.memory_space<vmem>>, vector<1x128xf32>
    %16 = vector.broadcast %15 : vector<1x128xf32> to vector<256x128xf32>
    %17 = arith.addf %14, %16 : vector<256x128xf32>
    %cst_17 = arith.constant 0.000000e+00 : f32
    %18 = vector.broadcast %cst_17 : f32 to vector<18x18x128xf32>
    %c0_18 = arith.constant 0 : index
    %c0_19 = arith.constant 0 : index
    %c0_20 = arith.constant 0 : index
    %19 = vector.load %arg9[%c0_18, %c0_19, %c0_20] : memref<18x18x128xf32, #tpu.memory_space<vmem>>, vector<18x18x128xf32>
    tpu.vector_store %arg9[%c0_18, %c0_19, %c0_20], %18 {strides = array<i32>} : memref<18x18x128xf32, #tpu.memory_space<vmem>>, vector<18x18x128xf32>,
    %20 = vector.shape_cast %17 : vector<256x128xf32> to vector<16x16x128xf32>
    %c1_21 = arith.constant 1 : index
    %c1_22 = arith.constant 1 : index
    %c0_23 = arith.constant 0 : index
    %21 = vector.load %arg9[%c1_21, %c1_22, %c0_23] : memref<18x18x128xf32, #tpu.memory_space<vmem>>, vector<16x16x128xf32>
    tpu.vector_store %arg9[%c1_21, %c1_22, %c0_23], %20 {strides = array<i32>} : memref<18x18x128xf32, #tpu.memory_space<vmem>>, vector<16x16x128xf32>,
    %cst_24 = arith.constant 0.000000e+00 : f32
    %22 = vector.broadcast %cst_24 : f32 to vector<256x128xf32>
    %c0_25 = arith.constant 0 : index
    %c0_26 = arith.constant 0 : index
    %23 = vector.load %arg10[%c0_25, %c0_26] : memref<256x128xf32, #tpu.memory_space<vmem>>, vector<256x128xf32>
    tpu.vector_store %arg10[%c0_25, %c0_26], %22 {strides = array<i32>} : memref<256x128xf32, #tpu.memory_space<vmem>>, vector<256x128xf32>,
    %c0_27 = arith.constant 0 : index
    %c0_28 = arith.constant 0 : index
    %c0_29 = arith.constant 0 : index
    %24 = vector.load %arg9[%c0_27, %c0_28, %c0_29] : memref<18x18x128xf32, #tpu.memory_space<vmem>>, vector<16x16x128xf32>
    %c0_30 = arith.constant 0 : index
    %c0_31 = arith.constant 0 : index
    %25 = vector.load %arg10[%c0_30, %c0_31] : memref<256x128xf32, #tpu.memory_space<vmem>>, vector<256x128xf32>
    %26 = vector.shape_cast %24 : vector<16x16x128xf32> to vector<256x128xf32>
    %c0_32 = arith.constant 0 : index
    %c0_33 = arith.constant 0 : index
    %c0_34 = arith.constant 0 : index
    %c0_35 = arith.constant 0 : index
    %27 = vector.load %arg6[%c0_32, %c0_33, %c0_34, %c0_35] : memref<3x3x128x128xf32, #tpu.memory_space<vmem>>, vector<1x1x128x128xf32>
    %28 = vector.shape_cast %27 : vector<1x1x128x128xf32> to vector<128x128xf32>
    %cst_36 = arith.constant dense<0.000000e+00> : vector<256x128xf32>
    %29 = tpu.matmul %26, %28, %cst_36 {dimension_numbers = #tpu.dot_dimension_numbers<[1], [0], [0], [1], [0, 0, 1, 1], [], []>} : vector<256x128xf32>, vector<128x128xf32>, vector<256x128xf32> -> vector<256x128xf32>
    %30 = arith.addf %25, %29 : vector<256x128xf32>
    %c0_37 = arith.constant 0 : index
    %c0_38 = arith.constant 0 : index
    %31 = vector.load %arg10[%c0_37, %c0_38] : memref<256x128xf32, #tpu.memory_space<vmem>>, vector<256x128xf32>
    tpu.vector_store %arg10[%c0_37, %c0_38], %30 {strides = array<i32>} : memref<256x128xf32, #tpu.memory_space<vmem>>, vector<256x128xf32>,
    %c0_39 = arith.constant 0 : index
    %c1_40 = arith.constant 1 : index
    %c0_41 = arith.constant 0 : index
    %32 = vector.load %arg9[%c0_39, %c1_40, %c0_41] : memref<18x18x128xf32, #tpu.memory_space<vmem>>, vector<16x16x128xf32>
    %c0_42 = arith.constant 0 : index
    %c0_43 = arith.constant 0 : index
    %33 = vector.load %arg10[%c0_42, %c0_43] : memref<256x128xf32, #tpu.memory_space<vmem>>, vector<256x128xf32>
    %34 = vector.shape_cast %32 : vector<16x16x128xf32> to vector<256x128xf32>
    %c0_44 = arith.constant 0 : index
    %c1_45 = arith.constant 1 : index
    %c0_46 = arith.constant 0 : index
    %c0_47 = arith.constant 0 : index
    %35 = vector.load %arg6[%c0_44, %c1_45, %c0_46, %c0_47] : memref<3x3x128x128xf32, #tpu.memory_space<vmem>>, vector<1x1x128x128xf32>
    %36 = vector.shape_cast %35 : vector<1x1x128x128xf32> to vector<128x128xf32>
    %cst_48 = arith.constant dense<0.000000e+00> : vector<256x128xf32>
    %37 = tpu.matmul %34, %36, %cst_48 {dimension_numbers = #tpu.dot_dimension_numbers<[1], [0], [0], [1], [0, 0, 1, 1], [], []>} : vector<256x128xf32>, vector<128x128xf32>, vector<256x128xf32> -> vector<256x128xf32>
    %38 = arith.addf %33, %37 : vector<256x128xf32>
    %c0_49 = arith.constant 0 : index
    %c0_50 = arith.constant 0 : index
    %39 = vector.load %arg10[%c0_49, %c0_50] : memref<256x128xf32, #tpu.memory_space<vmem>>, vector<256x128xf32>
    tpu.vector_store %arg10[%c0_49, %c0_50], %38 {strides = array<i32>} : memref<256x128xf32, #tpu.memory_space<vmem>>, vector<256x128xf32>,
    %c0_51 = arith.constant 0 : index
    %c2 = arith.constant 2 : index
    %c0_52 = arith.constant 0 : index
    %40 = vector.load %arg9[%c0_51, %c2, %c0_52] : memref<18x18x128xf32, #tpu.memory_space<vmem>>, vector<16x16x128xf32>
    %c0_53 = arith.constant 0 : index
    %c0_54 = arith.constant 0 : index
    %41 = vector.load %arg10[%c0_53, %c0_54] : memref<256x128xf32, #tpu.memory_space<vmem>>, vector<256x128xf32>
    %42 = vector.shape_cast %40 : vector<16x16x128xf32> to vector<256x128xf32>
    %c0_55 = arith.constant 0 : index
    %c2_56 = arith.constant 2 : index
    %c0_57 = arith.constant 0 : index
    %c0_58 = arith.constant 0 : index
    %43 = vector.load %arg6[%c0_55, %c2_56, %c0_57, %c0_58] : memref<3x3x128x128xf32, #tpu.memory_space<vmem>>, vector<1x1x128x128xf32>
    %44 = vector.shape_cast %43 : vector<1x1x128x128xf32> to vector<128x128xf32>
    %cst_59 = arith.constant dense<0.000000e+00> : vector<256x128xf32>
    %45 = tpu.matmul %42, %44, %cst_59 {dimension_numbers = #tpu.dot_dimension_numbers<[1], [0], [0], [1], [0, 0, 1, 1], [], []>} : vector<256x128xf32>, vector<128x128xf32>, vector<256x128xf32> -> vector<256x128xf32>
    %46 = arith.addf %41, %45 : vector<256x128xf32>
    %c0_60 = arith.constant 0 : index
    %c0_61 = arith.constant 0 : index
    %47 = vector.load %arg10[%c0_60, %c0_61] : memref<256x128xf32, #tpu.memory_space<vmem>>, vector<256x128xf32>
    tpu.vector_store %arg10[%c0_60, %c0_61], %46 {strides = array<i32>} : memref<256x128xf32, #tpu.memory_space<vmem>>, vector<256x128xf32>,
    %c1_62 = arith.constant 1 : index
    %c0_63 = arith.constant 0 : index
    %c0_64 = arith.constant 0 : index
    %48 = vector.load %arg9[%c1_62, %c0_63, %c0_64] : memref<18x18x128xf32, #tpu.memory_space<vmem>>, vector<16x16x128xf32>
    %c0_65 = arith.constant 0 : index
    %c0_66 = arith.constant 0 : index
    %49 = vector.load %arg10[%c0_65, %c0_66] : memref<256x128xf32, #tpu.memory_space<vmem>>, vector<256x128xf32>
    %50 = vector.shape_cast %48 : vector<16x16x128xf32> to vector<256x128xf32>
    %c1_67 = arith.constant 1 : index
    %c0_68 = arith.constant 0 : index
    %c0_69 = arith.constant 0 : index
    %c0_70 = arith.constant 0 : index
    %51 = vector.load %arg6[%c1_67, %c0_68, %c0_69, %c0_70] : memref<3x3x128x128xf32, #tpu.memory_space<vmem>>, vector<1x1x128x128xf32>
    %52 = vector.shape_cast %51 : vector<1x1x128x128xf32> to vector<128x128xf32>
    %cst_71 = arith.constant dense<0.000000e+00> : vector<256x128xf32>
    %53 = tpu.matmul %50, %52, %cst_71 {dimension_numbers = #tpu.dot_dimension_numbers<[1], [0], [0], [1], [0, 0, 1, 1], [], []>} : vector<256x128xf32>, vector<128x128xf32>, vector<256x128xf32> -> vector<256x128xf32>
    %54 = arith.addf %49, %53 : vector<256x128xf32>
    %c0_72 = arith.constant 0 : index
    %c0_73 = arith.constant 0 : index
    %55 = vector.load %arg10[%c0_72, %c0_73] : memref<256x128xf32, #tpu.memory_space<vmem>>, vector<256x128xf32>
    tpu.vector_store %arg10[%c0_72, %c0_73], %54 {strides = array<i32>} : memref<256x128xf32, #tpu.memory_space<vmem>>, vector<256x128xf32>,
    %c1_74 = arith.constant 1 : index
    %c1_75 = arith.constant 1 : index
    %c0_76 = arith.constant 0 : index
    %56 = vector.load %arg9[%c1_74, %c1_75, %c0_76] : memref<18x18x128xf32, #tpu.memory_space<vmem>>, vector<16x16x128xf32>
    %c0_77 = arith.constant 0 : index
    %c0_78 = arith.constant 0 : index
    %57 = vector.load %arg10[%c0_77, %c0_78] : memref<256x128xf32, #tpu.memory_space<vmem>>, vector<256x128xf32>
    %58 = vector.shape_cast %56 : vector<16x16x128xf32> to vector<256x128xf32>
    %c1_79 = arith.constant 1 : index
    %c1_80 = arith.constant 1 : index
    %c0_81 = arith.constant 0 : index
    %c0_82 = arith.constant 0 : index
    %59 = vector.load %arg6[%c1_79, %c1_80, %c0_81, %c0_82] : memref<3x3x128x128xf32, #tpu.memory_space<vmem>>, vector<1x1x128x128xf32>
    %60 = vector.shape_cast %59 : vector<1x1x128x128xf32> to vector<128x128xf32>
    %cst_83 = arith.constant dense<0.000000e+00> : vector<256x128xf32>
    %61 = tpu.matmul %58, %60, %cst_83 {dimension_numbers = #tpu.dot_dimension_numbers<[1], [0], [0], [1], [0, 0, 1, 1], [], []>} : vector<256x128xf32>, vector<128x128xf32>, vector<256x128xf32> -> vector<256x128xf32>
    %62 = arith.addf %57, %61 : vector<256x128xf32>
    %c0_84 = arith.constant 0 : index
    %c0_85 = arith.constant 0 : index
    %63 = vector.load %arg10[%c0_84, %c0_85] : memref<256x128xf32, #tpu.memory_space<vmem>>, vector<256x128xf32>
    tpu.vector_store %arg10[%c0_84, %c0_85], %62 {strides = array<i32>} : memref<256x128xf32, #tpu.memory_space<vmem>>, vector<256x128xf32>,
    %c1_86 = arith.constant 1 : index
    %c2_87 = arith.constant 2 : index
    %c0_88 = arith.constant 0 : index
    %64 = vector.load %arg9[%c1_86, %c2_87, %c0_88] : memref<18x18x128xf32, #tpu.memory_space<vmem>>, vector<16x16x128xf32>
    %c0_89 = arith.constant 0 : index
    %c0_90 = arith.constant 0 : index
    %65 = vector.load %arg10[%c0_89, %c0_90] : memref<256x128xf32, #tpu.memory_space<vmem>>, vector<256x128xf32>
    %66 = vector.shape_cast %64 : vector<16x16x128xf32> to vector<256x128xf32>
    %c1_91 = arith.constant 1 : index
    %c2_92 = arith.constant 2 : index
    %c0_93 = arith.constant 0 : index
    %c0_94 = arith.constant 0 : index
    %67 = vector.load %arg6[%c1_91, %c2_92, %c0_93, %c0_94] : memref<3x3x128x128xf32, #tpu.memory_space<vmem>>, vector<1x1x128x128xf32>
    %68 = vector.shape_cast %67 : vector<1x1x128x128xf32> to vector<128x128xf32>
    %cst_95 = arith.constant dense<0.000000e+00> : vector<256x128xf32>
    %69 = tpu.matmul %66, %68, %cst_95 {dimension_numbers = #tpu.dot_dimension_numbers<[1], [0], [0], [1], [0, 0, 1, 1], [], []>} : vector<256x128xf32>, vector<128x128xf32>, vector<256x128xf32> -> vector<256x128xf32>
    %70 = arith.addf %65, %69 : vector<256x128xf32>
    %c0_96 = arith.constant 0 : index
    %c0_97 = arith.constant 0 : index
    %71 = vector.load %arg10[%c0_96, %c0_97] : memref<256x128xf32, #tpu.memory_space<vmem>>, vector<256x128xf32>
    tpu.vector_store %arg10[%c0_96, %c0_97], %70 {strides = array<i32>} : memref<256x128xf32, #tpu.memory_space<vmem>>, vector<256x128xf32>,
    %c2_98 = arith.constant 2 : index
    %c0_99 = arith.constant 0 : index
    %c0_100 = arith.constant 0 : index
    %72 = vector.load %arg9[%c2_98, %c0_99, %c0_100] : memref<18x18x128xf32, #tpu.memory_space<vmem>>, vector<16x16x128xf32>
    %c0_101 = arith.constant 0 : index
    %c0_102 = arith.constant 0 : index
    %73 = vector.load %arg10[%c0_101, %c0_102] : memref<256x128xf32, #tpu.memory_space<vmem>>, vector<256x128xf32>
    %74 = vector.shape_cast %72 : vector<16x16x128xf32> to vector<256x128xf32>
    %c2_103 = arith.constant 2 : index
    %c0_104 = arith.constant 0 : index
    %c0_105 = arith.constant 0 : index
    %c0_106 = arith.constant 0 : index
    %75 = vector.load %arg6[%c2_103, %c0_104, %c0_105, %c0_106] : memref<3x3x128x128xf32, #tpu.memory_space<vmem>>, vector<1x1x128x128xf32>
    %76 = vector.shape_cast %75 : vector<1x1x128x128xf32> to vector<128x128xf32>
    %cst_107 = arith.constant dense<0.000000e+00> : vector<256x128xf32>
    %77 = tpu.matmul %74, %76, %cst_107 {dimension_numbers = #tpu.dot_dimension_numbers<[1], [0], [0], [1], [0, 0, 1, 1], [], []>} : vector<256x128xf32>, vector<128x128xf32>, vector<256x128xf32> -> vector<256x128xf32>
    %78 = arith.addf %73, %77 : vector<256x128xf32>
    %c0_108 = arith.constant 0 : index
    %c0_109 = arith.constant 0 : index
    %79 = vector.load %arg10[%c0_108, %c0_109] : memref<256x128xf32, #tpu.memory_space<vmem>>, vector<256x128xf32>
    tpu.vector_store %arg10[%c0_108, %c0_109], %78 {strides = array<i32>} : memref<256x128xf32, #tpu.memory_space<vmem>>, vector<256x128xf32>,
    %c2_110 = arith.constant 2 : index
    %c1_111 = arith.constant 1 : index
    %c0_112 = arith.constant 0 : index
    %80 = vector.load %arg9[%c2_110, %c1_111, %c0_112] : memref<18x18x128xf32, #tpu.memory_space<vmem>>, vector<16x16x128xf32>
    %c0_113 = arith.constant 0 : index
    %c0_114 = arith.constant 0 : index
    %81 = vector.load %arg10[%c0_113, %c0_114] : memref<256x128xf32, #tpu.memory_space<vmem>>, vector<256x128xf32>
    %82 = vector.shape_cast %80 : vector<16x16x128xf32> to vector<256x128xf32>
    %c2_115 = arith.constant 2 : index
    %c1_116 = arith.constant 1 : index
    %c0_117 = arith.constant 0 : index
    %c0_118 = arith.constant 0 : index
    %83 = vector.load %arg6[%c2_115, %c1_116, %c0_117, %c0_118] : memref<3x3x128x128xf32, #tpu.memory_space<vmem>>, vector<1x1x128x128xf32>
    %84 = vector.shape_cast %83 : vector<1x1x128x128xf32> to vector<128x128xf32>
    %cst_119 = arith.constant dense<0.000000e+00> : vector<256x128xf32>
    %85 = tpu.matmul %82, %84, %cst_119 {dimension_numbers = #tpu.dot_dimension_numbers<[1], [0], [0], [1], [0, 0, 1, 1], [], []>} : vector<256x128xf32>, vector<128x128xf32>, vector<256x128xf32> -> vector<256x128xf32>
    %86 = arith.addf %81, %85 : vector<256x128xf32>
    %c0_120 = arith.constant 0 : index
    %c0_121 = arith.constant 0 : index
    %87 = vector.load %arg10[%c0_120, %c0_121] : memref<256x128xf32, #tpu.memory_space<vmem>>, vector<256x128xf32>
    tpu.vector_store %arg10[%c0_120, %c0_121], %86 {strides = array<i32>} : memref<256x128xf32, #tpu.memory_space<vmem>>, vector<256x128xf32>,
    %c2_122 = arith.constant 2 : index
    %c2_123 = arith.constant 2 : index
    %c0_124 = arith.constant 0 : index
    %88 = vector.load %arg9[%c2_122, %c2_123, %c0_124] : memref<18x18x128xf32, #tpu.memory_space<vmem>>, vector<16x16x128xf32>
    %c0_125 = arith.constant 0 : index
    %c0_126 = arith.constant 0 : index
    %89 = vector.load %arg10[%c0_125, %c0_126] : memref<256x128xf32, #tpu.memory_space<vmem>>, vector<256x128xf32>
    %90 = vector.shape_cast %88 : vector<16x16x128xf32> to vector<256x128xf32>
    %c2_127 = arith.constant 2 : index
    %c2_128 = arith.constant 2 : index
    %c0_129 = arith.constant 0 : index
    %c0_130 = arith.constant 0 : index
    %91 = vector.load %arg6[%c2_127, %c2_128, %c0_129, %c0_130] : memref<3x3x128x128xf32, #tpu.memory_space<vmem>>, vector<1x1x128x128xf32>
    %92 = vector.shape_cast %91 : vector<1x1x128x128xf32> to vector<128x128xf32>
    %cst_131 = arith.constant dense<0.000000e+00> : vector<256x128xf32>
    %93 = tpu.matmul %90, %92, %cst_131 {dimension_numbers = #tpu.dot_dimension_numbers<[1], [0], [0], [1], [0, 0, 1, 1], [], []>} : vector<256x128xf32>, vector<128x128xf32>, vector<256x128xf32> -> vector<256x128xf32>
    %94 = arith.addf %89, %93 : vector<256x128xf32>
    %c0_132 = arith.constant 0 : index
    %c0_133 = arith.constant 0 : index
    %95 = vector.load %arg10[%c0_132, %c0_133] : memref<256x128xf32, #tpu.memory_space<vmem>>, vector<256x128xf32>
    tpu.vector_store %arg10[%c0_132, %c0_133], %94 {strides = array<i32>} : memref<256x128xf32, #tpu.memory_space<vmem>>, vector<256x128xf32>,
    %c0_134 = arith.constant 0 : index
    %c0_135 = arith.constant 0 : index
    %96 = vector.load %arg10[%c0_134, %c0_135] : memref<256x128xf32, #tpu.memory_space<vmem>>, vector<256x128xf32>
    %c0_136 = arith.constant 0 : index
    %c0_137 = arith.constant 0 : index
    %97 = vector.load %arg7[%c0_136, %c0_137] : memref<1x128xf32, #tpu.memory_space<vmem>>, vector<1x128xf32>
    %98 = vector.broadcast %97 : vector<1x128xf32> to vector<256x128xf32>
    %99 = arith.addf %96, %98 : vector<256x128xf32>
    %cst_138 = arith.constant 0.000000e+00 : f32
    %100 = vector.broadcast %cst_138 : f32 to vector<256x128xf32>
    %101 = arith.maximumf %99, %100 : vector<256x128xf32>
    %102 = vector.shape_cast %101 : vector<256x128xf32> to vector<1x16x16x128xf32>
    %c0_139 = arith.constant 0 : index
    %c0_140 = arith.constant 0 : index
    %c0_141 = arith.constant 0 : index
    %c0_142 = arith.constant 0 : index
    %103 = vector.load %arg8[%c0_139, %c0_140, %c0_141, %c0_142] : memref<1x16x16x128xf32, #tpu.memory_space<vmem>>, vector<1x16x16x128xf32>
    tpu.vector_store %arg8[%c0_139, %c0_140, %c0_141, %c0_142], %102 {strides = array<i32>} : memref<1x16x16x128xf32, #tpu.memory_space<vmem>>, vector<1x16x16x128xf32>,
    return
  }
  func.func @transform_0(%arg0: i32) -> (i32, i32, i32, i32) {
    %c0_i32 = arith.constant 0 : i32
    %c0_i32_0 = arith.constant 0 : i32
    %c0_i32_1 = arith.constant 0 : i32
    %c0_i32_2 = arith.constant 0 : i32
    return %arg0, %c0_i32, %c0_i32_0, %c0_i32_1 : i32, i32, i32, i32
  }
  func.func @transform_1(%arg0: i32) -> (i32, i32) {
    %c0_i32 = arith.constant 0 : i32
    %c0_i32_0 = arith.constant 0 : i32
    %c0_i32_1 = arith.constant 0 : i32
    return %c0_i32, %c0_i32_0 : i32, i32
  }
  func.func @transform_2(%arg0: i32) -> (i32, i32, i32) {
    %c0_i32 = arith.constant 0 : i32
    %c0_i32_0 = arith.constant 0 : i32
    %c0_i32_1 = arith.constant 0 : i32
    %c0_i32_2 = arith.constant 0 : i32
    return %c0_i32, %c0_i32_0, %c0_i32_1 : i32, i32, i32
  }
  func.func @transform_3(%arg0: i32) -> (i32, i32) {
    %c0_i32 = arith.constant 0 : i32
    %c0_i32_0 = arith.constant 0 : i32
    %c0_i32_1 = arith.constant 0 : i32
    return %c0_i32, %c0_i32_0 : i32, i32
  }
  func.func @transform_4(%arg0: i32) -> (i32, i32) {
    %c0_i32 = arith.constant 0 : i32
    %c0_i32_0 = arith.constant 0 : i32
    %c0_i32_1 = arith.constant 0 : i32
    return %c0_i32, %c0_i32_0 : i32, i32
  }
  func.func @transform_5(%arg0: i32) -> (i32, i32, i32, i32) {
    %c0_i32 = arith.constant 0 : i32
    %c0_i32_0 = arith.constant 0 : i32
    %c0_i32_1 = arith.constant 0 : i32
    %c0_i32_2 = arith.constant 0 : i32
    %c0_i32_3 = arith.constant 0 : i32
    return %c0_i32, %c0_i32_0, %c0_i32_1, %c0_i32_2 : i32, i32, i32, i32
  }
  func.func @transform_6(%arg0: i32) -> (i32, i32) {
    %c0_i32 = arith.constant 0 : i32
    %c0_i32_0 = arith.constant 0 : i32
    %c0_i32_1 = arith.constant 0 : i32
    return %c0_i32, %c0_i32_0 : i32, i32
  }
  func.func @transform_7(%arg0: i32) -> (i32, i32, i32, i32) {
    %c0_i32 = arith.constant 0 : i32
    %c0_i32_0 = arith.constant 0 : i32
    %c0_i32_1 = arith.constant 0 : i32
    %c0_i32_2 = arith.constant 0 : i32
    return %arg0, %c0_i32, %c0_i32_0, %c0_i32_1 : i32, i32, i32, i32
  }
}

</mosaic_0001>

<bundles_post_ra>
// kernel: tpu_custom_call.1
= control target key start
LH: loop header
LB: loop body
LE: loop exit
PB: predicated region body
PF: predicated region fallthrough
CT: control target
= control target key end

     0   :  { %12 = vsyncpa [#allocation5], 0  ;;  %s5093_s0 = inlined_call_operand.vmem [shape: f32[2,16,16,4], index: 0, kind: input, shape index: {}]   ;;  %s5094_s1 = inlined_call_operand.vmem [shape: f32[10,256], index: 1, kind: input, shape index: {}]   ;;  %s5095_s2 = inlined_call_operand.vmem [shape: f32[2,4,128], index: 2, kind: input, shape index: {}]   ;;  %s5096_s3 = inlined_call_operand.vmem [shape: f32[256,10], index: 3, kind: input, shape index: {}]   ;;  %s5097_s4 = inlined_call_operand.vmem [shape: f32[1,128], index: 4, kind: input, shape index: {}]   ;;  %s5098_s5 = inlined_call_operand.hbm [shape: f32[3,3,128,128], index: 5, kind: input, shape index: {}]   ;;  %s5099_s6 = inlined_call_operand.vmem [shape: f32[1,128], index: 6, kind: input, shape index: {}]   ;;  %s5100_s7 = inlined_call_operand.hbm [shape: f32[2,16,16,128], index: 7, kind: output, shape index: {}]  }
   0x1   :  { %13 = vsyncpa [#allocation6], 0 }
   0x2   :  { %15 = vsyncpa [#allocation6 + $0x1], 0  ;;  %s3653_s24 = smov 0   ;;  %s3655_s25 = smov 0  }
   0x3   :  { %s3657_s26 = smov 0   ;;  %s3659_s27 = smov 0  }
   0x4 LB: > { %s3674_s28 = sadd.s32 4294967295, %s3605_s27   ;;  %s3362_s29 = sadd.s32 4294967294, %s3605_s27   ;;  %s3605_s27 = sphi %s3659_s27, %s5382_s27   ;;  %s3601_s26 = sphi %s3657_s26, %s5381_s26   ;;  %s3597_s25 = sphi %s3655_s25, %s5380_s25   ;;  %s3593_s24 = sphi %s3653_s24, %s5379_s24  }
   0x5   : > { %s3678_s30 = sadd.s32 1, %s3605_s27   ;;  %s180_s8 = sadd.s32 1, %s3601_s26 }
   0x6   : > { %s177_s9 = ssub.s32 %s3605_s27, %s3678_s30  ;;  %p190_p0 = scmp.ne.s32.totalorder %s3601_s26, %s3597_s25 }
   0x7   : > { %p178_p1 = scmp.eq.s32.totalorder %s177_s9, 0  ;;  %p191_p2 = scmp.eq.s32.totalorder %s3674_s28, 1 }
   0x8   : > { %p196_p3 = scmp.ne.s32.totalorder %s3597_s25, %s3593_s24  ;;  %p197_p4 = scmp.eq.s32.totalorder %s3362_s29, 1 }
   0x9   : > { %s3689_s10 = scalar_select %p178_p1, %s3601_s26, %s180_s8  }
   0xa   : > { %p3691_p5 = por %p191_p2, %p190_p0  ;;  %p3695_p6 = por %p197_p4, %p196_p3 }
   0xb   : > { %p3363_p7 = scmp.ge.s32.totalorder %s3605_s27, 1  ;;  %p204_p8 = scmp.lt.s32.totalorder %s3605_s27, 3 }
   0xc   : > { %p3465_p9 = scmp.eq.s32.totalorder %s3674_s28, 0  ;;  %s227_s15 = sshll.u32 %s5098_s5, 4  ;;  %s228_s15 = int_to_ptr.hbm [resolvable:$true] %s227_s15 }
   0xd   : > { %p205_p10 = pnand %p3363_p7, %p204_p8  ;;  %s3607_s16 = smov [#allocation4]  }
   0xe   : > { %s229_s17 = sshll.u32 %s3607_s16, 4  ;;  %s3608_s18 = smov 128   ;;  %s230_s17 = int_to_ptr.vmem [resolvable:$true] %s229_s17 }
   0xf   : > { %p3457_p11 = pneg %p205_p10  ;;  %s3609_s19 = smov 8  }
  0x10   : > { %256 = sbr.rel (%p205_p10) target bundleno = 1270 (0x4f6), region = 48 }
  0x11   : > { %p3458_p12 = pnand %p3465_p9, %p3457_p11 }
  0x13   : > { %3460 = dma.hbm_to_vmem [thread:$0]  (!%p3458_p12), %s228_s15, 18432, %s230_s17, [#allocation5], %s3608_s18, %s3608_s18, %s3609_s19  }
  0x15   : > { %3584 = dma.done.wait (%p3465_p9), [#allocation5], 18432  }
  0x16   : > { %3586 = vsyncadd (%p3465_p9), [#allocation5], 4294948864  ;;  %p289_p13 = scmp.lt.s32.totalorder %s3674_s28, 1  ;;  %v326_v32 = vld [vmem:[%s5094_s1] sm:$0xff]  ;;  %v327_v33 = vld [vmem:[%s5094_s1 + $0x8] sm:$0xff]  ;;  %vm381_vm0 = vcmask 1043456  }
  0x17   : > { %v328_v34 = vld [vmem:[%s5094_s1 + $0x10] sm:$0x3]  ;;  %v329_v35 = vld [vmem:[%s5094_s1 + $0x18] sm:$0x3]  ;;  %v376_v36 = vld [vmem:[%s5095_s2] sm:$0xf] }
  0x18   : > { %s290_s20 = scalar_select %p289_p13, %s3674_s28, 1  ;;  %3371 = vmatpush.msk.msra.mxu2 %vm381_vm0, %v376_v36  ;;  %v3373_v37 = vld [vmem:[%s5095_s2 + $0x4] sm:$0xf]  ;;  %vm377_vm1 = vcmask 31744   ;;  %vm408_vm2 = vcmask 1046528   ;;  %vm583_vm3 = vcmask 1041408  }
  0x19   : > { %3374 = vmatpush.msk.msra.mxu3 %vm381_vm0, %v3373_v37  ;;  %vm444_vm4 = vcmask 1040384   ;;  %v450_v53 = vld [vmem:[%s5096_s3] sm:$0xff]  ;;  %vm486_vm5 = vcmask 80896   ;;  %v451_v56 = vld [vmem:[%s5096_s3 + $0x8] sm:$0xff]  ;;  %v452_v58 = vld [vmem:[%s5096_s3 + $0x10] sm:$0xff]  ;;  %s286_s19 = sand.u32 1, %s3597_s25  }
  0x1a   : > { %s3415_s21 = sshll.u32 %s290_s20, 8  ;;  %v462_v54 = vld [vmem:[%s5096_s3 + $0x60] sm:$0xff]  ;;  %v463_v57 = vld [vmem:[%s5096_s3 + $0x68] sm:$0xff]  ;;  %v464_v59 = vld [vmem:[%s5096_s3 + $0x70] sm:$0xff]  ;;  %s3368_s22 = sshll.u32 %s286_s19, 8 }
  0x1b   : > { %s3716_s29 = scalar_lea.vmem %s5093_s0, %s3415_s21  ;;  %v453_v60 = vld [vmem:[%s5096_s3 + $0x18] sm:$0xff]  ;;  %v454_v62 = vld [vmem:[%s5096_s3 + $0x20] sm:$0xff]  ;;  %s4731_s23 = scalar_lea.vmem [#allocation7], %s3368_s22 }
  0x1c   : > { %v309_v0 = vld [vmem:[%s3716_s29 + $0x78] sm:$0xff]  ;;  %v308_v2 = vld [vmem:[%s3716_s29 + $0x70] sm:$0xff]  ;;  %v307_v4 = vld [vmem:[%s3716_s29 + $0x68] sm:$0xff]  ;;  %s3285_s14 = sshll.u32 %s4731_s23, 4  ;;  %s3559_s21 = scalar_lea.hbm %s5100_s7, 512  ;;  %s3286_s14 = int_to_ptr.vmem [resolvable:$true] %s3285_s14 }
  0x1d   : > { %v325_v1 = vld [vmem:[%s3716_s29 + $0xf8] sm:$0xff]  ;;  %330 = vmatpush.msra.mxu0 %v309_v0  ;;  %v324_v3 = vld [vmem:[%s3716_s29 + $0xf0] sm:$0xff]  ;;  %v323_v5 = vld [vmem:[%s3716_s29 + $0xe8] sm:$0xff] }
  0x1e   : > { %353 = vmatpush.msra.mxu1 %v325_v1  ;;  %v306_v6 = vld [vmem:[%s3716_s29 + $0x60] sm:$0xff]  ;;  %v305_v8 = vld [vmem:[%s3716_s29 + $0x58] sm:$0xff]  ;;  %v304_v10 = vld [vmem:[%s3716_s29 + $0x50] sm:$0xff] }
  0x1f   : > { %331 = vmatpush.msra.mxu0 %v308_v2  ;;  %v322_v7 = vld [vmem:[%s3716_s29 + $0xe0] sm:$0xff]  ;;  %v321_v9 = vld [vmem:[%s3716_s29 + $0xd8] sm:$0xff]  ;;  %v320_v11 = vld [vmem:[%s3716_s29 + $0xd0] sm:$0xff] }
  0x20   : > { %354 = vmatpush.msra.mxu1 %v324_v3  ;;  %v303_v12 = vld [vmem:[%s3716_s29 + $0x48] sm:$0xff]  ;;  %v302_v14 = vld [vmem:[%s3716_s29 + $0x40] sm:$0xff]  ;;  %v301_v16 = vld [vmem:[%s3716_s29 + $0x38] sm:$0xff] }
  0x21   : > { %332 = vmatpush.msra.mxu0 %v307_v4  ;;  %v319_v13 = vld [vmem:[%s3716_s29 + $0xc8] sm:$0xff]  ;;  %v318_v15 = vld [vmem:[%s3716_s29 + $0xc0] sm:$0xff]  ;;  %v317_v17 = vld [vmem:[%s3716_s29 + $0xb8] sm:$0xff] }
  0x22   : > { %355 = vmatpush.msra.mxu1 %v323_v5  ;;  %v300_v18 = vld [vmem:[%s3716_s29 + $0x30] sm:$0xff]  ;;  %v299_v20 = vld [vmem:[%s3716_s29 + $0x28] sm:$0xff]  ;;  %v298_v22 = vld [vmem:[%s3716_s29 + $0x20] sm:$0xff] }
  0x23   : > { %333 = vmatpush.msra.mxu0 %v306_v6  ;;  %v316_v19 = vld [vmem:[%s3716_s29 + $0xb0] sm:$0xff]  ;;  %v315_v21 = vld [vmem:[%s3716_s29 + $0xa8] sm:$0xff]  ;;  %v314_v23 = vld [vmem:[%s3716_s29 + $0xa0] sm:$0xff] }
  0x24   : > { %356 = vmatpush.msra.mxu1 %v322_v7  ;;  %v297_v24 = vld [vmem:[%s3716_s29 + $0x18] sm:$0xff]  ;;  %v296_v26 = vld [vmem:[%s3716_s29 + $0x10] sm:$0xff]  ;;  %v295_v28 = vld [vmem:[%s3716_s29 + $0x8] sm:$0xff] }
  0x25   : > { %334 = vmatpush.msra.mxu0 %v305_v8  ;;  %v313_v25 = vld [vmem:[%s3716_s29 + $0x98] sm:$0xff]  ;;  %v312_v27 = vld [vmem:[%s3716_s29 + $0x90] sm:$0xff]  ;;  %v311_v29 = vld [vmem:[%s3716_s29 + $0x88] sm:$0xff] }
  0x26   : > { %357 = vmatpush.msra.mxu1 %v321_v9  ;;  %v294_v30 = vld [vmem:[%s3716_s29] sm:$0xff]  ;;  %v465_v61 = vld [vmem:[%s5096_s3 + $0x78] sm:$0xff]  ;;  %v455_v0 = vld [vmem:[%s5096_s3 + $0x28] sm:$0xff] }
  0x27   : > { %335 = vmatpush.msra.mxu0 %v304_v10  ;;  %v310_v31 = vld [vmem:[%s3716_s29 + $0x80] sm:$0xff]  ;;  %v467_v1 = vld [vmem:[%s5096_s3 + $0x88] sm:$0xff]  ;;  %v456_v2 = vld [vmem:[%s5096_s3 + $0x30] sm:$0xff]  ;;  %s3416_s29 = sshll.u32 %s3674_s28, 8  ;;  %s3273_s28 = scalar_lea.sflag [#allocation6], %s286_s19 }
  0x28   : > { %358 = vmatpush.msra.mxu1 %v320_v11  ;;  %v466_v63 = vld [vmem:[%s5096_s3 + $0x80] sm:$0xff]  ;;  %v468_v3 = vld [vmem:[%s5096_s3 + $0x90] sm:$0xff]  ;;  %v457_v4 = vld [vmem:[%s5096_s3 + $0x38] sm:$0xff]  ;;  %s3284_s13 = scalar_lea.hbm %s5100_s7, %s3416_s29 }
  0x29   : > { %336 = vmatpush.msra.mxu0 %v303_v12  ;;  %v469_v5 = vld [vmem:[%s5096_s3 + $0x98] sm:$0xff]  ;;  %v897_v6 = vld [vmem:[#allocation4 + $0x78] sm:$0xff]  ;;  %v896_v7 = vld [vmem:[#allocation4 + $0x70] sm:$0xff]  ;;  %s3287_s15 = sshll.u32 %s3284_s13, 4  ;;  %s3288_s15 = int_to_ptr.hbm [resolvable:$true] %s3287_s15 }
  0x2a   : > { %359 = vmatpush.msra.mxu1 %v319_v13  ;;  %3419 = vmatpush.msrb.mxu3 %v897_v6  ;;  %v895_v8 = vld [vmem:[#allocation4 + $0x68] sm:$0xff]  ;;  %v894_v9 = vld [vmem:[#allocation4 + $0x60] sm:$0xff]  ;;  %v458_v10 = vld [vmem:[%s5096_s3 + $0x40] sm:$0xff]  ;;  %s3553_s16 = sshra.s32 %s3288_s15, 4  ;;  %s3554_s16 = int_to_ptr.hbm [resolvable:$true] %s3553_s16 }
  0x2b   : > { %337 = vmatpush.msra.mxu0 %v302_v14  ;;  %v470_v11 = vld [vmem:[%s5096_s3 + $0xa0] sm:$0xff]  ;;  %v893_v12 = vld [vmem:[#allocation4 + $0x58] sm:$0xff]  ;;  %v883_v36 = vld [vmem:[#allocation4 + $0x8] sm:$0xff]  ;;  %s3555_s17 = scalar_lea.hbm %s3554_s16, 256  ;;  %p3560_p3 = scmp.lt.s32.totalorder %s3554_s16, %s5100_s7 }
  0x2c   : > { %360 = vmatpush.msra.mxu1 %v318_v15  ;;  %3420 = vmatpush.msrb.mxu3 %v896_v7  ;;  %v1413_v13 = vld [vmem:[#allocation4 + $0x178] sm:$0xff]  ;;  %v892_v14 = vld [vmem:[#allocation4 + $0x50] sm:$0xff]  ;;  %v1403_v37 = vld [vmem:[#allocation4 + $0x128] sm:$0xff]  ;;  %p3556_p0 = scmp.ne.s32.totalorder %s3554_s16, %s3555_s17  ;;  %p3561_p4 = scmp.lt.s32.totalorder %s3559_s21, %s3555_s17 }
  0x2d   : > { %338 = vmatpush.msra.mxu0 %v301_v16  ;;  %v1412_v15 = vld [vmem:[#allocation4 + $0x170] sm:$0xff]  ;;  %v891_v16 = vld [vmem:[#allocation4 + $0x48] sm:$0xff] }
  0x2e   : > { %361 = vmatpush.msra.mxu1 %v317_v17  ;;  %3421 = vmatpush.msrb.mxu3 %v895_v8  ;;  %v1411_v17 = vld [vmem:[#allocation4 + $0x168] sm:$0xff]  ;;  %p3557_p1 = pnand %p3556_p0, %p3691_p5  ;;  %p3562_p7 = por %p3561_p4, %p3560_p3 }
  0x2f   : > { %339 = vmatpush.msra.mxu0 %v300_v18  ;;  %v890_v18 = vld [vmem:[#allocation4 + $0x40] sm:$0xff] }
  0x30   : > { %362 = vmatpush.msra.mxu1 %v316_v19  ;;  %3422 = vmatpush.msrb.mxu3 %v894_v9  ;;  %v1410_v19 = vld [vmem:[#allocation4 + $0x160] sm:$0xff]  ;;  %p3558_p2 = pneg %p3557_p1 }
  0x31   : > { %340 = vmatpush.msra.mxu0 %v299_v20  ;;  %v459_v20 = vld [vmem:[%s5096_s3 + $0x48] sm:$0xff] }
  0x32   : > { %363 = vmatpush.msra.mxu1 %v315_v21  ;;  %3423 = vmatpush.msrb.mxu3 %v893_v12  ;;  %v471_v21 = vld [vmem:[%s5096_s3 + $0xa8] sm:$0xff]  ;;  %p3563_p8 = pnand %p3562_p7, %p3558_p2 }
  0x33   : > { %341 = vmatpush.msra.mxu0 %v298_v22  ;;  %v889_v22 = vld [vmem:[#allocation4 + $0x38] sm:$0xff] }
  0x34   : > { %364 = vmatpush.msra.mxu1 %v314_v23  ;;  %3424 = vmatpush.msrb.mxu3 %v892_v14  ;;  %v1409_v23 = vld [vmem:[#allocation4 + $0x158] sm:$0xff] }
  0x35   : > { %342 = vmatpush.msra.mxu0 %v297_v24  ;;  %v888_v24 = vld [vmem:[#allocation4 + $0x30] sm:$0xff] }
  0x36   : > { %365 = vmatpush.msra.mxu1 %v313_v25  ;;  %3425 = vmatpush.msrb.mxu3 %v891_v16  ;;  %v1408_v25 = vld [vmem:[#allocation4 + $0x150] sm:$0xff] }
  0x37   : > { %343 = vmatpush.msra.mxu0 %v296_v26  ;;  %v887_v26 = vld [vmem:[#allocation4 + $0x28] sm:$0xff] }
  0x38   : > { %366 = vmatpush.msra.mxu1 %v312_v27  ;;  %v1407_v27 = vld [vmem:[#allocation4 + $0x148] sm:$0xff]  ;;  %3426 = vmatpush.msrb.mxu3 %v890_v18 }
  0x39   : > { %344 = vmatpush.msra.mxu0 %v295_v28  ;;  %v886_v28 = vld [vmem:[#allocation4 + $0x20] sm:$0xff] }
  0x3a   : > { %367 = vmatpush.msra.mxu1 %v311_v29  ;;  %v1406_v29 = vld [vmem:[#allocation4 + $0x140] sm:$0xff]  ;;  %3427 = vmatpush.msrb.mxu3 %v889_v22 }
  0x3b   : > { %345 = vmatpush.msra.mxu0 %v294_v30  ;;  %v460_v30 = vld [vmem:[%s5096_s3 + $0x50] sm:$0xff] }
  0x3c   : > { %368 = vmatpush.msra.mxu1 %v310_v31  ;;  %346 = vmatmul.f32.vlgmr.msra.gmra.mxu0 %v326_v32  ;;  %v472_v31 = vld [vmem:[%s5096_s3 + $0xb0] sm:$0xff]  ;;  %v885_v32 = vld [vmem:[#allocation4 + $0x18] sm:$0xff] }
  0x3d   : > { %369 = vmatmul.f32.vlgmr.msra.gmra.mxu1 %v327_v33  ;;  %898 = vmatpush.msrb.mxu0 %v897_v6  ;;  %v1405_v33 = vld [vmem:[#allocation4 + $0x138] sm:$0xff] }
  0x3e   : > { %3428 = vmatpush.msrb.mxu3 %v888_v24 }
  0x3f   : > { %899 = vmatpush.msrb.mxu0 %v896_v7  ;;  %v479_v7 = vld [vmem:[%s5096_s3 + $0xe8] sm:$0xff] }
  0x40   : > { %3429 = vmatpush.msrb.mxu3 %v887_v26 }
  0x41   : > { %900 = vmatpush.msrb.mxu0 %v895_v8  ;;  %v1659_v8 = vld [vmem:[#allocation4 + $0x198] sm:$0xff] }
  0x42   : > { %3430 = vmatpush.msrb.mxu3 %v886_v28 }
  0x43   : > { %901 = vmatpush.msrb.mxu0 %v894_v9  ;;  %v1658_v9 = vld [vmem:[#allocation4 + $0x190] sm:$0xff] }
  0x44   : > { %349 = vmatmul.f32.gmra.mxu0 %v328_v34  ;;  %v884_v34 = vld [vmem:[#allocation4 + $0x10] sm:$0xff]  ;;  %3431 = vmatpush.msrb.mxu3 %v885_v32 }
  0x45   : > { %372 = vmatmul.f32.gmra.mxu1 %v329_v35  ;;  %902 = vmatpush.msrb.mxu0 %v893_v12  ;;  %v1404_v35 = vld [vmem:[#allocation4 + $0x130] sm:$0xff] }
  0x46   : > { %3432 = vmatpush.msrb.mxu3 %v884_v34 }
  0x47   : > { %903 = vmatpush.msrb.mxu0 %v892_v14 }
  0x48   : > { %3433 = vmatpush.msrb.mxu3 %v883_v36 }
  0x49   : > { %904 = vmatpush.msrb.mxu0 %v891_v16 }
  0x4b   : > { %905 = vmatpush.msrb.mxu0 %v890_v18 }
  0x4d   : > { %906 = vmatpush.msrb.mxu0 %v889_v22 }
  0x4f   : > { %907 = vmatpush.msrb.mxu0 %v888_v24 }
  0x51   : > { %908 = vmatpush.msrb.mxu0 %v887_v26  ;;  %v481_v26 = vld [vmem:[%s5096_s3 + $0xf8] sm:$0xff] }
  0x53   : > { %909 = vmatpush.msrb.mxu0 %v886_v28 }
  0x55   : > { %910 = vmatpush.msrb.mxu0 %v885_v32 }
  0x57   : > { %911 = vmatpush.msrb.mxu0 %v884_v34 }
  0x59   : > { %912 = vmatpush.msrb.mxu0 %v883_v36 }
  0xb9   : > { %v347_v38 = vpop.f32.mrf.mxu0 }
  0xba   : > { %v370_v39 = vpop.f32.mrf.mxu1 }
  0xbb   : > { %v371_v40 = vadd.f32 %v370_v39, %v347_v38  ;;  %v882_v38 = vld [vmem:[#allocation4] sm:$0xff] }
  0xbc   : > { %v1402_v39 = vld [vmem:[#allocation4 + $0x120] sm:$0xff]  ;;  %913 = vmatpush.msrb.mxu0 %v882_v38  ;;  %3434 = vmatpush.msrb.mxu3 %v882_v38 }
  0xbd   : > { %3372 = vmatmul.msk.f32.vlgmr.msra.gmra.mxu2 %vm377_vm1, %v371_v40  ;;  %v409_v44 = vrot.slane %v371_v40, 1  ;;  %v461_v40 = vld [vmem:[%s5096_s3 + $0x58] sm:$0xff] }
  0xc1   : > { %v350_v41 = vpop.f32.mrf.mxu0 }
  0xc2   : > { %v373_v42 = vpop.f32.mrf.mxu1 }
  0xc3   : > { %v374_v43 = vadd.f32 %v373_v42, %v350_v41  ;;  %v473_v41 = vld [vmem:[%s5096_s3 + $0xb8] sm:$0xff]  ;;  %v3610_v42 = vmov 0.0  }
  0xc4   : > { %699 = vst [vmem:[#allocation2] sm:$0xff] %v3610_v42  ;;  %914 = vmatmul.f32.vlgmr.msrb.gmra.mxu0 %v3610_v42 }
  0xc5   : > { %v410_v45 = vrot.slane %v374_v43, 1  ;;  %v1401_v43 = vld [vmem:[#allocation4 + $0x118] sm:$0xff]  ;;  %700 = vst [vmem:[#allocation2 + $0x8] sm:$0xff] %v3610_v42 }
  0xc6   : > { %701 = vst [vmem:[#allocation2 + $0x10] sm:$0x3] %v3610_v42 }
  0xc7   : > { %v411_v46 = vsel %vm408_vm2, %v409_v44, %v410_v45  ;;  %v1400_v44 = vld [vmem:[#allocation4 + $0x110] sm:$0xff]  ;;  %702 = vst [vmem:[#allocation2 + $0x18] sm:$0xff] %v3610_v42 }
  0xc8   : > { %3375 = vmatmul.msk.f32.vlgmr.msra.gmra.mxu3 %vm377_vm1, %v411_v46  ;;  %703 = vst [vmem:[#allocation2 + $0x20] sm:$0xff] %v3610_v42  ;;  %v1671_v46 = vld [vmem:[#allocation4 + $0x1f8] sm:$0xff] }
  0xc9   : > { %704 = vst [vmem:[#allocation2 + $0x28] sm:$0x3] %v3610_v42 }
  0xca   : > { %705 = vst [vmem:[#allocation2 + $0x30] sm:$0xff] %v3610_v42 }
  0xcb   : > { %706 = vst [vmem:[#allocation2 + $0x38] sm:$0xff] %v3610_v42 }
  0xcc   : > { %707 = vst [vmem:[#allocation2 + $0x40] sm:$0x3] %v3610_v42  ;;  %917 = vmatmul.f32.gmra.mxu0 %v3610_v42 }
  0xcd   : > { %708 = vst [vmem:[#allocation2 + $0x48] sm:$0xff] %v3610_v42 }
  0xce   : > { %709 = vst [vmem:[#allocation2 + $0x50] sm:$0xff] %v3610_v42 }
  0xcf   : > { %710 = vst [vmem:[#allocation2 + $0x58] sm:$0x3] %v3610_v42 }
  0xd0   : > { %3376 = vmatmul.msk.f32.gmra.mxu3 %vm377_vm1, %v410_v45  ;;  %v474_v45 = vld [vmem:[%s5096_s3 + $0xc0] sm:$0xff]  ;;  %711 = vst [vmem:[#allocation2 + $0x60] sm:$0xff] %v3610_v42 }
  0xd1   : > { %712 = vst [vmem:[#allocation2 + $0x68] sm:$0xff] %v3610_v42 }
  0xd2   : > { %713 = vst [vmem:[#allocation2 + $0x70] sm:$0x3] %v3610_v42 }
  0xd3   : > { %714 = vst [vmem:[#allocation2 + $0x78] sm:$0xff] %v3610_v42 }
  0xd4   : > { %715 = vst [vmem:[#allocation2 + $0x80] sm:$0xff] %v3610_v42 }
  0xd5   : > { %716 = vst [vmem:[#allocation2 + $0x88] sm:$0x3] %v3610_v42 }
  0xd6   : > { %717 = vst [vmem:[#allocation2 + $0x90] sm:$0xff] %v3610_v42 }
  0xd7   : > { %718 = vst [vmem:[#allocation2 + $0x98] sm:$0xff] %v3610_v42 }
  0xd8   : > { %719 = vst [vmem:[#allocation2 + $0xa0] sm:$0x3] %v3610_v42 }
  0xd9   : > { %720 = vst [vmem:[#allocation2 + $0xa8] sm:$0xff] %v3610_v42 }
  0xda   : > { %721 = vst [vmem:[#allocation2 + $0xb0] sm:$0xff] %v3610_v42 }
  0xdb   : > { %722 = vst [vmem:[#allocation2 + $0xb8] sm:$0x3] %v3610_v42 }
  0xdc   : > { %723 = vst [vmem:[#allocation2 + $0xc0] sm:$0xff] %v3610_v42 }
  0xdd   : > { %724 = vst [vmem:[#allocation2 + $0xc8] sm:$0xff] %v3610_v42 }
  0xde   : > { %725 = vst [vmem:[#allocation2 + $0xd0] sm:$0x3] %v3610_v42 }
  0xdf   : > { %726 = vst [vmem:[#allocation2 + $0xd8] sm:$0xff] %v3610_v42 }
  0xe0   : > { %727 = vst [vmem:[#allocation2 + $0xe0] sm:$0xff] %v3610_v42 }
  0xe1   : > { %728 = vst [vmem:[#allocation2 + $0xe8] sm:$0x3] %v3610_v42 }
  0xe2   : > { %729 = vst [vmem:[#allocation2 + $0xf0] sm:$0xff] %v3610_v42 }
  0xe3   : > { %730 = vst [vmem:[#allocation2 + $0xf8] sm:$0xff] %v3610_v42 }
  0xe4   : > { %731 = vst [vmem:[#allocation2 + $0x100] sm:$0x3] %v3610_v42 }
  0xe5   : > { %732 = vst [vmem:[#allocation2 + $0x108] sm:$0xff] %v3610_v42 }
  0xe6   : > { %733 = vst [vmem:[#allocation2 + $0x110] sm:$0xff] %v3610_v42 }
  0xe7   : > { %734 = vst [vmem:[#allocation2 + $0x118] sm:$0x3] %v3610_v42 }
  0xe8   : > { %735 = vst [vmem:[#allocation2 + $0x120] sm:$0xff] %v3610_v42 }
  0xe9   : > { %736 = vst [vmem:[#allocation2 + $0x128] sm:$0xff] %v3610_v42 }
  0xea   : > { %737 = vst [vmem:[#allocation2 + $0x130] sm:$0x3] %v3610_v42 }
  0xeb   : > { %738 = vst [vmem:[#allocation2 + $0x138] sm:$0xff] %v3610_v42 }
  0xec   : > { %739 = vst [vmem:[#allocation2 + $0x140] sm:$0xff] %v3610_v42 }
  0xed   : > { %740 = vst [vmem:[#allocation2 + $0x148] sm:$0x3] %v3610_v42 }
  0xee   : > { %741 = vst [vmem:[#allocation2 + $0x150] sm:$0xff] %v3610_v42 }
  0xef   : > { %742 = vst [vmem:[#allocation2 + $0x158] sm:$0xff] %v3610_v42 }
  0xf0   : > { %743 = vst [vmem:[#allocation2 + $0x160] sm:$0x3] %v3610_v42 }
  0xf1   : > { %744 = vst [vmem:[#allocation2 + $0x168] sm:$0xff] %v3610_v42 }
  0xf2   : > { %745 = vst [vmem:[#allocation2 + $0x170] sm:$0xff] %v3610_v42 }
  0xf3   : > { %746 = vst [vmem:[#allocation2 + $0x178] sm:$0x3] %v3610_v42 }
  0xf4   : > { %747 = vst [vmem:[#allocation2 + $0x180] sm:$0xff] %v3610_v42 }
  0xf5   : > { %748 = vst [vmem:[#allocation2 + $0x188] sm:$0xff] %v3610_v42 }
  0xf6   : > { %749 = vst [vmem:[#allocation2 + $0x190] sm:$0x3] %v3610_v42 }
  0xf7   : > { %750 = vst [vmem:[#allocation2 + $0x198] sm:$0xff] %v3610_v42 }
  0xf8   : > { %751 = vst [vmem:[#allocation2 + $0x1a0] sm:$0xff] %v3610_v42 }
  0xf9   : > { %752 = vst [vmem:[#allocation2 + $0x1a8] sm:$0x3] %v3610_v42 }
 0x140   : > { %v402_v52 = vpop.f32.mrf.mxu2 }
 0x14b   : > { %v436_v47 = vpop.f32.mrf.mxu3 }
 0x14c   : > { %v445_v49 = vrot.slane %v436_v47, 7  ;;  %v475_v47 = vld [vmem:[%s5096_s3 + $0xc8] sm:$0xff] }
 0x14e   : > { %v449_v55 = vsel %vm444_vm4, %v402_v52, %v445_v49  ;;  %v1670_v52 = vld [vmem:[#allocation4 + $0x1f0] sm:$0xff] }
 0x153   : > { %v439_v48 = vpop.f32.mrf.mxu3 }
 0x154   : > { %v446_v50 = vrot.slane %v439_v48, 7  ;;  %v1399_v48 = vld [vmem:[#allocation4 + $0x108] sm:$0xff] }
 0x156   : > { %v447_v51 = vsel %vm444_vm4, %v445_v49, %v446_v50  ;;  %v1398_v49 = vld [vmem:[#allocation4 + $0x100] sm:$0xff] }
 0x157   : > { %3377 = vmatpush.msk.msrb.mxu1 %vm583_vm3, %v447_v51  ;;  %3417 = vmatpush.msk.msrb.mxu2 %vm583_vm3, %v447_v51  ;;  %v476_v50 = vld [vmem:[%s5096_s3 + $0xd0] sm:$0xff]  ;;  %v1333_v51 = vld [vmem:[#allocation2 + $0x2] sm:$0xff] }
 0x159   : > { %601 = vmatpush.msrb.mxu1 %v449_v55  ;;  %3418 = vmatpush.msrb.mxu2 %v449_v55  ;;  %v477_v55 = vld [vmem:[%s5096_s3 + $0xd8] sm:$0xff] }
 0x15a   : > { %3378 = vmatmul.msk.f32.vlgmr.msrb.gmra.mxu1 %vm486_vm5, %v450_v53  ;;  %3390 = vmatmul.msk.f32.vlgmr.msrb.gmra.mxu2 %vm486_vm5, %v462_v54  ;;  %v1669_v53 = vld [vmem:[#allocation4 + $0x1e8] sm:$0xff]  ;;  %v1668_v54 = vld [vmem:[#allocation4 + $0x1e0] sm:$0xff] }
 0x15b   : > { %1414 = vmatpush.msra.mxu1 %v1413_v13  ;;  %1672 = vmatpush.msra.mxu2 %v1671_v46  ;;  %v1656_v13 = vld [vmem:[#allocation4 + $0x180] sm:$0xff] }
 0x15d   : > { %1415 = vmatpush.msra.mxu1 %v1412_v15  ;;  %1673 = vmatpush.msra.mxu2 %v1670_v52 }
 0x15f   : > { %1416 = vmatpush.msra.mxu1 %v1411_v17  ;;  %1674 = vmatpush.msra.mxu2 %v1669_v53 }
 0x161   : > { %1417 = vmatpush.msra.mxu1 %v1410_v19  ;;  %1675 = vmatpush.msra.mxu2 %v1668_v54  ;;  %v480_v19 = vld [vmem:[%s5096_s3 + $0xf0] sm:$0xff] }
 0x162   : > { %3379 = vmatmul.msk.f32.gmra.mxu1 %vm486_vm5, %v451_v56  ;;  %3391 = vmatmul.msk.f32.gmra.mxu2 %vm486_vm5, %v463_v57  ;;  %v1334_v56 = vld [vmem:[#allocation2 + $0xa] sm:$0xff] }
 0x163   : > { %1418 = vmatpush.msra.mxu1 %v1409_v23  ;;  %v1667_v57 = vld [vmem:[#allocation4 + $0x1d8] sm:$0xff] }
 0x164   : > { %1676 = vmatpush.msra.mxu2 %v1667_v57  ;;  %v1924_v57 = vld [vmem:[#allocation4 + $0x250] sm:$0xff] }
 0x165   : > { %1419 = vmatpush.msra.mxu1 %v1408_v25 }
 0x167   : > { %1420 = vmatpush.msra.mxu1 %v1407_v27 }
 0x169   : > { %1421 = vmatpush.msra.mxu1 %v1406_v29  ;;  %v1155_v29 = vld [vmem:[#allocation4 + $0xf8] sm:$0xff] }
 0x16a   : > { %3380 = vmatmul.msk.f32.gmra.mxu1 %vm486_vm5, %v452_v58  ;;  %3392 = vmatmul.msk.f32.gmra.mxu2 %vm486_vm5, %v464_v59  ;;  %v1666_v58 = vld [vmem:[#allocation4 + $0x1d0] sm:$0xff]  ;;  %v1665_v59 = vld [vmem:[#allocation4 + $0x1c8] sm:$0xff] }
 0x16b   : > { %1422 = vmatpush.msra.mxu1 %v1405_v33  ;;  %1677 = vmatpush.msra.mxu2 %v1666_v58  ;;  %v1151_v58 = vld [vmem:[#allocation4 + $0xd8] sm:$0xff] }
 0x16c   : > { %1156 = vmatpush.msra.mxu0 %v1155_v29 }
 0x16d   : > { %1423 = vmatpush.msra.mxu1 %v1404_v35  ;;  %1678 = vmatpush.msra.mxu2 %v1665_v59 }
 0x16f   : > { %1424 = vmatpush.msra.mxu1 %v1403_v37 }
 0x171   : > { %1425 = vmatpush.msra.mxu1 %v1402_v39  ;;  %v1154_v39 = vld [vmem:[#allocation4 + $0xf0] sm:$0xff] }
 0x172   : > { %3381 = vmatmul.msk.f32.gmra.mxu1 %vm486_vm5, %v453_v60  ;;  %3393 = vmatmul.msk.f32.gmra.mxu2 %vm486_vm5, %v465_v61  ;;  %v1664_v60 = vld [vmem:[#allocation4 + $0x1c0] sm:$0xff] }
 0x173   : > { %1426 = vmatpush.msra.mxu1 %v1401_v43  ;;  %1679 = vmatpush.msra.mxu2 %v1664_v60 }
 0x174   : > { %1157 = vmatpush.msra.mxu0 %v1154_v39 }
 0x175   : > { %1427 = vmatpush.msra.mxu1 %v1400_v44 }
 0x177   : > { %1428 = vmatpush.msra.mxu1 %v1399_v48  ;;  %v1153_v48 = vld [vmem:[#allocation4 + $0xe8] sm:$0xff] }
 0x178   : > { %1158 = vmatpush.msra.mxu0 %v1153_v48  ;;  %v1143_v48 = vld [vmem:[#allocation4 + $0x98] sm:$0xff] }
 0x179   : > { %1429 = vmatpush.msra.mxu1 %v1398_v49 }
 0x17a   : > { %3382 = vmatmul.msk.f32.gmra.mxu1 %vm486_vm5, %v454_v62  ;;  %3394 = vmatmul.msk.f32.gmra.mxu2 %vm486_vm5, %v466_v63  ;;  %v478_v62 = vld [vmem:[%s5096_s3 + $0xe0] sm:$0xff]  ;;  %v1663_v63 = vld [vmem:[#allocation4 + $0x1b8] sm:$0xff] }
 0x17b   : > { %1680 = vmatpush.msra.mxu2 %v1663_v63 }
 0x182   : > { %3383 = vmatmul.msk.f32.gmra.mxu1 %vm486_vm5, %v455_v0  ;;  %3395 = vmatmul.msk.f32.gmra.mxu2 %vm486_vm5, %v467_v1  ;;  %v1662_v0 = vld [vmem:[#allocation4 + $0x1b0] sm:$0xff]  ;;  %v1929_v1 = vld [vmem:[#allocation4 + $0x278] sm:$0xff] }
 0x183   : > { %1930 = vmatpush.msra.mxu3 %v1929_v1  ;;  %1681 = vmatpush.msra.mxu2 %v1662_v0 }
 0x18a   : > { %3384 = vmatmul.msk.f32.gmra.mxu1 %vm486_vm5, %v456_v2  ;;  %3396 = vmatmul.msk.f32.gmra.mxu2 %vm486_vm5, %v468_v3  ;;  %v1661_v2 = vld [vmem:[#allocation4 + $0x1a8] sm:$0xff]  ;;  %v1660_v3 = vld [vmem:[#allocation4 + $0x1a0] sm:$0xff] }
 0x18b   : > { %1682 = vmatpush.msra.mxu2 %v1661_v2  ;;  %v1923_v2 = vld [vmem:[#allocation4 + $0x248] sm:$0xff] }
 0x18d   : > { %1683 = vmatpush.msra.mxu2 %v1660_v3  ;;  %v1150_v3 = vld [vmem:[#allocation4 + $0xd0] sm:$0xff] }
 0x18f   : > { %1684 = vmatpush.msra.mxu2 %v1659_v8 }
 0x191   : > { %1685 = vmatpush.msra.mxu2 %v1658_v9 }
 0x192   : > { %3385 = vmatmul.msk.f32.gmra.mxu1 %vm486_vm5, %v457_v4  ;;  %3397 = vmatmul.msk.f32.gmra.mxu2 %vm486_vm5, %v469_v5  ;;  %v3935_v5 = vld [vmem:[%s5097_s4] ss:$0 sm:$0xff] }
 0x19a   : > { %3386 = vmatmul.msk.f32.gmra.mxu1 %vm486_vm5, %v458_v10  ;;  %3398 = vmatmul.msk.f32.gmra.mxu2 %vm486_vm5, %v470_v11  ;;  %v1928_v10 = vld [vmem:[#allocation4 + $0x270] sm:$0xff]  ;;  %v1657_v11 = vld [vmem:[#allocation4 + $0x188] sm:$0xff] }
 0x19b   : > { %1931 = vmatpush.msra.mxu3 %v1928_v10  ;;  %1686 = vmatpush.msra.mxu2 %v1657_v11 }
 0x19d   : > { %1687 = vmatpush.msra.mxu2 %v1656_v13  ;;  %v1922_v13 = vld [vmem:[#allocation4 + $0x240] sm:$0xff] }
 0x1a2   : > { %3387 = vmatmul.msk.f32.gmra.mxu1 %vm486_vm5, %v459_v20  ;;  %3399 = vmatmul.msk.f32.gmra.mxu2 %vm486_vm5, %v471_v21  ;;  %v1927_v21 = vld [vmem:[#allocation4 + $0x268] sm:$0xff] }
 0x1a3   : > { %1932 = vmatpush.msra.mxu3 %v1927_v21 }
 0x1aa   : > { %3388 = vmatmul.msk.f32.gmra.mxu1 %vm486_vm5, %v460_v30  ;;  %3400 = vmatmul.msk.f32.gmra.mxu2 %vm486_vm5, %v472_v31  ;;  %v1926_v31 = vld [vmem:[#allocation4 + $0x260] sm:$0xff] }
 0x1ab   : > { %1933 = vmatpush.msra.mxu3 %v1926_v31  ;;  %v1146_v31 = vld [vmem:[#allocation4 + $0xb0] sm:$0xff] }
 0x1b2   : > { %3389 = vmatmul.msk.f32.gmra.mxu1 %vm486_vm5, %v461_v40  ;;  %3401 = vmatmul.msk.f32.gmra.mxu2 %vm486_vm5, %v473_v41  ;;  %v1925_v40 = vld [vmem:[#allocation4 + $0x258] sm:$0xff] }
 0x1b3   : > { %1934 = vmatpush.msra.mxu3 %v1925_v40 }
 0x1b5   : > { %1935 = vmatpush.msra.mxu3 %v1924_v57 }
 0x1b7   : > { %1936 = vmatpush.msra.mxu3 %v1923_v2  ;;  %v1919_v2 = vld [vmem:[#allocation4 + $0x228] sm:$0xff] }
 0x1b9   : > { %1937 = vmatpush.msra.mxu3 %v1922_v13  ;;  %v1918_v13 = vld [vmem:[#allocation4 + $0x220] sm:$0xff] }
 0x1ba   : > { %3402 = vmatmul.msk.f32.gmra.mxu2 %vm486_vm5, %v474_v45  ;;  %1430 = vmatmul.f32.vlgmr.msra.gmra.mxu1 %v1333_v51 }
 0x1c2   : > { %3403 = vmatmul.msk.f32.gmra.mxu2 %vm486_vm5, %v475_v47  ;;  %1433 = vmatmul.f32.gmra.mxu1 %v1334_v56  ;;  %v1152_v56 = vld [vmem:[#allocation4 + $0xe0] sm:$0xff] }
 0x1c3   : > { %1159 = vmatpush.msra.mxu0 %v1152_v56 }
 0x1c5   : > { %1160 = vmatpush.msra.mxu0 %v1151_v58 }
 0x1c7   : > { %1161 = vmatpush.msra.mxu0 %v1150_v3 }
 0x1ca   : > { %3404 = vmatmul.msk.f32.gmra.mxu2 %vm486_vm5, %v476_v50 }
 0x1d2   : > { %3405 = vmatmul.msk.f32.gmra.mxu2 %vm486_vm5, %v477_v55 }
 0x1d7   : > { %v603_v61 = vpop.f32.mrf.mxu1 }
 0x1d8   : > { %v3947_v12 = vadd.f32 %v3935_v5, %v603_v61 }
 0x1da   : > { %3406 = vmatmul.msk.f32.gmra.mxu2 %vm486_vm5, %v478_v62  ;;  %754 = vst [vmem:[#allocation2 + $0x19] sm:$0xff] %v3947_v12 }
 0x1dd   : > { %v639_v4 = vpop.f32.mrf.mxu2 }
 0x1de   : > { %v3951_v14 = vadd.f32 %v3935_v5, %v639_v4 }
 0x1df   : > { %v606_v6 = vpop.f32.mrf.mxu1 }
 0x1e0   : > { %v3955_v16 = vadd.f32 %v3935_v5, %v606_v6  ;;  %766 = vst [vmem:[#allocation2 + $0xa9] sm:$0xff] %v3951_v14 }
 0x1e1   : > { %v820_v24 = vld [vmem:[#allocation2 + $0x18] sm:$0xff] }
 0x1e2   : > { %3407 = vmatmul.msk.f32.gmra.mxu2 %vm486_vm5, %v479_v7  ;;  %755 = vst [vmem:[#allocation2 + $0x21] sm:$0xff] %v3955_v16  ;;  %920 = vmatmul.f32.gmra.mxu0 %v820_v24 }
 0x1e5   : > { %v642_v15 = vpop.f32.mrf.mxu2 }
 0x1e6   : > { %v3959_v17 = vadd.f32 %v3935_v5, %v642_v15  ;;  %v1149_v15 = vld [vmem:[#allocation4 + $0xc8] sm:$0xff] }
 0x1e7   : > { %v609_v18 = vpop.f32.mrf.mxu1  ;;  %v3979_v27 = vld [vmem:[#allocation2 + $0xa8] sm:$0xff]  ;;  %1162 = vmatpush.msra.mxu0 %v1149_v15 }
 0x1e8   : > { %v3966_v20 = vadd.f32 %v3935_v5, %v609_v18  ;;  %767 = vst [vmem:[#allocation2 + $0xb1] sm:$0xff] %v3959_v17  ;;  %956 = vmatmul.f32.vlgmr.msrb.gmra.mxu3 %v3979_v27  ;;  %v1148_v18 = vld [vmem:[#allocation4 + $0xc0] sm:$0xff] }
 0x1e9   : > { %v1335_v30 = vld [vmem:[#allocation2 + $0x1a] sm:$0xff]  ;;  %v1336_v36 = vld [vmem:[#allocation2 + $0x22] sm:$0xff]  ;;  %1163 = vmatpush.msra.mxu0 %v1148_v18 }
 0x1ea   : > { %3408 = vmatmul.msk.f32.gmra.mxu2 %vm486_vm5, %v480_v19  ;;  %756 = vst [vmem:[#allocation2 + $0x31] sm:$0xff] %v3966_v20  ;;  %1436 = vmatmul.f32.gmra.mxu1 %v1335_v30  ;;  %v821_v32 = vld [vmem:[#allocation2 + $0x20] sm:$0xff]  ;;  %v1147_v30 = vld [vmem:[#allocation4 + $0xb8] sm:$0xff] }
 0x1eb   : > { %923 = vmatmul.f32.gmra.mxu0 %v821_v32 }
 0x1ec   : > { %1164 = vmatpush.msra.mxu0 %v1147_v30 }
 0x1ed   : > { %v645_v22 = vpop.f32.mrf.mxu2 }
 0x1ee   : > { %v3974_v23 = vadd.f32 %v3935_v5, %v645_v22  ;;  %1165 = vmatpush.msra.mxu0 %v1146_v31 }
 0x1ef   : > { %v612_v25 = vpop.f32.mrf.mxu1  ;;  %v3988_v34 = vld [vmem:[#allocation2 + $0xb0] sm:$0xff] }
 0x1f0   : > { %768 = vst [vmem:[#allocation2 + $0xc1] sm:$0xff] %v3974_v23  ;;  %v3983_v28 = vadd.f32 %v3935_v5, %v612_v25  ;;  %959 = vmatmul.f32.gmra.mxu3 %v3988_v34 }
 0x1f1   : > { %v822_v41 = vld [vmem:[#allocation2 + $0x30] sm:$0xff] }
 0x1f2   : > { %757 = vst [vmem:[#allocation2 + $0x39] sm:$0xff] %v3983_v28  ;;  %3409 = vmatmul.msk.f32.gmra.mxu2 %vm486_vm5, %v481_v26  ;;  %1439 = vmatmul.f32.gmra.mxu1 %v1336_v36  ;;  %v1144_v36 = vld [vmem:[#allocation4 + $0xa0] sm:$0xff] }
 0x1f3   : > { %926 = vmatmul.f32.gmra.mxu0 %v822_v41 }
 0x1f5   : > { %v648_v33 = vpop.f32.mrf.mxu2 }
 0x1f6   : > { %v3991_v35 = vadd.f32 %v3935_v5, %v648_v33  ;;  %v1145_v33 = vld [vmem:[#allocation4 + $0xa8] sm:$0xff] }
 0x1f7   : > { %v615_v37 = vpop.f32.mrf.mxu1  ;;  %v3999_v43 = vld [vmem:[#allocation2 + $0xc0] sm:$0xff]  ;;  %1166 = vmatpush.msra.mxu0 %v1145_v33 }
 0x1f8   : > { %769 = vst [vmem:[#allocation2 + $0xc9] sm:$0xff] %v3991_v35  ;;  %v3995_v38 = vadd.f32 %v3935_v5, %v615_v37  ;;  %962 = vmatmul.f32.gmra.mxu3 %v3999_v43 }
 0x1f9   : > { %v1337_v45 = vld [vmem:[#allocation2 + $0x32] sm:$0xff]  ;;  %v1338_v53 = vld [vmem:[#allocation2 + $0x3a] sm:$0xff]  ;;  %1167 = vmatpush.msra.mxu0 %v1144_v36 }
 0x1fa   : > { %758 = vst [vmem:[#allocation2 + $0x49] sm:$0xff] %v3995_v38  ;;  %1688 = vmatmul.f32.vlgmr.msra.gmra.mxu2 %v820_v24  ;;  %1442 = vmatmul.f32.gmra.mxu1 %v1337_v45  ;;  %v823_v49 = vld [vmem:[#allocation2 + $0x38] sm:$0xff] }
 0x1fb   : > { %929 = vmatmul.f32.gmra.mxu0 %v823_v49 }
 0x1fc   : > { %1168 = vmatpush.msra.mxu0 %v1143_v48  ;;  %v1916_v48 = vld [vmem:[#allocation4 + $0x210] sm:$0xff] }
 0x1fd   : > { %v651_v42 = vpop.f32.mrf.mxu2 }
 0x1fe   : > { %v4002_v44 = vadd.f32 %v3935_v5, %v651_v42 }
 0x1ff   : > { %v618_v46 = vpop.f32.mrf.mxu1  ;;  %v4010_v51 = vld [vmem:[#allocation2 + $0xc8] sm:$0xff] }
 0x200   : > { %770 = vst [vmem:[#allocation2 + $0xd9] sm:$0xff] %v4002_v44  ;;  %v4006_v47 = vadd.f32 %v3935_v5, %v618_v46  ;;  %965 = vmatmul.f32.gmra.mxu3 %v4010_v51 }
 0x201   : > { %v824_v59 = vld [vmem:[#allocation2 + $0x48] sm:$0xff] }
 0x202   : > { %759 = vst [vmem:[#allocation2 + $0x51] sm:$0xff] %v4006_v47  ;;  %1691 = vmatmul.f32.gmra.mxu2 %v821_v32  ;;  %1445 = vmatmul.f32.gmra.mxu1 %v1338_v53  ;;  %v1921_v32 = vld [vmem:[#allocation4 + $0x238] sm:$0xff]  ;;  %v1141_v53 = vld [vmem:[#allocation4 + $0x88] sm:$0xff] }
 0x203   : > { %932 = vmatmul.f32.gmra.mxu0 %v824_v59  ;;  %1938 = vmatpush.msra.mxu3 %v1921_v32 }
 0x205   : > { %v654_v50 = vpop.f32.mrf.mxu2 }
 0x206   : > { %v4013_v52 = vadd.f32 %v3935_v5, %v654_v50  ;;  %v1920_v50 = vld [vmem:[#allocation4 + $0x230] sm:$0xff] }
 0x207   : > { %v621_v54 = vpop.f32.mrf.mxu1  ;;  %v4021_v61 = vld [vmem:[#allocation2 + $0xd8] sm:$0xff]  ;;  %1939 = vmatpush.msra.mxu3 %v1920_v50  ;;  %v1076_v50 = vld [vmem:[#allocation2 + $0x9] sm:$0xff] }
 0x208   : > { %771 = vst [vmem:[#allocation2 + $0xe1] sm:$0xff] %v4013_v52  ;;  %v4017_v55 = vadd.f32 %v3935_v5, %v621_v54  ;;  %968 = vmatmul.f32.gmra.mxu3 %v4021_v61  ;;  %v1140_v54 = vld [vmem:[#allocation4 + $0x80] sm:$0xff] }
 0x209   : > { %v1339_v63 = vld [vmem:[#allocation2 + $0x4a] sm:$0xff]  ;;  %v1340_v9 = vld [vmem:[#allocation2 + $0x52] sm:$0xff]  ;;  %1940 = vmatpush.msra.mxu3 %v1919_v2 }
 0x20a   : > { %760 = vst [vmem:[#allocation2 + $0x61] sm:$0xff] %v4017_v55  ;;  %1694 = vmatmul.f32.gmra.mxu2 %v822_v41  ;;  %1448 = vmatmul.f32.gmra.mxu1 %v1339_v63  ;;  %v825_v4 = vld [vmem:[#allocation2 + $0x50] sm:$0xff] }
 0x20b   : > { %935 = vmatmul.f32.gmra.mxu0 %v825_v4  ;;  %1941 = vmatpush.msra.mxu3 %v1918_v13  ;;  %v2446_v13 = vld [vmem:[#allocation4 + $0x378] sm:$0xff] }
 0x20c   : > { %2447 = vmatpush.msrb.mxu1 %v2446_v13  ;;  %v2186_v13 = vld [vmem:[#allocation4 + $0x2f0] sm:$0xff] }
 0x20d   : > { %v657_v60 = vpop.f32.mrf.mxu2 }
 0x20e   : > { %v4024_v62 = vadd.f32 %v3935_v5, %v657_v60 }
 0x20f   : > { %v624_v0 = vpop.f32.mrf.mxu1  ;;  %v4032_v7 = vld [vmem:[#allocation2 + $0xe0] sm:$0xff] }
 0x210   : > { %772 = vst [vmem:[#allocation2 + $0xf1] sm:$0xff] %v4024_v62  ;;  %v4028_v1 = vadd.f32 %v3935_v5, %v624_v0  ;;  %971 = vmatmul.f32.gmra.mxu3 %v4032_v7 }
 0x211   : > { %v826_v19 = vld [vmem:[#allocation2 + $0x60] sm:$0xff] }
 0x212   : > { %761 = vst [vmem:[#allocation2 + $0x69] sm:$0xff] %v4028_v1  ;;  %1697 = vmatmul.f32.gmra.mxu2 %v823_v49  ;;  %1451 = vmatmul.f32.gmra.mxu1 %v1340_v9  ;;  %v1142_v49 = vld [vmem:[#allocation4 + $0x90] sm:$0xff] }
 0x213   : > { %938 = vmatmul.f32.gmra.mxu0 %v826_v19 }
 0x214   : > { %1169 = vmatpush.msra.mxu0 %v1142_v49  ;;  %v1347_v49 = vld [vmem:[#allocation2 + $0xaa] sm:$0xff] }
 0x215   : > { %v660_v6 = vpop.f32.mrf.mxu2 }
 0x216   : > { %v4035_v8 = vadd.f32 %v3935_v5, %v660_v6  ;;  %1170 = vmatpush.msra.mxu0 %v1141_v53 }
 0x217   : > { %v627_v10 = vpop.f32.mrf.mxu1  ;;  %v4043_v22 = vld [vmem:[#allocation2 + $0xf0] sm:$0xff] }
 0x218   : > { %773 = vst [vmem:[#allocation2 + $0xf9] sm:$0xff] %v4035_v8  ;;  %v4039_v11 = vadd.f32 %v3935_v5, %v627_v10  ;;  %974 = vmatmul.f32.gmra.mxu3 %v4043_v22  ;;  %1171 = vmatpush.msra.mxu0 %v1140_v54 }
 0x219   : > { %v1341_v25 = vld [vmem:[#allocation2 + $0x62] sm:$0xff]  ;;  %v1342_v42 = vld [vmem:[#allocation2 + $0x6a] sm:$0xff] }
 0x21a   : > { %762 = vst [vmem:[#allocation2 + $0x79] sm:$0xff] %v4039_v11  ;;  %1700 = vmatmul.f32.gmra.mxu2 %v824_v59  ;;  %1454 = vmatmul.f32.gmra.mxu1 %v1341_v25  ;;  %v827_v37 = vld [vmem:[#allocation2 + $0x68] sm:$0xff] }
 0x21b   : > { %941 = vmatmul.f32.gmra.mxu0 %v827_v37 }
 0x21d   : > { %v663_v21 = vpop.f32.mrf.mxu2 }
 0x21e   : > { %v4046_v24 = vadd.f32 %v3935_v5, %v663_v21 }
 0x21f   : > { %v630_v26 = vpop.f32.mrf.mxu1  ;;  %v4054_v40 = vld [vmem:[#allocation2 + $0xf8] sm:$0xff] }
 0x220   : > { %774 = vst [vmem:[#allocation2 + $0x109] sm:$0xff] %v4046_v24  ;;  %v4050_v29 = vadd.f32 %v3935_v5, %v630_v26  ;;  %977 = vmatmul.f32.gmra.mxu3 %v4054_v40  ;;  %v1917_v26 = vld [vmem:[#allocation4 + $0x218] sm:$0xff] }
 0x221   : > { %v828_v56 = vld [vmem:[#allocation2 + $0x78] sm:$0xff]  ;;  %1942 = vmatpush.msra.mxu3 %v1917_v26 }
 0x222   : > { %763 = vst [vmem:[#allocation2 + $0x81] sm:$0xff] %v4050_v29  ;;  %1703 = vmatmul.f32.gmra.mxu2 %v825_v4  ;;  %1457 = vmatmul.f32.gmra.mxu1 %v1342_v42 }
 0x223   : > { %944 = vmatmul.f32.gmra.mxu0 %v828_v56  ;;  %1943 = vmatpush.msra.mxu3 %v1916_v48 }
 0x225   : > { %v666_v39 = vpop.f32.mrf.mxu2 }
 0x226   : > { %v4057_v41 = vadd.f32 %v3935_v5, %v666_v39 }
 0x227   : > { %v633_v45 = vpop.f32.mrf.mxu1  ;;  %v4065_v58 = vld [vmem:[#allocation2 + $0x108] sm:$0xff] }
 0x228   : > { %775 = vst [vmem:[#allocation2 + $0x111] sm:$0xff] %v4057_v41  ;;  %v4061_v46 = vadd.f32 %v3935_v5, %v633_v45  ;;  %980 = vmatmul.f32.gmra.mxu3 %v4065_v58 }
 0x229   : > { %v1343_v60 = vld [vmem:[#allocation2 + $0x7a] sm:$0xff]  ;;  %v1344_v10 = vld [vmem:[#allocation2 + $0x82] sm:$0xff] }
 0x22a   : > { %764 = vst [vmem:[#allocation2 + $0x91] sm:$0xff] %v4061_v46  ;;  %1706 = vmatmul.f32.gmra.mxu2 %v826_v19  ;;  %1460 = vmatmul.f32.gmra.mxu1 %v1343_v60  ;;  %v829_v3 = vld [vmem:[#allocation2 + $0x80] sm:$0xff]  ;;  %v4110_v60 = vpop.f32.mrf.mxu0 }
 0x22b   : > { %947 = vmatmul.f32.gmra.mxu0 %v829_v3  ;;  %5103 = vst [vmem:[#allocation10_spill] sm:$0xff] %v4110_v60 }
 0x22d   : > { %v669_v57 = vpop.f32.mrf.mxu2 }
 0x22e   : > { %v4068_v59 = vadd.f32 %v3935_v5, %v669_v57  ;;  %v1915_v57 = vld [vmem:[#allocation4 + $0x208] sm:$0xff] }
 0x22f   : > { %v636_v63 = vpop.f32.mrf.mxu1  ;;  %v4076_v6 = vld [vmem:[#allocation2 + $0x110] sm:$0xff]  ;;  %1944 = vmatpush.msra.mxu3 %v1915_v57 }
 0x230   : > { %776 = vst [vmem:[#allocation2 + $0x121] sm:$0xff] %v4068_v59  ;;  %v4072_v0 = vadd.f32 %v3935_v5, %v636_v63  ;;  %983 = vmatmul.f32.gmra.mxu3 %v4076_v6  ;;  %v1348_v63 = vld [vmem:[#allocation2 + $0xb2] sm:$0xff] }
 0x231   : > { %v830_v15 = vld [vmem:[#allocation2 + $0x90] sm:$0xff] }
 0x232   : > { %765 = vst [vmem:[#allocation2 + $0x99] sm:$0xff] %v4072_v0  ;;  %1709 = vmatmul.f32.gmra.mxu2 %v827_v37  ;;  %1463 = vmatmul.f32.gmra.mxu1 %v1344_v10  ;;  %v1075_v37 = vld [vmem:[#allocation2 + $0x1] sm:$0xff]  ;;  %v4125_v26 = vpop.f32.mrf.mxu0 }
 0x233   : > { %950 = vmatmul.f32.gmra.mxu0 %v830_v15 }
 0x235   : > { %v672_v4 = vpop.f32.mrf.mxu2 }
 0x236   : > { %v4079_v9 = vadd.f32 %v3935_v5, %v672_v4 }
 0x237   : > { %v4083_v19 = vld [vmem:[#allocation2 + $0x120] sm:$0xff]  ;;  %v4114_v2 = vpop.f32.mrf.mxu1 }
 0x238   : > { %777 = vst [vmem:[#allocation2 + $0x129] sm:$0xff] %v4079_v9  ;;  %986 = vmatmul.f32.gmra.mxu3 %v4083_v19 }
 0x239   : > { %v1345_v25 = vld [vmem:[#allocation2 + $0x92] sm:$0xff]  ;;  %v1346_v36 = vld [vmem:[#allocation2 + $0x9a] sm:$0xff]  ;;  %5104 = vst [vmem:[#allocation11_spill] sm:$0xff] %v4114_v2 }
 0x23a   : > { %1712 = vmatmul.f32.gmra.mxu2 %v828_v56  ;;  %1466 = vmatmul.f32.gmra.mxu1 %v1345_v25  ;;  %v831_v30 = vld [vmem:[#allocation2 + $0x98] sm:$0xff]  ;;  %v1349_v25 = vld [vmem:[#allocation2 + $0xc2] sm:$0xff]  ;;  %v2184_v2 = vld [vmem:[#allocation4 + $0x2e0] sm:$0xff] }
 0x23b   : > { %953 = vmatmul.f32.gmra.mxu0 %v831_v30 }
 0x23d   : > { %v675_v18 = vpop.f32.mrf.mxu2 }
 0x23e   : > { %v4086_v21 = vadd.f32 %v3935_v5, %v675_v18  ;;  %v1914_v18 = vld [vmem:[#allocation4 + $0x200] sm:$0xff] }
 0x23f   : > { %v4090_v32 = vld [vmem:[#allocation2 + $0x128] sm:$0xff]  ;;  %1945 = vmatpush.msra.mxu3 %v1914_v18 }
 0x240   : > { %778 = vst [vmem:[#allocation2 + $0x139] sm:$0xff] %v4086_v21  ;;  %989 = vmatmul.f32.gmra.mxu3 %v4090_v32 }
 0x242   : > { %1715 = vmatmul.f32.gmra.mxu2 %v829_v3  ;;  %1469 = vmatmul.f32.gmra.mxu1 %v1346_v36 }
 0x243   : > { %1172 = vmatmul.f32.vlgmr.msra.gmra.mxu0 %v1075_v37 }
 0x245   : > { %v678_v31 = vpop.f32.mrf.mxu2 }
 0x246   : > { %v4093_v33 = vadd.f32 %v3935_v5, %v678_v31 }
 0x247   : > { %v4097_v42 = vld [vmem:[#allocation2 + $0x138] sm:$0xff] }
 0x248   : > { %779 = vst [vmem:[#allocation2 + $0x141] sm:$0xff] %v4093_v33  ;;  %992 = vmatmul.f32.gmra.mxu3 %v4097_v42 }
 0x24a   : > { %1718 = vmatmul.f32.gmra.mxu2 %v830_v15  ;;  %1472 = vmatmul.f32.gmra.mxu1 %v1347_v49  ;;  %v2704_v15 = vld [vmem:[#allocation4 + $0x3f8] sm:$0xff] }
 0x24b   : > { %1175 = vmatmul.f32.gmra.mxu0 %v1076_v50  ;;  %2705 = vmatpush.msrb.mxu2 %v2704_v15 }
 0x24d   : > { %v681_v39 = vpop.f32.mrf.mxu2 }
 0x24e   : > { %v4100_v45 = vadd.f32 %v3935_v5, %v681_v39  ;;  %v4136_v39 = vld [vmem:[#allocation4 + $0x478] sm:$0xff] }
 0x24f   : > { %v4104_v54 = vld [vmem:[#allocation2 + $0x140] sm:$0xff]  ;;  %3435 = vmatpush.msrb.mxu3 %v4136_v39 }
 0x250   : > { %780 = vst [vmem:[#allocation2 + $0x151] sm:$0xff] %v4100_v45  ;;  %995 = vmatmul.f32.gmra.mxu3 %v4104_v54 }
 0x252   : > { %1721 = vmatmul.f32.gmra.mxu2 %v831_v30  ;;  %1475 = vmatmul.f32.gmra.mxu1 %v1348_v63  ;;  %v4127_v30 = vpop.f32.mrf.mxu1  ;;  %v2445_v63 = vld [vmem:[#allocation4 + $0x370] sm:$0xff] }
 0x253   : > { %1178 = vmatmul.f32.gmra.mxu0 %v3947_v12  ;;  %2448 = vmatpush.msrb.mxu1 %v2445_v63 }
 0x255   : > { %v684_v53 = vpop.f32.mrf.mxu2 }
 0x256   : > { %v4107_v56 = vadd.f32 %v3935_v5, %v684_v53 }
 0x257   : > { %v4116_v4 = vld [vmem:[#allocation2 + $0x150] sm:$0xff] }
 0x258   : > { %781 = vst [vmem:[#allocation2 + $0x159] sm:$0xff] %v4107_v56  ;;  %998 = vmatmul.f32.gmra.mxu3 %v4116_v4 }
 0x25a   : > { %1724 = vmatmul.f32.gmra.mxu2 %v3979_v27  ;;  %v2187_v27 = vld [vmem:[#allocation4 + $0x2f8] sm:$0xff]  ;;  %1478 = vmatmul.f32.gmra.mxu1 %v1349_v25 }
 0x25b   : > { %2188 = vmatpush.msrb.mxu0 %v2187_v27 }
 0x25c   : > { %1181 = vmatmul.f32.gmra.mxu0 %v3955_v16 }
 0x25d   : > { %v687_v3 = vpop.f32.mrf.mxu2  ;;  %2189 = vmatpush.msrb.mxu0 %v2186_v13  ;;  %v2444_v13 = vld [vmem:[#allocation4 + $0x368] sm:$0xff] }
 0x25e   : > { %v4119_v10 = vadd.f32 %v3935_v5, %v687_v3  ;;  %v2703_v3 = vld [vmem:[#allocation4 + $0x3f0] sm:$0xff]  ;;  %2449 = vmatpush.msrb.mxu1 %v2444_v13 }
 0x25f   : > { %v4129_v36 = vld [vmem:[#allocation2 + $0x158] sm:$0xff]  ;;  %v4141_v48 = vpop.f32.mrf.mxu0  ;;  %2706 = vmatpush.msrb.mxu2 %v2703_v3 }
 0x260   : > { %782 = vst [vmem:[#allocation2 + $0x169] sm:$0xff] %v4119_v10  ;;  %1001 = vmatmul.f32.gmra.mxu3 %v4129_v36 }
 0x262   : > { %1727 = vmatmul.f32.gmra.mxu2 %v3988_v34  ;;  %v1350_v34 = vld [vmem:[#allocation2 + $0xca] sm:$0xff] }
 0x263   : > { %1481 = vmatmul.f32.gmra.mxu1 %v1350_v34 }
 0x264   : > { %1184 = vmatmul.f32.gmra.mxu0 %v3966_v20 }
 0x265   : > { %v690_v31 = vpop.f32.mrf.mxu2 }
 0x266   : > { %v4132_v37 = vadd.f32 %v3935_v5, %v690_v31 }
 0x267   : > { %v4143_v50 = vld [vmem:[#allocation2 + $0x168] sm:$0xff]  ;;  %v4146_v57 = vpop.f32.mrf.mxu1 }
 0x268   : > { %783 = vst [vmem:[#allocation2 + $0x171] sm:$0xff] %v4132_v37  ;;  %1004 = vmatmul.f32.gmra.mxu3 %v4143_v50  ;;  %v4153_v18 = vpop.f32.mrf.mxu0 }
 0x26a   : > { %1730 = vmatmul.f32.gmra.mxu2 %v3999_v43  ;;  %v1351_v43 = vld [vmem:[#allocation2 + $0xda] sm:$0xff] }
 0x26b   : > { %1484 = vmatmul.f32.gmra.mxu1 %v1351_v43  ;;  %v4151_v15 = vpop.f32.mrf.mxu3  ;;  %v2702_v43 = vld [vmem:[#allocation4 + $0x3e8] sm:$0xff] }
 0x26c   : > { %5105 = vst [vmem:[#allocation12_spill] sm:$0xff] %v4151_v15  ;;  %1187 = vmatmul.f32.gmra.mxu0 %v3983_v28  ;;  %2707 = vmatpush.msrb.mxu2 %v2702_v43 }
 0x26d   : > { %v693_v49 = vpop.f32.mrf.mxu2 }
 0x26e   : > { %v694_v53 = vadd.f32 %v3935_v5, %v693_v49  ;;  %v4161_v49 = vld [vmem:[#allocation4 + $0x470] sm:$0xff] }
 0x26f   : > { %v4155_v27 = vld [vmem:[#allocation2 + $0x170] sm:$0xff]  ;;  %v4158_v34 = vpop.f32.mrf.mxu1  ;;  %3436 = vmatpush.msrb.mxu3 %v4161_v49 }
 0x270   : > { %784 = vst [vmem:[#allocation2 + $0x181] sm:$0xff] %v694_v53  ;;  %1007 = vmatmul.f32.gmra.mxu3 %v4155_v27  ;;  %v4168_v63 = vpop.f32.mrf.mxu0 }
 0x272   : > { %1733 = vmatmul.f32.gmra.mxu2 %v4010_v51  ;;  %v1352_v51 = vld [vmem:[#allocation2 + $0xe2] sm:$0xff] }
 0x273   : > { %1487 = vmatmul.f32.gmra.mxu1 %v1352_v51  ;;  %v4166_v53 = vpop.f32.mrf.mxu3 }
 0x274   : > { %5106 = vst [vmem:[#allocation13_spill] sm:$0xff] %v4166_v53  ;;  %1190 = vmatmul.f32.gmra.mxu0 %v3995_v38 }
 0x275   : > { %v696_v25 = vpop.f32.mrf.mxu2 }
 0x276   : > { %v697_v31 = vadd.f32 %v3935_v5, %v696_v25  ;;  %v2185_v25 = vld [vmem:[#allocation4 + $0x2e8] sm:$0xff] }
 0x277   : > { %v4172_v3 = vpop.f32.mrf.mxu1  ;;  %2190 = vmatpush.msrb.mxu0 %v2185_v25 }
 0x278   : > { %785 = vst [vmem:[#allocation2 + $0x189] sm:$0xff] %v697_v31  ;;  %1946 = vmatmul.f32.vlgmr.msra.gmra.mxu3 %v3947_v12  ;;  %v1353_v31 = vld [vmem:[#allocation2 + $0xf2] sm:$0xff]  ;;  %v4179_v51 = vpop.f32.mrf.mxu0  ;;  %v1354_v12 = vld [vmem:[#allocation2 + $0xfa] sm:$0xff] }
 0x279   : > { %2191 = vmatpush.msrb.mxu0 %v2184_v2 }
 0x27a   : > { %1736 = vmatmul.f32.gmra.mxu2 %v4021_v61 }
 0x27b   : > { %1490 = vmatmul.f32.gmra.mxu1 %v1353_v31  ;;  %v4177_v61 = vpop.f32.mrf.mxu3  ;;  %v2443_v31 = vld [vmem:[#allocation4 + $0x360] sm:$0xff] }
 0x27c   : > { %5108 = vst [vmem:[#allocation15_spill] sm:$0xff] %v4177_v61  ;;  %1193 = vmatmul.f32.gmra.mxu0 %v4006_v47  ;;  %v2701_v61 = vld [vmem:[#allocation4 + $0x3e0] sm:$0xff]  ;;  %2450 = vmatpush.msrb.mxu1 %v2443_v31 }
 0x27d   : > { %v4170_v5 = vpop.f32.mrf.mxu2  ;;  %2708 = vmatpush.msrb.mxu2 %v2701_v61 }
 0x27e   : > { %5107 = vst [vmem:[#allocation14_spill] sm:$0xff] %v4170_v5  ;;  %v4186_v5 = vld [vmem:[#allocation4 + $0x468] sm:$0xff] }
 0x27f   : > { %v4183_v15 = vpop.f32.mrf.mxu1  ;;  %3437 = vmatpush.msrb.mxu3 %v4186_v5 }
 0x280   : > { %1949 = vmatmul.f32.gmra.mxu3 %v3955_v16  ;;  %v4193_v13 = vpop.f32.mrf.mxu0  ;;  %v1355_v16 = vld [vmem:[#allocation2 + $0x10a] sm:$0xff] }
 0x282   : > { %1739 = vmatmul.f32.gmra.mxu2 %v4032_v7 }
 0x283   : > { %1493 = vmatmul.f32.gmra.mxu1 %v1354_v12  ;;  %v4191_v7 = vpop.f32.mrf.mxu3 }
 0x284   : > { %5109 = vst [vmem:[#allocation16_spill] sm:$0xff] %v4191_v7  ;;  %1196 = vmatmul.f32.gmra.mxu0 %v4017_v55 }
 0x285   : > { %v4181_v53 = vpop.f32.mrf.mxu2 }
 0x287   : > { %v4197_v25 = vpop.f32.mrf.mxu1 }
 0x288   : > { %5110 = vst [vmem:[#allocation17_spill] sm:$0xff] %v4197_v25  ;;  %1952 = vmatmul.f32.gmra.mxu3 %v3966_v20  ;;  %v4204_v12 = vpop.f32.mrf.mxu0  ;;  %v4211_v25 = vld [vmem:[#allocation4 + $0x460] sm:$0xff] }
 0x289   : > { %v1356_v20 = vld [vmem:[#allocation2 + $0x112] sm:$0xff]  ;;  %3438 = vmatpush.msrb.mxu3 %v4211_v25 }
 0x28a   : > { %1742 = vmatmul.f32.gmra.mxu2 %v4043_v22 }
 0x28b   : > { %1496 = vmatmul.f32.gmra.mxu1 %v1355_v16  ;;  %v4202_v22 = vpop.f32.mrf.mxu3  ;;  %v2442_v16 = vld [vmem:[#allocation4 + $0x358] sm:$0xff] }
 0x28c   : > { %5111 = vst [vmem:[#allocation18_spill] sm:$0xff] %v4202_v22  ;;  %1199 = vmatmul.f32.gmra.mxu0 %v4028_v1  ;;  %v2700_v22 = vld [vmem:[#allocation4 + $0x3d8] sm:$0xff]  ;;  %2451 = vmatpush.msrb.mxu1 %v2442_v16 }
 0x28d   : > { %v4195_v43 = vpop.f32.mrf.mxu2  ;;  %2709 = vmatpush.msrb.mxu2 %v2700_v22 }
 0x28f   : > { %v4208_v60 = vpop.f32.mrf.mxu1 }
 0x290   : > { %5112 = vst [vmem:[#allocation19_spill] sm:$0xff] %v4208_v60  ;;  %1955 = vmatmul.f32.gmra.mxu3 %v3983_v28  ;;  %v4218_v2 = vpop.f32.mrf.mxu0  ;;  %v2183_v60 = vld [vmem:[#allocation4 + $0x2d8] sm:$0xff] }
 0x291   : > { %5114 = vst [vmem:[#allocation21_spill] sm:$0xff] %v4218_v2  ;;  %v1357_v28 = vld [vmem:[#allocation2 + $0x122] sm:$0xff]  ;;  %2192 = vmatpush.msrb.mxu0 %v2183_v60 }
 0x292   : > { %1745 = vmatmul.f32.gmra.mxu2 %v4054_v40  ;;  %v4236_v2 = vld [vmem:[#allocation4 + $0x458] sm:$0xff] }
 0x293   : > { %1499 = vmatmul.f32.gmra.mxu1 %v1356_v20  ;;  %v4216_v40 = vpop.f32.mrf.mxu3  ;;  %3439 = vmatpush.msrb.mxu3 %v4236_v2 }
 0x294   : > { %5113 = vst [vmem:[#allocation20_spill] sm:$0xff] %v4216_v40  ;;  %1202 = vmatmul.f32.gmra.mxu0 %v4039_v11 }
 0x295   : > { %v4206_v7 = vpop.f32.mrf.mxu2 }
 0x297   : > { %v4222_v31 = vpop.f32.mrf.mxu1 }
 0x298   : > { %5115 = vst [vmem:[#allocation22_spill] sm:$0xff] %v4222_v31  ;;  %1958 = vmatmul.f32.gmra.mxu3 %v3995_v38  ;;  %v4229_v20 = vpop.f32.mrf.mxu0  ;;  %v1358_v38 = vld [vmem:[#allocation2 + $0x12a] sm:$0xff] }
 0x299   : > { %5117 = vst [vmem:[#allocation24_spill] sm:$0xff] %v4229_v20 }
 0x29a   : > { %1748 = vmatmul.f32.gmra.mxu2 %v4065_v58 }
 0x29b   : > { %1502 = vmatmul.f32.gmra.mxu1 %v1357_v28  ;;  %v4227_v58 = vpop.f32.mrf.mxu3  ;;  %v2441_v28 = vld [vmem:[#allocation4 + $0x350] sm:$0xff] }
 0x29c   : > { %5116 = vst [vmem:[#allocation23_spill] sm:$0xff] %v4227_v58  ;;  %1205 = vmatmul.f32.gmra.mxu0 %v4050_v29  ;;  %v2699_v58 = vld [vmem:[#allocation4 + $0x3d0] sm:$0xff]  ;;  %2452 = vmatpush.msrb.mxu1 %v2441_v28 }
 0x29d   : > { %v4220_v61 = vpop.f32.mrf.mxu2  ;;  %2710 = vmatpush.msrb.mxu2 %v2699_v58  ;;  %v2437_v28 = vld [vmem:[#allocation4 + $0x330] sm:$0xff]  ;;  %v2436_v58 = vld [vmem:[#allocation4 + $0x328] sm:$0xff] }
 0x29f   : > { %v4233_v31 = vpop.f32.mrf.mxu1 }
 0x2a0   : > { %5118 = vst [vmem:[#allocation25_spill] sm:$0xff] %v4233_v31  ;;  %1961 = vmatmul.f32.gmra.mxu3 %v4006_v47  ;;  %v4243_v60 = vpop.f32.mrf.mxu0  ;;  %v2182_v31 = vld [vmem:[#allocation4 + $0x2d0] sm:$0xff] }
 0x2a1   : > { %5120 = vst [vmem:[#allocation27_spill] sm:$0xff] %v4243_v60  ;;  %v1359_v47 = vld [vmem:[#allocation2 + $0x13a] sm:$0xff]  ;;  %2193 = vmatpush.msrb.mxu0 %v2182_v31  ;;  %v2439_v60 = vld [vmem:[#allocation4 + $0x340] sm:$0xff] }
 0x2a2   : > { %1751 = vmatmul.f32.gmra.mxu2 %v4076_v6 }
 0x2a3   : > { %1505 = vmatmul.f32.gmra.mxu1 %v1358_v38  ;;  %v4241_v6 = vpop.f32.mrf.mxu3  ;;  %v2440_v38 = vld [vmem:[#allocation4 + $0x348] sm:$0xff] }
 0x2a4   : > { %5119 = vst [vmem:[#allocation26_spill] sm:$0xff] %v4241_v6  ;;  %1208 = vmatmul.f32.gmra.mxu0 %v4061_v46  ;;  %2453 = vmatpush.msrb.mxu1 %v2440_v38  ;;  %v2435_v38 = vld [vmem:[#allocation4 + $0x320] sm:$0xff] }
 0x2a5   : > { %v4231_v40 = vpop.f32.mrf.mxu2 }
 0x2a6   : > { %2454 = vmatpush.msrb.mxu1 %v2439_v60 }
 0x2a7   : > { %v4247_v16 = vpop.f32.mrf.mxu1 }
 0x2a8   : > { %5121 = vst [vmem:[#allocation28_spill] sm:$0xff] %v4247_v16  ;;  %1964 = vmatmul.f32.gmra.mxu3 %v4017_v55  ;;  %v4254_v6 = vpop.f32.mrf.mxu0  ;;  %v2438_v55 = vld [vmem:[#allocation4 + $0x338] sm:$0xff] }
 0x2a9   : > { %5123 = vst [vmem:[#allocation30_spill] sm:$0xff] %v4254_v6  ;;  %2455 = vmatpush.msrb.mxu1 %v2438_v55  ;;  %v2434_v55 = vld [vmem:[#allocation4 + $0x318] sm:$0xff]  ;;  %v2380_v6 = vld [vmem:[#allocation2 + $0xd8] sm:$0xff] }
 0x2aa   : > { %1754 = vmatmul.f32.gmra.mxu2 %v4083_v19 }
 0x2ab   : > { %1508 = vmatmul.f32.gmra.mxu1 %v1359_v47  ;;  %v4252_v19 = vpop.f32.mrf.mxu3  ;;  %v4261_v47 = vld [vmem:[#allocation4 + $0x450] sm:$0xff] }
 0x2ac   : > { %5122 = vst [vmem:[#allocation29_spill] sm:$0xff] %v4252_v19  ;;  %1211 = vmatmul.f32.gmra.mxu0 %v4072_v0  ;;  %2456 = vmatpush.msrb.mxu1 %v2437_v28  ;;  %v1361_v28 = vld [vmem:[#allocation2 + $0x152] sm:$0xff] }
 0x2ad   : > { %v4245_v22 = vpop.f32.mrf.mxu2  ;;  %3440 = vmatpush.msrb.mxu3 %v4261_v47 }
 0x2ae   : > { %2457 = vmatpush.msrb.mxu1 %v2436_v58 }
 0x2af   : > { %v4258_v20 = vpop.f32.mrf.mxu1 }
 0x2b0   : > { %5125 = vst [vmem:[#allocation32_spill] sm:$0xff] %v4258_v20  ;;  %1967 = vmatmul.f32.gmra.mxu3 %v4028_v1  ;;  %v4268_v60 = vpop.f32.mrf.mxu0  ;;  %2458 = vmatpush.msrb.mxu1 %v2435_v38  ;;  %v2432_v38 = vld [vmem:[#allocation4 + $0x308] sm:$0xff] }
 0x2b1   : > { %5127 = vst [vmem:[#allocation34_spill] sm:$0xff] %v4268_v60 }
 0x2b2   : > { %1757 = vmatmul.f32.gmra.mxu2 %v4090_v32  ;;  %v1360_v32 = vld [vmem:[#allocation2 + $0x142] sm:$0xff]  ;;  %2459 = vmatpush.msrb.mxu1 %v2434_v55  ;;  %v1362_v55 = vld [vmem:[#allocation2 + $0x15a] sm:$0xff] }
 0x2b3   : > { %1511 = vmatmul.f32.gmra.mxu1 %v1360_v32  ;;  %v4266_v31 = vpop.f32.mrf.mxu3  ;;  %v2698_v32 = vld [vmem:[#allocation4 + $0x3c8] sm:$0xff] }
 0x2b4   : > { %5126 = vst [vmem:[#allocation33_spill] sm:$0xff] %v4266_v31  ;;  %1214 = vmatmul.f32.gmra.mxu0 %v3951_v14  ;;  %v2433_v31 = vld [vmem:[#allocation4 + $0x310] sm:$0xff]  ;;  %2711 = vmatpush.msrb.mxu2 %v2698_v32 }
 0x2b5   : > { %v4256_v16 = vpop.f32.mrf.mxu2  ;;  %2460 = vmatpush.msrb.mxu1 %v2433_v31 }
 0x2b6   : > { %5124 = vst [vmem:[#allocation31_spill] sm:$0xff] %v4256_v16 }
 0x2b7   : > { %v4270_v19 = vpop.f32.mrf.mxu1  ;;  %2461 = vmatpush.msrb.mxu1 %v2432_v38  ;;  %v2693_v38 = vld [vmem:[#allocation4 + $0x3a0] sm:$0xff] }
 0x2b8   : > { %5128 = vst [vmem:[#allocation35_spill] sm:$0xff] %v4270_v19  ;;  %1970 = vmatmul.f32.gmra.mxu3 %v4039_v11  ;;  %v4279_v14 = vpop.f32.mrf.mxu0  ;;  %v2431_v19 = vld [vmem:[#allocation4 + $0x300] sm:$0xff]  ;;  %v2956_v11 = vld [vmem:[#allocation4 + $0x448] sm:$0xff] }
 0x2b9   : > { %5131 = vst [vmem:[#allocation38_spill] sm:$0xff] %v4279_v14  ;;  %2462 = vmatpush.msrb.mxu1 %v2431_v19  ;;  %3441 = vmatpush.msrb.mxu3 %v2956_v11  ;;  %v2629_v14 = vld [vmem:[#allocation2 + $0x69] sm:$0xff] }
 0x2ba   : > { %1760 = vmatmul.f32.gmra.mxu2 %v4097_v42  ;;  %v2181_v42 = vld [vmem:[#allocation4 + $0x2c8] sm:$0xff] }
 0x2bb   : > { %1514 = vmatmul.f32.gmra.mxu1 %v1361_v28  ;;  %2194 = vmatpush.msrb.mxu0 %v2181_v42  ;;  %v4277_v58 = vpop.f32.mrf.mxu3  ;;  %v2955_v42 = vld [vmem:[#allocation4 + $0x440] sm:$0xff] }
 0x2bc   : > { %5130 = vst [vmem:[#allocation37_spill] sm:$0xff] %v4277_v58  ;;  %1217 = vmatmul.f32.gmra.mxu0 %v3959_v17  ;;  %2963 = vmatpush.msra.mxu1 %v4136_v39  ;;  %v2180_v39 = vld [vmem:[#allocation4 + $0x2c0] sm:$0xff] }
 0x2bd   : > { %v4273_v1 = vpop.f32.mrf.mxu2  ;;  %2195 = vmatpush.msrb.mxu0 %v2180_v39  ;;  %3442 = vmatpush.msrb.mxu3 %v2955_v42  ;;  %v2366_v39 = vld [vmem:[#allocation2 + $0x30] sm:$0xff] }
 0x2be   : > { %5129 = vst [vmem:[#allocation36_spill] sm:$0xff] %v4273_v1  ;;  %2964 = vmatpush.msra.mxu1 %v4161_v49  ;;  %v2385_v1 = vld [vmem:[#allocation2 + $0x110] sm:$0xff] }
 0x2bf   : > { %v4281_v60 = vpop.f32.mrf.mxu1 }
 0x2c0   : > { %5132 = vst [vmem:[#allocation39_spill] sm:$0xff] %v4281_v60  ;;  %1973 = vmatmul.f32.gmra.mxu3 %v4050_v29  ;;  %v4292_v32 = vpop.f32.mrf.mxu0  ;;  %2965 = vmatpush.msra.mxu1 %v4186_v5  ;;  %v2697_v29 = vld [vmem:[#allocation4 + $0x3c0] sm:$0xff] }
 0x2c1   : > { %5135 = vst [vmem:[#allocation42_spill] sm:$0xff] %v4292_v32  ;;  %2712 = vmatpush.msrb.mxu2 %v2697_v29  ;;  %v2691_v29 = vld [vmem:[#allocation4 + $0x390] sm:$0xff]  ;;  %v2950_v32 = vld [vmem:[#allocation4 + $0x418] sm:$0xff] }
 0x2c2   : > { %1763 = vmatmul.f32.gmra.mxu2 %v4104_v54  ;;  %2966 = vmatpush.msra.mxu1 %v4211_v25  ;;  %v2695_v25 = vld [vmem:[#allocation4 + $0x3b0] sm:$0xff] }
 0x2c3   : > { %1517 = vmatmul.f32.gmra.mxu1 %v1362_v55  ;;  %v4290_v31 = vpop.f32.mrf.mxu3  ;;  %v2179_v55 = vld [vmem:[#allocation4 + $0x2b8] sm:$0xff] }
 0x2c4   : > { %5134 = vst [vmem:[#allocation41_spill] sm:$0xff] %v4290_v31  ;;  %1220 = vmatmul.f32.gmra.mxu0 %v3974_v23  ;;  %2967 = vmatpush.msra.mxu1 %v4236_v2  ;;  %v2369_v31 = vld [vmem:[#allocation2 + $0x50] sm:$0xff] }
 0x2c5   : > { %v4286_v54 = vpop.f32.mrf.mxu2  ;;  %2196 = vmatpush.msrb.mxu0 %v2179_v55 }
 0x2c6   : > { %5133 = vst [vmem:[#allocation40_spill] sm:$0xff] %v4286_v54  ;;  %2968 = vmatpush.msra.mxu1 %v4261_v47  ;;  %v2694_v47 = vld [vmem:[#allocation4 + $0x3a8] sm:$0xff]  ;;  %v4541_v54 = vld [vmem:[#allocation2 + $0x181] sm:$0xff] }
 0x2c7   : > { %v4295_v17 = vpop.f32.mrf.mxu1 }
 0x2c8   : > { %5136 = vst [vmem:[#allocation43_spill] sm:$0xff] %v4295_v17  ;;  %1976 = vmatmul.f32.gmra.mxu3 %v4061_v46  ;;  %v4306_v19 = vpop.f32.mrf.mxu0  ;;  %2969 = vmatpush.msra.mxu1 %v2956_v11  ;;  %v2696_v46 = vld [vmem:[#allocation4 + $0x3b8] sm:$0xff]  ;;  %v2372_v17 = vld [vmem:[#allocation2 + $0x78] sm:$0xff] }
 0x2c9   : > { %2713 = vmatpush.msrb.mxu2 %v2696_v46  ;;  %v2690_v46 = vld [vmem:[#allocation4 + $0x388] sm:$0xff] }
 0x2ca   : > { %1766 = vmatmul.f32.gmra.mxu2 %v4116_v4  ;;  %v1363_v4 = vld [vmem:[#allocation2 + $0x16a] sm:$0xff]  ;;  %2970 = vmatpush.msra.mxu1 %v2955_v42 }
 0x2cb   : > { %1520 = vmatmul.f32.gmra.mxu1 %v1363_v4  ;;  %v4302_v49 = vpop.f32.mrf.mxu3  ;;  %2714 = vmatpush.msrb.mxu2 %v2695_v25  ;;  %v2689_v42 = vld [vmem:[#allocation4 + $0x380] sm:$0xff] }
 0x2cc   : > { %5137 = vst [vmem:[#allocation44_spill] sm:$0xff] %v4302_v49  ;;  %1223 = vmatmul.f32.gmra.mxu0 %v3991_v35  ;;  %v2953_v49 = vld [vmem:[#allocation4 + $0x430] sm:$0xff] }
 0x2cd   : > { %v4304_v5 = vpop.f32.mrf.mxu2  ;;  %2715 = vmatpush.msrb.mxu2 %v2694_v47 }
 0x2ce   : > { %5138 = vst [vmem:[#allocation45_spill] sm:$0xff] %v4304_v5  ;;  %v4446_v5 = vld [vmem:[#allocation2 + $0x121] sm:$0xff] }
 0x2cf   : > { %v4309_v23 = vpop.f32.mrf.mxu1  ;;  %2716 = vmatpush.msrb.mxu2 %v2693_v38  ;;  %v4338_v38 = vld [vmem:[#allocation2 + $0xb1] sm:$0xff] }
 0x2d0   : > { %5139 = vst [vmem:[#allocation46_spill] sm:$0xff] %v4309_v23  ;;  %1979 = vmatmul.f32.gmra.mxu3 %v4072_v0  ;;  %v4316_v28 = vpop.f32.mrf.mxu0  ;;  %v4322_v0 = vld [vmem:[#allocation2 + $0xa9] sm:$0xff] }
 0x2d1   : > { %v2371_v23 = vld [vmem:[#allocation2 + $0x68] sm:$0xff] }
 0x2d2   : > { %1769 = vmatmul.f32.gmra.mxu2 %v4129_v36  ;;  %v1364_v36 = vld [vmem:[#allocation2 + $0x172] sm:$0xff] }
 0x2d3   : > { %1523 = vmatmul.f32.gmra.mxu1 %v1364_v36  ;;  %v4314_v2 = vpop.f32.mrf.mxu3  ;;  %v4333_v36 = vld [vmem:[#allocation2 + $0x180] sm:$0xff] }
 0x2d4   : > { %5140 = vst [vmem:[#allocation47_spill] sm:$0xff] %v4314_v2  ;;  %1226 = vmatmul.f32.gmra.mxu0 %v4002_v44 }
 0x2d5   : > { %v4318_v35 = vpop.f32.mrf.mxu2 }
 0x2d6   : > { %5141 = vst [vmem:[#allocation48_spill] sm:$0xff] %v4318_v35  ;;  %v2375_v35 = vld [vmem:[#allocation2 + $0x98] sm:$0xff] }
 0x2d7   : > { %v4320_v11 = vpop.f32.mrf.mxu1 }
 0x2d8   : > { %5142 = vst [vmem:[#allocation49_spill] sm:$0xff] %v4320_v11  ;;  %1982 = vmatmul.f32.gmra.mxu3 %v4322_v0  ;;  %v2625_v11 = vld [vmem:[#allocation2 + $0x39] sm:$0xff] }
 0x2d9   : > { %v4329_v25 = vpop.f32.mrf.mxu0 }
 0x2da   : > { %1772 = vmatmul.f32.gmra.mxu2 %v4143_v50  ;;  %v2692_v50 = vld [vmem:[#allocation4 + $0x398] sm:$0xff] }
 0x2db   : > { %2717 = vmatpush.msrb.mxu2 %v2692_v50  ;;  %2463 = vmatmul.f32.vlgmr.msrb.gmra.mxu1 %v2366_v39  ;;  %v4327_v4 = vpop.f32.mrf.mxu3  ;;  %v2367_v50 = vld [vmem:[#allocation2 + $0x38] sm:$0xff] }
 0x2dc   : > { %5143 = vst [vmem:[#allocation50_spill] sm:$0xff] %v4327_v4  ;;  %1229 = vmatmul.f32.gmra.mxu0 %v4013_v52  ;;  %v4349_v52 = vld [vmem:[#allocation2 + $0xc1] sm:$0xff] }
 0x2dd   : > { %2718 = vmatpush.msrb.mxu2 %v2691_v29  ;;  %v4336_v47 = vpop.f32.mrf.mxu2  ;;  %v4352_v4 = vld [vmem:[#allocation2 + $0x188] sm:$0xff] }
 0x2de   : > { %5145 = vst [vmem:[#allocation52_spill] sm:$0xff] %v4336_v47  ;;  %v2374_v47 = vld [vmem:[#allocation2 + $0x90] sm:$0xff] }
 0x2df   : > { %2719 = vmatpush.msrb.mxu2 %v2690_v46  ;;  %v2178_v46 = vld [vmem:[#allocation4 + $0x2b0] sm:$0xff] }
 0x2e0   : > { %v4331_v44 = vpop.f32.mrf.mxu1  ;;  %1985 = vmatmul.f32.gmra.mxu3 %v4338_v38  ;;  %2197 = vmatpush.msrb.mxu0 %v2178_v46  ;;  %v2624_v46 = vld [vmem:[#allocation2 + $0x31] sm:$0xff] }
 0x2e1   : > { %5144 = vst [vmem:[#allocation51_spill] sm:$0xff] %v4331_v44  ;;  %2720 = vmatpush.msrb.mxu2 %v2689_v42  ;;  %v4344_v29 = vpop.f32.mrf.mxu0  ;;  %v2368_v42 = vld [vmem:[#allocation2 + $0x48] sm:$0xff]  ;;  %v2370_v44 = vld [vmem:[#allocation2 + $0x60] sm:$0xff] }
 0x2e2   : > { %1775 = vmatmul.f32.gmra.mxu2 %v4155_v27  ;;  %v2954_v27 = vld [vmem:[#allocation4 + $0x438] sm:$0xff] }
 0x2e3   : > { %2971 = vmatpush.msra.mxu1 %v2954_v27  ;;  %3443 = vmatpush.msrb.mxu3 %v2954_v27  ;;  %v4342_v55 = vpop.f32.mrf.mxu3 }
 0x2e4   : > { %2466 = vmatmul.f32.gmra.mxu1 %v2367_v50  ;;  %5146 = vst [vmem:[#allocation53_spill] sm:$0xff] %v4342_v55  ;;  %1232 = vmatmul.f32.gmra.mxu0 %v4024_v62  ;;  %v4364_v62 = vld [vmem:[#allocation2 + $0xc9] sm:$0xff] }
 0x2e5   : > { %v4354_v50 = vpop.f32.mrf.mxu2  ;;  %2972 = vmatpush.msra.mxu1 %v2953_v49  ;;  %3444 = vmatpush.msrb.mxu3 %v2953_v49 }
 0x2e6   : > { %5148 = vst [vmem:[#allocation55_spill] sm:$0xff] %v4354_v50  ;;  %v2627_v50 = vld [vmem:[#allocation2 + $0x51] sm:$0xff] }
 0x2e8   : > { %v4346_v39 = vpop.f32.mrf.mxu1  ;;  %1988 = vmatmul.f32.gmra.mxu3 %v4349_v52 }
 0x2e9   : > { %5147 = vst [vmem:[#allocation54_spill] sm:$0xff] %v4346_v39  ;;  %v4359_v55 = vpop.f32.mrf.mxu0  ;;  %v2177_v39 = vld [vmem:[#allocation4 + $0x2a8] sm:$0xff] }
 0x2ea   : > { %1778 = vmatmul.f32.gmra.mxu2 %v4333_v36  ;;  %2198 = vmatpush.msrb.mxu0 %v2177_v39 }
 0x2eb   : > { %v4357_v27 = vpop.f32.mrf.mxu3 }
 0x2ec   : > { %2469 = vmatmul.f32.gmra.mxu1 %v2368_v42  ;;  %5149 = vst [vmem:[#allocation56_spill] sm:$0xff] %v4357_v27  ;;  %1235 = vmatmul.f32.gmra.mxu0 %v4035_v8  ;;  %v4376_v8 = vld [vmem:[#allocation2 + $0xd9] sm:$0xff] }
 0x2ed   : > { %v4367_v42 = vpop.f32.mrf.mxu2 }
 0x2ee   : > { %5151 = vst [vmem:[#allocation58_spill] sm:$0xff] %v4367_v42  ;;  %v2626_v42 = vld [vmem:[#allocation2 + $0x49] sm:$0xff] }
 0x2f0   : > { %v4361_v2 = vpop.f32.mrf.mxu1  ;;  %1991 = vmatmul.f32.gmra.mxu3 %v4364_v62 }
 0x2f1   : > { %5150 = vst [vmem:[#allocation57_spill] sm:$0xff] %v4361_v2  ;;  %v4371_v58 = vpop.f32.mrf.mxu0 }
 0x2f2   : > { %1781 = vmatmul.f32.gmra.mxu2 %v4352_v4 }
 0x2f3   : > { %v4369_v27 = vpop.f32.mrf.mxu3 }
 0x2f4   : > { %2472 = vmatmul.f32.gmra.mxu1 %v2369_v31  ;;  %5152 = vst [vmem:[#allocation59_spill] sm:$0xff] %v4369_v27  ;;  %1238 = vmatmul.f32.gmra.mxu0 %v4046_v24  ;;  %v4388_v24 = vld [vmem:[#allocation2 + $0xe1] sm:$0xff] }
 0x2f8   : > { %v4373_v2 = vpop.f32.mrf.mxu1  ;;  %1994 = vmatmul.f32.gmra.mxu3 %v4376_v8 }
 0x2f9   : > { %5153 = vst [vmem:[#allocation60_spill] sm:$0xff] %v4373_v2  ;;  %v4381_v49 = vpop.f32.mrf.mxu0  ;;  %v2952_v2 = vld [vmem:[#allocation4 + $0x428] sm:$0xff] }
 0x2fa   : > { %2721 = vmatmul.f32.vlgmr.msrb.gmra.mxu2 %v2624_v46  ;;  %v4383_v46 = vpop.f32.mrf.mxu2  ;;  %2973 = vmatpush.msra.mxu1 %v2952_v2 }
 0x2fb   : > { %v4379_v31 = vpop.f32.mrf.mxu3  ;;  %5155 = vst [vmem:[#allocation62_spill] sm:$0xff] %v4383_v46  ;;  %3445 = vmatpush.msrb.mxu3 %v2952_v2  ;;  %v2176_v46 = vld [vmem:[#allocation4 + $0x2a0] sm:$0xff] }
 0x2fc   : > { %2475 = vmatmul.f32.gmra.mxu1 %v2370_v44  ;;  %5154 = vst [vmem:[#allocation61_spill] sm:$0xff] %v4379_v31  ;;  %1241 = vmatmul.f32.gmra.mxu0 %v4057_v41  ;;  %v4400_v41 = vld [vmem:[#allocation2 + $0xf1] sm:$0xff]  ;;  %v2628_v31 = vld [vmem:[#allocation2 + $0x61] sm:$0xff] }
 0x2fd   : > { %2199 = vmatpush.msrb.mxu0 %v2176_v46 }
 0x300   : > { %v4385_v27 = vpop.f32.mrf.mxu1  ;;  %1997 = vmatmul.f32.gmra.mxu3 %v4388_v24 }
 0x301   : > { %5156 = vst [vmem:[#allocation63_spill] sm:$0xff] %v4385_v27  ;;  %v4393_v44 = vpop.f32.mrf.mxu0 }
 0x302   : > { %2724 = vmatmul.f32.gmra.mxu2 %v2625_v11  ;;  %v4397_v27 = vpop.f32.mrf.mxu2 }
 0x303   : > { %v4391_v11 = vpop.f32.mrf.mxu3  ;;  %5158 = vst [vmem:[#allocation65_spill] sm:$0xff] %v4397_v27  ;;  %v2373_v27 = vld [vmem:[#allocation2 + $0x80] sm:$0xff] }
 0x304   : > { %2478 = vmatmul.f32.gmra.mxu1 %v2371_v23  ;;  %1244 = vmatmul.f32.gmra.mxu0 %v4068_v59  ;;  %v2951_v59 = vld [vmem:[#allocation4 + $0x420] sm:$0xff] }
 0x305   : > { %2974 = vmatpush.msra.mxu1 %v2951_v59  ;;  %3446 = vmatpush.msrb.mxu3 %v2951_v59 }
 0x307   : > { %3447 = vmatpush.msrb.mxu3 %v2950_v32  ;;  %2975 = vmatpush.msra.mxu1 %v2950_v32  ;;  %v2631_v32 = vld [vmem:[#allocation2 + $0x81] sm:$0xff] }
 0x308   : > { %v4395_v39 = vpop.f32.mrf.mxu1  ;;  %2000 = vmatmul.f32.gmra.mxu3 %v4400_v41 }
 0x309   : > { %5157 = vst [vmem:[#allocation64_spill] sm:$0xff] %v4395_v39  ;;  %v4405_v2 = vpop.f32.mrf.mxu0  ;;  %v4410_v39 = vld [vmem:[#allocation2 + $0xf9] sm:$0xff] }
 0x30a   : > { %2727 = vmatmul.f32.gmra.mxu2 %v2626_v42  ;;  %5159 = vst [vmem:[#allocation66_spill] sm:$0xff] %v4405_v2  ;;  %v4413_v60 = vpop.f32.mrf.mxu2  ;;  %v2386_v2 = vld [vmem:[#allocation2 + $0x120] sm:$0xff] }
 0x30b   : > { %v4403_v23 = vpop.f32.mrf.mxu3  ;;  %5161 = vst [vmem:[#allocation68_spill] sm:$0xff] %v4413_v60 }
 0x30c   : > { %2481 = vmatmul.f32.gmra.mxu1 %v2372_v17  ;;  %1247 = vmatmul.f32.gmra.mxu0 %v4079_v9  ;;  %v4422_v9 = vld [vmem:[#allocation2 + $0x109] sm:$0xff] }
 0x310   : > { %v4407_v42 = vpop.f32.mrf.mxu1  ;;  %2003 = vmatmul.f32.gmra.mxu3 %v4410_v39 }
 0x311   : > { %5160 = vst [vmem:[#allocation67_spill] sm:$0xff] %v4407_v42  ;;  %v2175_v42 = vld [vmem:[#allocation4 + $0x298] sm:$0xff] }
 0x312   : > { %2730 = vmatmul.f32.gmra.mxu2 %v2627_v50  ;;  %v4417_v50 = vpop.f32.mrf.mxu0  ;;  %2200 = vmatpush.msrb.mxu0 %v2175_v42  ;;  %v2630_v42 = vld [vmem:[#allocation2 + $0x79] sm:$0xff] }
 0x313   : > { %v4415_v17 = vpop.f32.mrf.mxu3  ;;  %5162 = vst [vmem:[#allocation69_spill] sm:$0xff] %v4417_v50  ;;  %v2384_v50 = vld [vmem:[#allocation2 + $0x108] sm:$0xff] }
 0x314   : > { %2484 = vmatmul.f32.gmra.mxu1 %v2373_v27  ;;  %1250 = vmatmul.f32.gmra.mxu0 %v4086_v21  ;;  %v4425_v27 = vpop.f32.mrf.mxu2  ;;  %v4434_v21 = vld [vmem:[#allocation2 + $0x111] sm:$0xff] }
 0x315   : > { %5164 = vst [vmem:[#allocation71_spill] sm:$0xff] %v4425_v27 }
 0x318   : > { %v4419_v46 = vpop.f32.mrf.mxu1  ;;  %2006 = vmatmul.f32.gmra.mxu3 %v4422_v9 }
 0x319   : > { %5163 = vst [vmem:[#allocation70_spill] sm:$0xff] %v4419_v46  ;;  %v2174_v46 = vld [vmem:[#allocation4 + $0x290] sm:$0xff] }
 0x31a   : > { %2733 = vmatmul.f32.gmra.mxu2 %v2628_v31  ;;  %v4429_v59 = vpop.f32.mrf.mxu0  ;;  %2201 = vmatpush.msrb.mxu0 %v2174_v46 }
 0x31b   : > { %v4427_v31 = vpop.f32.mrf.mxu3  ;;  %5165 = vst [vmem:[#allocation72_spill] sm:$0xff] %v4429_v59 }
 0x31c   : > { %2487 = vmatmul.f32.gmra.mxu1 %v2374_v47  ;;  %1253 = vmatmul.f32.gmra.mxu0 %v4093_v33  ;;  %v2173_v47 = vld [vmem:[#allocation4 + $0x288] sm:$0xff]  ;;  %v4441_v33 = vpop.f32.mrf.mxu2 }
 0x31d   : > { %2202 = vmatpush.msrb.mxu0 %v2173_v47  ;;  %5168 = vst [vmem:[#allocation75_spill] sm:$0xff] %v4441_v33 }
 0x320   : > { %v4431_v60 = vpop.f32.mrf.mxu1  ;;  %2009 = vmatmul.f32.gmra.mxu3 %v4434_v21 }
 0x321   : > { %5166 = vst [vmem:[#allocation73_spill] sm:$0xff] %v4431_v60  ;;  %v2172_v60 = vld [vmem:[#allocation4 + $0x280] sm:$0xff] }
 0x322   : > { %2736 = vmatmul.f32.gmra.mxu2 %v2629_v14  ;;  %v4439_v27 = vpop.f32.mrf.mxu0  ;;  %2203 = vmatpush.msrb.mxu0 %v2172_v60  ;;  %v4458_v60 = vld [vmem:[#allocation2 + $0x129] sm:$0xff] }
 0x323   : > { %v4437_v14 = vpop.f32.mrf.mxu3  ;;  %5167 = vst [vmem:[#allocation74_spill] sm:$0xff] %v4439_v27  ;;  %v2632_v27 = vld [vmem:[#allocation2 + $0x91] sm:$0xff] }
 0x324   : > { %2490 = vmatmul.f32.gmra.mxu1 %v2375_v35  ;;  %1256 = vmatmul.f32.gmra.mxu0 %v4100_v45  ;;  %v2376_v35 = vld [vmem:[#allocation2 + $0xa8] sm:$0xff]  ;;  %v4455_v33 = vpop.f32.mrf.mxu2  ;;  %v2949_v45 = vld [vmem:[#allocation4 + $0x410] sm:$0xff] }
 0x325   : > { %5172 = vst [vmem:[#allocation79_spill] sm:$0xff] %v4455_v33  ;;  %2976 = vmatpush.msra.mxu1 %v2949_v45  ;;  %3448 = vmatpush.msrb.mxu3 %v2949_v45  ;;  %v2378_v33 = vld [vmem:[#allocation2 + $0xc0] sm:$0xff] }
 0x328   : > { %v4443_v20 = vpop.f32.mrf.mxu1  ;;  %2012 = vmatmul.f32.gmra.mxu3 %v4446_v5 }
 0x329   : > { %5169 = vst [vmem:[#allocation76_spill] sm:$0xff] %v4443_v20  ;;  %v2377_v20 = vld [vmem:[#allocation2 + $0xb0] sm:$0xff] }
 0x32a   : > { %2739 = vmatmul.f32.gmra.mxu2 %v2630_v42  ;;  %v4451_v42 = vpop.f32.mrf.mxu0 }
 0x32b   : > { %v4449_v46 = vpop.f32.mrf.mxu3  ;;  %5170 = vst [vmem:[#allocation77_spill] sm:$0xff] %v4451_v42  ;;  %v2633_v42 = vld [vmem:[#allocation2 + $0x99] sm:$0xff] }
 0x32c   : > { %2493 = vmatmul.f32.gmra.mxu1 %v2376_v35  ;;  %1259 = vmatmul.f32.gmra.mxu0 %v4107_v56  ;;  %v4468_v56 = vld [vmem:[#allocation2 + $0x139] sm:$0xff]  ;;  %v4471_v59 = vpop.f32.mrf.mxu2 }
 0x32d   : > { %5176 = vst [vmem:[#allocation83_spill] sm:$0xff] %v4471_v59 }
 0x330   : > { %v4453_v47 = vpop.f32.mrf.mxu1  ;;  %2015 = vmatmul.f32.gmra.mxu3 %v4458_v60 }
 0x331   : > { %5171 = vst [vmem:[#allocation78_spill] sm:$0xff] %v4453_v47 }
 0x332   : > { %2742 = vmatmul.f32.gmra.mxu2 %v2631_v32  ;;  %v4463_v32 = vpop.f32.mrf.mxu0 }
 0x333   : > { %v4461_v35 = vpop.f32.mrf.mxu3  ;;  %5174 = vst [vmem:[#allocation81_spill] sm:$0xff] %v4463_v32  ;;  %v2379_v32 = vld [vmem:[#allocation2 + $0xc8] sm:$0xff] }
 0x334   : > { %2496 = vmatmul.f32.gmra.mxu1 %v2377_v20  ;;  %5173 = vst [vmem:[#allocation80_spill] sm:$0xff] %v4461_v35  ;;  %1262 = vmatmul.f32.gmra.mxu0 %v4119_v10  ;;  %v2948_v10 = vld [vmem:[#allocation4 + $0x408] sm:$0xff] }
 0x335   : > { %2977 = vmatpush.msra.mxu1 %v2948_v10  ;;  %3449 = vmatpush.msrb.mxu3 %v2948_v10 }
 0x338   : > { %v4465_v47 = vpop.f32.mrf.mxu1  ;;  %2018 = vmatmul.f32.gmra.mxu3 %v4468_v56 }
 0x339   : > { %5175 = vst [vmem:[#allocation82_spill] sm:$0xff] %v4465_v47  ;;  %v4480_v47 = vld [vmem:[#allocation2 + $0x141] sm:$0xff] }
 0x33a   : > { %2745 = vmatmul.f32.gmra.mxu2 %v2632_v27  ;;  %v4475_v27 = vpop.f32.mrf.mxu0 }
 0x33b   : > { %v4473_v20 = vpop.f32.mrf.mxu3  ;;  %5178 = vst [vmem:[#allocation85_spill] sm:$0xff] %v4475_v27 }
 0x33c   : > { %2499 = vmatmul.f32.gmra.mxu1 %v2378_v33  ;;  %5177 = vst [vmem:[#allocation84_spill] sm:$0xff] %v4473_v20  ;;  %1265 = vmatmul.f32.gmra.mxu0 %v4132_v37  ;;  %v4484_v33 = vpop.f32.mrf.mxu2  ;;  %v4492_v37 = vld [vmem:[#allocation2 + $0x151] sm:$0xff]  ;;  %v4553_v20 = vld [vmem:[#allocation2 + $0x189] sm:$0xff] }
 0x33d   : > { %5180 = vst [vmem:[#allocation87_spill] sm:$0xff] %v4484_v33  ;;  %v2108_v33 = vld [vmem:[#allocation2 + $0x22] sm:$0xff] }
 0x340   : > { %v4477_v45 = vpop.f32.mrf.mxu1  ;;  %2021 = vmatmul.f32.gmra.mxu3 %v4480_v47 }
 0x341   : > { %5179 = vst [vmem:[#allocation86_spill] sm:$0xff] %v4477_v45  ;;  %v2107_v45 = vld [vmem:[#allocation2 + $0x1a] sm:$0xff] }
 0x342   : > { %2748 = vmatmul.f32.gmra.mxu2 %v2633_v42  ;;  %v4488_v59 = vpop.f32.mrf.mxu0 }
 0x343   : > { %v4486_v42 = vpop.f32.mrf.mxu3  ;;  %5182 = vst [vmem:[#allocation89_spill] sm:$0xff] %v4488_v59 }
 0x344   : > { %2502 = vmatmul.f32.gmra.mxu1 %v2379_v32  ;;  %5181 = vst [vmem:[#allocation88_spill] sm:$0xff] %v4486_v42  ;;  %2204 = vmatmul.f32.vlgmr.msrb.gmra.mxu0 %v2107_v45  ;;  %v4500_v10 = vpop.f32.mrf.mxu2  ;;  %v2947_v45 = vld [vmem:[#allocation4 + $0x400] sm:$0xff]  ;;  %v2381_v42 = vld [vmem:[#allocation2 + $0xe0] sm:$0xff] }
 0x345   : > { %5186 = vst [vmem:[#allocation93_spill] sm:$0xff] %v4500_v10  ;;  %2978 = vmatpush.msra.mxu1 %v2947_v45  ;;  %3450 = vmatpush.msrb.mxu3 %v2947_v45  ;;  %v4512_v10 = vld [vmem:[#allocation2 + $0x32] sm:$0xff] }
 0x348   : > { %v4490_v27 = vpop.f32.mrf.mxu1  ;;  %2024 = vmatmul.f32.gmra.mxu3 %v4492_v37 }
 0x349   : > { %5183 = vst [vmem:[#allocation90_spill] sm:$0xff] %v4490_v27  ;;  %v4504_v27 = vld [vmem:[#allocation2 + $0x159] sm:$0xff] }
 0x34a   : > { %2751 = vmatmul.f32.gmra.mxu2 %v4322_v0  ;;  %v4498_v32 = vpop.f32.mrf.mxu0 }
 0x34b   : > { %v4496_v0 = vpop.f32.mrf.mxu3  ;;  %5185 = vst [vmem:[#allocation92_spill] sm:$0xff] %v4498_v32 }
 0x34c   : > { %2505 = vmatmul.f32.gmra.mxu1 %v2380_v6  ;;  %5184 = vst [vmem:[#allocation91_spill] sm:$0xff] %v4496_v0  ;;  %2207 = vmatmul.f32.gmra.mxu0 %v2108_v33  ;;  %v4516_v33 = vpop.f32.mrf.mxu2 }
 0x34d   : > { %5191 = vst [vmem:[#allocation98_spill] sm:$0xff] %v4516_v33  ;;  %v2383_v33 = vld [vmem:[#allocation2 + $0xf8] sm:$0xff] }
 0x350   : > { %v4502_v59 = vpop.f32.mrf.mxu1  ;;  %2027 = vmatmul.f32.gmra.mxu3 %v4504_v27 }
 0x351   : > { %5187 = vst [vmem:[#allocation94_spill] sm:$0xff] %v4502_v59  ;;  %v4519_v59 = vld [vmem:[#allocation2 + $0x169] sm:$0xff] }
 0x352   : > { %2754 = vmatmul.f32.gmra.mxu2 %v4338_v38  ;;  %v4510_v38 = vpop.f32.mrf.mxu0 }
 0x353   : > { %v4508_v6 = vpop.f32.mrf.mxu3  ;;  %5189 = vst [vmem:[#allocation96_spill] sm:$0xff] %v4510_v38  ;;  %v2110_v38 = vld [vmem:[#allocation2 + $0x3a] sm:$0xff] }
 0x354   : > { %2508 = vmatmul.f32.gmra.mxu1 %v2381_v42  ;;  %5188 = vst [vmem:[#allocation95_spill] sm:$0xff] %v4508_v6  ;;  %2210 = vmatmul.f32.gmra.mxu0 %v4512_v10  ;;  %v2382_v42 = vld [vmem:[#allocation2 + $0xf0] sm:$0xff]  ;;  %v4532_v0 = vpop.f32.mrf.mxu2 }
 0x355   : > { %5194 = vst [vmem:[#allocation101_spill] sm:$0xff] %v4532_v0 }
 0x358   : > { %v4514_v32 = vpop.f32.mrf.mxu1  ;;  %2030 = vmatmul.f32.gmra.mxu3 %v4519_v59 }
 0x359   : > { %5190 = vst [vmem:[#allocation97_spill] sm:$0xff] %v4514_v32  ;;  %v4529_v32 = vld [vmem:[#allocation2 + $0x171] sm:$0xff] }
 0x35a   : > { %2757 = vmatmul.f32.gmra.mxu2 %v4349_v52  ;;  %v4525_v45 = vpop.f32.mrf.mxu0 }
 0x35b   : > { %v4523_v52 = vpop.f32.mrf.mxu3  ;;  %5193 = vst [vmem:[#allocation100_spill] sm:$0xff] %v4525_v45 }
 0x35c   : > { %2511 = vmatmul.f32.gmra.mxu1 %v2382_v42  ;;  %5192 = vst [vmem:[#allocation99_spill] sm:$0xff] %v4523_v52  ;;  %2213 = vmatmul.f32.gmra.mxu0 %v2110_v38  ;;  %v2111_v52 = vld [vmem:[#allocation2 + $0x4a] sm:$0xff]  ;;  %v4545_v0 = vpop.f32.mrf.mxu2 }
 0x35d   : > { %5197 = vst [vmem:[#allocation104_spill] sm:$0xff] %v4545_v0 }
 0x360   : > { %2033 = vmatmul.f32.gmra.mxu3 %v4529_v32 }
 0x361   : > { %v4527_v6 = vpop.f32.mrf.mxu1 }
 0x362   : > { %2760 = vmatmul.f32.gmra.mxu2 %v4364_v62  ;;  %v4537_v62 = vpop.f32.mrf.mxu0 }
 0x363   : > { %v4535_v42 = vpop.f32.mrf.mxu3  ;;  %5196 = vst [vmem:[#allocation103_spill] sm:$0xff] %v4537_v62 }
 0x364   : > { %2514 = vmatmul.f32.gmra.mxu1 %v2383_v33  ;;  %5195 = vst [vmem:[#allocation102_spill] sm:$0xff] %v4535_v42  ;;  %2216 = vmatmul.f32.gmra.mxu0 %v2111_v52  ;;  %v2112_v42 = vld [vmem:[#allocation2 + $0x52] sm:$0xff]  ;;  %v4561_v0 = vpop.f32.mrf.mxu2 }
 0x365   : > { %5202 = vst [vmem:[#allocation109_spill] sm:$0xff] %v4561_v0  ;;  %v2387_v0 = vld [vmem:[#allocation2 + $0x128] sm:$0xff] }
 0x368   : > { %2036 = vmatmul.f32.gmra.mxu3 %v4541_v54 }
 0x369   : > { %v4539_v45 = vpop.f32.mrf.mxu1 }
 0x36a   : > { %2763 = vmatmul.f32.gmra.mxu2 %v4376_v8  ;;  %v4549_v8 = vpop.f32.mrf.mxu0 }
 0x36b   : > { %v4547_v33 = vpop.f32.mrf.mxu3  ;;  %5199 = vst [vmem:[#allocation106_spill] sm:$0xff] %v4549_v8 }
 0x36c   : > { %2517 = vmatmul.f32.gmra.mxu1 %v2384_v50  ;;  %5198 = vst [vmem:[#allocation105_spill] sm:$0xff] %v4547_v33  ;;  %2219 = vmatmul.f32.gmra.mxu0 %v2112_v42  ;;  %v2113_v33 = vld [vmem:[#allocation2 + $0x62] sm:$0xff] }
 0x370   : > { %2039 = vmatmul.f32.gmra.mxu3 %v4553_v20 }
 0x371   : > { %v4551_v62 = vpop.f32.mrf.mxu1 }
 0x372   : > { %2766 = vmatmul.f32.gmra.mxu2 %v4388_v24  ;;  %v4559_v24 = vpop.f32.mrf.mxu0 }
 0x373   : > { %v4557_v50 = vpop.f32.mrf.mxu3  ;;  %5201 = vst [vmem:[#allocation108_spill] sm:$0xff] %v4559_v24 }
 0x374   : > { %2520 = vmatmul.f32.gmra.mxu1 %v2385_v1  ;;  %5200 = vst [vmem:[#allocation107_spill] sm:$0xff] %v4557_v50  ;;  %2222 = vmatmul.f32.gmra.mxu0 %v2113_v33  ;;  %v4572_v50 = vpop.f32.mrf.mxu2 }
 0x375   : > { %5205 = vst [vmem:[#allocation112_spill] sm:$0xff] %v4572_v50 }
 0x378   : > { %2982 = vmatmul.f32.vlgmr.msrb.gmra.mxu3 %v2110_v38 }
 0x379   : > { %v4563_v8 = vpop.f32.mrf.mxu1 }
 0x37a   : > { %2769 = vmatmul.f32.gmra.mxu2 %v4400_v41  ;;  %v4568_v1 = vpop.f32.mrf.mxu0  ;;  %v2114_v41 = vld [vmem:[#allocation2 + $0x6a] sm:$0xff] }
 0x37b   : > { %v4566_v35 = vpop.f32.mrf.mxu3  ;;  %5204 = vst [vmem:[#allocation111_spill] sm:$0xff] %v4568_v1  ;;  %v2388_v1 = vld [vmem:[#allocation2 + $0x138] sm:$0xff] }
 0x37c   : > { %2523 = vmatmul.f32.gmra.mxu1 %v2386_v2  ;;  %5203 = vst [vmem:[#allocation110_spill] sm:$0xff] %v4566_v35  ;;  %2225 = vmatmul.f32.gmra.mxu0 %v2114_v41  ;;  %v4581_v35 = vpop.f32.mrf.mxu2 }
 0x37d   : > { %5208 = vst [vmem:[#allocation115_spill] sm:$0xff] %v4581_v35 }
 0x380   : > { %2985 = vmatmul.f32.gmra.mxu3 %v2111_v52 }
 0x381   : > { %v4570_v16 = vpop.f32.mrf.mxu1 }
 0x382   : > { %2772 = vmatmul.f32.gmra.mxu2 %v4410_v39  ;;  %v4577_v2 = vpop.f32.mrf.mxu0  ;;  %v2115_v39 = vld [vmem:[#allocation2 + $0x7a] sm:$0xff] }
 0x383   : > { %v4575_v38 = vpop.f32.mrf.mxu3  ;;  %5207 = vst [vmem:[#allocation114_spill] sm:$0xff] %v4577_v2  ;;  %v2389_v2 = vld [vmem:[#allocation2 + $0x140] sm:$0xff] }
 0x384   : > { %2526 = vmatmul.f32.gmra.mxu1 %v2387_v0  ;;  %5206 = vst [vmem:[#allocation113_spill] sm:$0xff] %v4575_v38  ;;  %2228 = vmatmul.f32.gmra.mxu0 %v2115_v39 }
 0x388   : > { %2988 = vmatmul.f32.gmra.mxu3 %v2112_v42  ;;  %v4591_v42 = vpop.f32.mrf.mxu2 }
 0x389   : > { %v4579_v24 = vpop.f32.mrf.mxu1  ;;  %5211 = vst [vmem:[#allocation118_spill] sm:$0xff] %v4591_v42  ;;  %v2118_v42 = vld [vmem:[#allocation2 + $0x9a] sm:$0xff] }
 0x38a   : > { %2775 = vmatmul.f32.gmra.mxu2 %v4422_v9  ;;  %v4586_v0 = vpop.f32.mrf.mxu0  ;;  %v2116_v9 = vld [vmem:[#allocation2 + $0x82] sm:$0xff] }
 0x38b   : > { %v4584_v52 = vpop.f32.mrf.mxu3  ;;  %5210 = vst [vmem:[#allocation117_spill] sm:$0xff] %v4586_v0  ;;  %v2390_v0 = vld [vmem:[#allocation2 + $0x150] sm:$0xff] }
 0x38c   : > { %2529 = vmatmul.f32.gmra.mxu1 %v2388_v1  ;;  %5209 = vst [vmem:[#allocation116_spill] sm:$0xff] %v4584_v52  ;;  %2231 = vmatmul.f32.gmra.mxu0 %v2116_v9 }
 0x390   : > { %2991 = vmatmul.f32.gmra.mxu3 %v2113_v33 }
 0x391   : > { %v4588_v50 = vpop.f32.mrf.mxu1 }
 0x392   : > { %2778 = vmatmul.f32.gmra.mxu2 %v4434_v21  ;;  %v4595_v1 = vpop.f32.mrf.mxu0  ;;  %v2117_v21 = vld [vmem:[#allocation2 + $0x92] sm:$0xff] }
 0x393   : > { %v4593_v38 = vpop.f32.mrf.mxu3  ;;  %5213 = vst [vmem:[#allocation120_spill] sm:$0xff] %v4595_v1  ;;  %v2391_v1 = vld [vmem:[#allocation2 + $0x158] sm:$0xff] }
 0x394   : > { %2532 = vmatmul.f32.gmra.mxu1 %v2389_v2  ;;  %5212 = vst [vmem:[#allocation119_spill] sm:$0xff] %v4593_v38  ;;  %2234 = vmatmul.f32.gmra.mxu0 %v2117_v21 }
 0x398   : > { %2994 = vmatmul.f32.gmra.mxu3 %v2114_v41 }
 0x399   : > { %v4597_v35 = vpop.f32.mrf.mxu1 }
 0x39a   : > { %2781 = vmatmul.f32.gmra.mxu2 %v4446_v5  ;;  %v4602_v2 = vpop.f32.mrf.mxu0  ;;  %v4604_v5 = vpop.f32.mrf.mxu2 }
 0x39b   : > { %v4600_v33 = vpop.f32.mrf.mxu3  ;;  %5215 = vst [vmem:[#allocation122_spill] sm:$0xff] %v4602_v2 }
 0x39c   : > { %2535 = vmatmul.f32.gmra.mxu1 %v2390_v0  ;;  %5214 = vst [vmem:[#allocation121_spill] sm:$0xff] %v4600_v33  ;;  %2237 = vmatmul.f32.gmra.mxu0 %v2118_v42 }
 0x39d   : > { %5216 = vst [vmem:[#allocation123_spill] sm:$0xff] %v4604_v5  ;;  %v2392_v5 = vld [vmem:[#allocation2 + $0x168] sm:$0xff] }
 0x3a0   : > { %2997 = vmatmul.f32.gmra.mxu3 %v2115_v39 }
 0x3a1   : > { %v4606_v52 = vpop.f32.mrf.mxu1 }
 0x3a2   : > { %2784 = vmatmul.f32.gmra.mxu2 %v4458_v60  ;;  %v4611_v0 = vpop.f32.mrf.mxu0  ;;  %v2119_v60 = vld [vmem:[#allocation2 + $0xaa] sm:$0xff]  ;;  %v4615_v33 = vpop.f32.mrf.mxu2 }
 0x3a3   : > { %v4609_v41 = vpop.f32.mrf.mxu3  ;;  %5218 = vst [vmem:[#allocation125_spill] sm:$0xff] %v4611_v0  ;;  %v2393_v0 = vld [vmem:[#allocation2 + $0x170] sm:$0xff] }
 0x3a4   : > { %2538 = vmatmul.f32.gmra.mxu1 %v2391_v1  ;;  %5217 = vst [vmem:[#allocation124_spill] sm:$0xff] %v4609_v41  ;;  %2240 = vmatmul.f32.gmra.mxu0 %v2119_v60 }
 0x3a5   : > { %5219 = vst [vmem:[#allocation126_spill] sm:$0xff] %v4615_v33 }
 0x3a8   : > { %3000 = vmatmul.f32.gmra.mxu3 %v2116_v9 }
 0x3a9   : > { %v4613_v38 = vpop.f32.mrf.mxu1 }
 0x3aa   : > { %2787 = vmatmul.f32.gmra.mxu2 %v4468_v56  ;;  %v4620_v1 = vpop.f32.mrf.mxu0  ;;  %v2120_v56 = vld [vmem:[#allocation2 + $0xb2] sm:$0xff]  ;;  %v4624_v41 = vpop.f32.mrf.mxu2 }
 0x3ab   : > { %v4618_v39 = vpop.f32.mrf.mxu3  ;;  %5221 = vst [vmem:[#allocation128_spill] sm:$0xff] %v4620_v1 }
 0x3ac   : > { %2541 = vmatmul.f32.gmra.mxu1 %v2392_v5  ;;  %5220 = vst [vmem:[#allocation127_spill] sm:$0xff] %v4618_v39  ;;  %2243 = vmatmul.f32.gmra.mxu0 %v2120_v56 }
 0x3b0   : > { %3003 = vmatmul.f32.gmra.mxu3 %v2117_v21 }
 0x3b1   : > { %v4622_v2 = vpop.f32.mrf.mxu1 }
 0x3b2   : > { %2790 = vmatmul.f32.gmra.mxu2 %v4480_v47  ;;  %5222 = vst [vmem:[#allocation129_spill] sm:$0xff] %v4622_v2  ;;  %v4629_v5 = vpop.f32.mrf.mxu0  ;;  %v2121_v47 = vld [vmem:[#allocation2 + $0xc2] sm:$0xff]  ;;  %v4635_v21 = vpop.f32.mrf.mxu2  ;;  %v2128_v2 = vld [vmem:[#allocation2 + $0x112] sm:$0xff] }
 0x3b3   : > { %v4627_v9 = vpop.f32.mrf.mxu3  ;;  %5224 = vst [vmem:[#allocation131_spill] sm:$0xff] %v4629_v5  ;;  %v2123_v5 = vld [vmem:[#allocation2 + $0xda] sm:$0xff] }
 0x3b4   : > { %2544 = vmatmul.f32.gmra.mxu1 %v2393_v0  ;;  %5223 = vst [vmem:[#allocation130_spill] sm:$0xff] %v4627_v9  ;;  %2246 = vmatmul.f32.gmra.mxu0 %v2121_v47 }
 0x3b8   : > { %3006 = vmatmul.f32.gmra.mxu3 %v2118_v42 }
 0x3b9   : > { %v4631_v33 = vpop.f32.mrf.mxu1 }
 0x3ba   : > { %2793 = vmatmul.f32.gmra.mxu2 %v4492_v37  ;;  %5225 = vst [vmem:[#allocation132_spill] sm:$0xff] %v4631_v33  ;;  %v4639_v0 = vpop.f32.mrf.mxu0  ;;  %v2122_v37 = vld [vmem:[#allocation2 + $0xca] sm:$0xff] }
 0x3bb   : > { %v4637_v1 = vpop.f32.mrf.mxu3  ;;  %5227 = vst [vmem:[#allocation134_spill] sm:$0xff] %v4639_v0  ;;  %v3508_v0 = vld [vmem:[#allocation2] sm:$0xff] }
 0x3bc   : > { %2547 = vmatmul.f32.gmra.mxu1 %v4333_v36  ;;  %5226 = vst [vmem:[#allocation133_spill] sm:$0xff] %v4637_v1  ;;  %2249 = vmatmul.f32.gmra.mxu0 %v2122_v37  ;;  %v2124_v1 = vld [vmem:[#allocation2 + $0xe2] sm:$0xff] }
 0x3c0   : > { %3009 = vmatmul.f32.gmra.mxu3 %v2119_v60 }
 0x3c1   : > { %v4641_v39 = vpop.f32.mrf.mxu1 }
 0x3c2   : > { %2796 = vmatmul.f32.gmra.mxu2 %v4504_v27  ;;  %5228 = vst [vmem:[#allocation135_spill] sm:$0xff] %v4641_v39  ;;  %v4647_v36 = vpop.f32.mrf.mxu0  ;;  %v4649_v27 = vpop.f32.mrf.mxu2  ;;  %v2125_v39 = vld [vmem:[#allocation2 + $0xf2] sm:$0xff] }
 0x3c3   : > { %v4645_v42 = vpop.f32.mrf.mxu3  ;;  %5230 = vst [vmem:[#allocation137_spill] sm:$0xff] %v4647_v36 }
 0x3c4   : > { %2550 = vmatmul.f32.gmra.mxu1 %v4352_v4  ;;  %5229 = vst [vmem:[#allocation136_spill] sm:$0xff] %v4645_v42  ;;  %2252 = vmatmul.f32.gmra.mxu0 %v2123_v5 }
 0x3c8   : > { %3012 = vmatmul.f32.gmra.mxu3 %v2120_v56 }
 0x3c9   : > { %v4651_v9 = vpop.f32.mrf.mxu1 }
 0x3ca   : > { %2799 = vmatmul.f32.gmra.mxu2 %v4519_v59  ;;  %5231 = vst [vmem:[#allocation138_spill] sm:$0xff] %v4651_v9  ;;  %v2208_v4 = vpop.f32.mrf.mxu0  ;;  %v4658_v42 = vpop.f32.mrf.mxu2 }
 0x3cb   : > { %v4654_v60 = vpop.f32.mrf.mxu3 }
 0x3cc   : > { %2553 = vmatmul.f32.gmra.mxu1 %v3508_v0  ;;  %5232 = vst [vmem:[#allocation139_spill] sm:$0xff] %v4654_v60  ;;  %2255 = vmatmul.f32.gmra.mxu0 %v2124_v1 }
 0x3d0   : > { %3015 = vmatmul.f32.gmra.mxu3 %v2121_v47 }
 0x3d1   : > { %v4656_v59 = vpop.f32.mrf.mxu1 }
 0x3d2   : > { %2802 = vmatmul.f32.gmra.mxu2 %v4529_v32  ;;  %5233 = vst [vmem:[#allocation140_spill] sm:$0xff] %v4656_v59  ;;  %v2211_v56 = vpop.f32.mrf.mxu0  ;;  %v4665_v32 = vpop.f32.mrf.mxu2 }
 0x3d3   : > { %v4661_v9 = vpop.f32.mrf.mxu3 }
 0x3d4   : > { %2556 = vmatmul.f32.gmra.mxu1 %v3508_v0  ;;  %5234 = vst [vmem:[#allocation141_spill] sm:$0xff] %v4661_v9  ;;  %2258 = vmatmul.f32.gmra.mxu0 %v2125_v39  ;;  %v2126_v0 = vld [vmem:[#allocation2 + $0xfa] sm:$0xff] }
 0x3d8   : > { %3018 = vmatmul.f32.gmra.mxu3 %v2122_v37  ;;  %v1270_v37 = vadd.f32 %v4306_v19, %v4125_v26 }
 0x3d9   : > { %v4663_v33 = vpop.f32.mrf.mxu1 }
 0x3da   : > { %2805 = vmatmul.f32.gmra.mxu2 %v4541_v54  ;;  %5235 = vst [vmem:[#allocation142_spill] sm:$0xff] %v4663_v33  ;;  %v2214_v47 = vpop.f32.mrf.mxu0  ;;  %v2127_v33 = vld [vmem:[#allocation2 + $0x10a] sm:$0xff] }
 0x3db   : > { %v4669_v60 = vpop.f32.mrf.mxu3 }
 0x3dc   : > { %2979 = vmatmul.f32.vlgmr.msra.gmra.mxu1 %v4512_v10  ;;  %5236 = vst [vmem:[#allocation143_spill] sm:$0xff] %v4669_v60  ;;  %2261 = vmatmul.f32.gmra.mxu0 %v2126_v0 }
 0x3e0   : > { %3021 = vmatmul.f32.gmra.mxu3 %v2123_v5  ;;  %v1271_v5 = vadd.f32 %v4316_v28, %v4141_v48  ;;  %v1272_v48 = vadd.f32 %v4329_v25, %v4153_v18 }
 0x3e1   : > { %v4671_v59 = vpop.f32.mrf.mxu1 }
 0x3e2   : > { %2808 = vmatmul.f32.gmra.mxu2 %v4553_v20  ;;  %5237 = vst [vmem:[#allocation144_spill] sm:$0xff] %v4671_v59  ;;  %v4675_v9 = vpop.f32.mrf.mxu0  ;;  %v1528_v20 = vadd.f32 %v4127_v30, %v1270_v37  ;;  %v4689_v59 = vpop.f32.mrf.mxu2  ;;  %v1529_v30 = vadd.f32 %v4146_v57, %v1271_v5 }
 0x3e3   : > { %v4673_v54 = vpop.f32.mrf.mxu3 }
 0x3e4   : > { %5238 = vst [vmem:[#allocation145_spill] sm:$0xff] %v4673_v54  ;;  %2264 = vmatmul.f32.gmra.mxu0 %v2127_v33  ;;  %v1786_v54 = vadd.f32 %v4181_v53, %v1528_v20  ;;  %v1787_v53 = vadd.f32 %v4195_v43, %v1529_v30  ;;  %v2129_v20 = vld [vmem:[#allocation2 + $0x122] sm:$0xff]  ;;  %v4714_v43 = vld [vmem:[%s5099_s6] ss:$0 sm:$0xff] }
 0x3e6   : > { %v2044_v19 = vadd.f32 %v4391_v11, %v1786_v54  ;;  %v2045_v11 = vadd.f32 %v4403_v23, %v1787_v53 }
 0x3e8   : > { %3024 = vmatmul.f32.gmra.mxu3 %v2124_v1  ;;  %v2302_v1 = vadd.f32 %v2208_v4, %v2044_v19  ;;  %v2303_v4 = vadd.f32 %v2211_v56, %v2045_v11  ;;  %v2130_v56 = vld [vmem:[#allocation2 + $0x12a] sm:$0xff] }
 0x3e9   : > { %v4679_v36 = vpop.f32.mrf.mxu1 }
 0x3ea   : > { %v4684_v60 = vpop.f32.mrf.mxu0  ;;  %v2561_v28 = vadd.f32 %v4527_v6, %v2302_v1  ;;  %v4706_v57 = vpop.f32.mrf.mxu2 }
 0x3eb   : > { %v4682_v10 = vpop.f32.mrf.mxu3 }
 0x3ec   : > { %5239 = vst [vmem:[#allocation146_spill] sm:$0xff] %v4682_v10  ;;  %2267 = vmatmul.f32.gmra.mxu0 %v2128_v2  ;;  %v2819_v18 = vadd.f32 %v4624_v41, %v2561_v28  ;;  %v4741_v28 = vld [vmem:[#allocation2 + $0x13a] sm:$0xff] }
 0x3f0   : > { %3027 = vmatmul.f32.gmra.mxu3 %v2125_v39  ;;  %v1530_v39 = vadd.f32 %v4158_v34, %v1272_v48  ;;  %v2562_v34 = vadd.f32 %v4539_v45, %v2303_v4 }
 0x3f1   : > { %v4691_v26 = vpop.f32.mrf.mxu1 }
 0x3f2   : > { %5240 = vst [vmem:[#allocation147_spill] sm:$0xff] %v4691_v26  ;;  %v4697_v10 = vpop.f32.mrf.mxu0  ;;  %v1788_v54 = vadd.f32 %v4206_v7, %v1530_v39  ;;  %v4729_v48 = vpop.f32.mrf.mxu2 }
 0x3f3   : > { %v4695_v37 = vpop.f32.mrf.mxu3 }
 0x3f4   : > { %2270 = vmatmul.f32.gmra.mxu0 %v2129_v20  ;;  %v2046_v19 = vadd.f32 %v4415_v17, %v1788_v54  ;;  %v1274_v17 = vadd.f32 %v4359_v55, %v4179_v51 }
 0x3f6   : > { %v2304_v53 = vadd.f32 %v2214_v47, %v2046_v19  ;;  %v1532_v4 = vadd.f32 %v4183_v15, %v1274_v17  ;;  %v2132_v15 = vld [vmem:[#allocation2 + $0x142] sm:$0xff]  ;;  %v5242_v17 = vld [vmem:[#allocation19_spill] sm:$0xff] }
 0x3f8   : > { %3030 = vmatmul.f32.gmra.mxu3 %v2126_v0  ;;  %v1273_v0 = vadd.f32 %v4344_v29, %v4168_v63  ;;  %v2820_v63 = vadd.f32 %v4635_v21, %v2562_v34  ;;  %v5241_v34 = vld [vmem:[#allocation17_spill] sm:$0xff] }
 0x3f9   : > { %v4703_v26 = vpop.f32.mrf.mxu1 }
 0x3fa   : > { %v4716_v6 = vpop.f32.mrf.mxu0  ;;  %v1531_v1 = vadd.f32 %v4172_v3, %v1273_v0  ;;  %v2563_v3 = vadd.f32 %v4551_v62, %v2304_v53  ;;  %v4752_v62 = vpop.f32.mrf.mxu2 }
 0x3fb   : > { %v2983_v25 = vpop.f32.mrf.mxu3 }
 0x3fc   : > { %v3077_v23 = vadd.f32 %v2983_v25, %v2819_v18  ;;  %2273 = vmatmul.f32.gmra.mxu0 %v2130_v56 }
 0x3fe   : > { %v3177_v41 = vadd.f32 %v4714_v43, %v3077_v23  ;;  %v1275_v23 = vadd.f32 %v4371_v58, %v4193_v13 }
 0x400   : > { %v3209_v30 = vmax.f32 %v3177_v41, 0.0  ;;  %3033 = vmatmul.f32.gmra.mxu3 %v2127_v33  ;;  %v1789_v33 = vadd.f32 %v4220_v61, %v1531_v1  ;;  %v2821_v61 = vadd.f32 %v4649_v27, %v2563_v3  ;;  %v1533_v41 = vadd.f32 %v5241_v34, %v1275_v23  ;;  %v5247_v34 = vld [vmem:[#allocation24_spill] sm:$0xff] }
 0x401   : > { %v4725_v5 = vpop.f32.mrf.mxu1  ;;  %v1276_v1 = vadd.f32 %v4381_v49, %v4204_v12 }
 0x402   : > { %3241 = vst [vmem:[%s4731_s23 + $0x8] sm:$0xff] %v3209_v30  ;;  %v4735_v29 = vpop.f32.mrf.mxu0  ;;  %v2047_v21 = vadd.f32 %v4427_v31, %v1789_v33  ;;  %v1790_v31 = vadd.f32 %v4231_v40, %v1532_v4  ;;  %v2654_v30 = vld [vmem:[#allocation2 + $0x199] sm:$0xff] }
 0x403   : > { %v2986_v7 = vpop.f32.mrf.mxu3  ;;  %2811 = vmatmul.f32.gmra.mxu2 %v2654_v30  ;;  %v1534_v33 = vadd.f32 %v5242_v17, %v1276_v1 }
 0x404   : > { %v3078_v45 = vadd.f32 %v2986_v7, %v2820_v63  ;;  %2276 = vmatmul.f32.gmra.mxu0 %v4741_v28  ;;  %v2305_v51 = vadd.f32 %v4675_v9, %v2047_v21  ;;  %v2048_v27 = vadd.f32 %v4437_v14, %v1790_v31  ;;  %v1791_v14 = vadd.f32 %v4245_v22, %v1533_v41  ;;  %v5243_v21 = vld [vmem:[#allocation21_spill] sm:$0xff]  ;;  %v5246_v31 = vld [vmem:[#allocation22_spill] sm:$0xff] }
 0x405   : > { %v5248_v41 = vld [vmem:[#allocation66_spill] sm:$0xff] }
 0x406   : > { %v3178_v47 = vadd.f32 %v4714_v43, %v3078_v45  ;;  %v2306_v19 = vadd.f32 %v4684_v60, %v2048_v27  ;;  %v2133_v60 = vld [vmem:[#allocation2 + $0x152] sm:$0xff]  ;;  %v2049_v7 = vadd.f32 %v4449_v46, %v1791_v14 }
 0x407   : > { %v5244_v46 = vld [vmem:[#allocation31_spill] sm:$0xff] }
 0x408   : > { %v3210_v39 = vmax.f32 %v3178_v47, 0.0  ;;  %3036 = vmatmul.f32.gmra.mxu3 %v2128_v2  ;;  %v2564_v2 = vadd.f32 %v4563_v8, %v2305_v51  ;;  %v2565_v53 = vadd.f32 %v4570_v16, %v2306_v19  ;;  %v2307_v12 = vadd.f32 %v4697_v10, %v2049_v7  ;;  %v2655_v47 = vld [vmem:[#allocation2 + $0x1a1] sm:$0xff] }
 0x409   : > { %v4744_v11 = vpop.f32.mrf.mxu1  ;;  %v1792_v4 = vadd.f32 %v5244_v46, %v1534_v33  ;;  %v2134_v51 = vld [vmem:[#allocation2 + $0x15a] sm:$0xff]  ;;  %v1278_v19 = vadd.f32 %v5248_v41, %v5247_v34  ;;  %v5259_v34 = vld [vmem:[#allocation45_spill] sm:$0xff] }
 0x40a   : > { %3242 = vst [vmem:[%s4731_s23 + $0x10] sm:$0xff] %v3210_v39  ;;  %v4754_v18 = vpop.f32.mrf.mxu0  ;;  %v2822_v13 = vadd.f32 %v4658_v42, %v2564_v2  ;;  %v2823_v22 = vadd.f32 %v4665_v32, %v2565_v53  ;;  %v1277_v39 = vadd.f32 %v4393_v44, %v5243_v21  ;;  %v5245_v32 = vld [vmem:[#allocation80_spill] sm:$0xff]  ;;  %v5251_v53 = vld [vmem:[#allocation25_spill] sm:$0xff] }
 0x40b   : > { %v2989_v55 = vpop.f32.mrf.mxu3  ;;  %2814 = vmatmul.f32.gmra.mxu2 %v2655_v47  ;;  %v5254_v47 = vld [vmem:[#allocation40_spill] sm:$0xff] }
 0x40c   : > { %v3079_v25 = vadd.f32 %v2989_v55, %v2821_v61  ;;  %2279 = vmatmul.f32.gmra.mxu0 %v2132_v15  ;;  %v2050_v55 = vadd.f32 %v5245_v32, %v1792_v4  ;;  %v1535_v2 = vadd.f32 %v5246_v31, %v1277_v39  ;;  %v2136_v39 = vld [vmem:[#allocation2 + $0x172] sm:$0xff] }
 0x40e   : > { %v3179_v9 = vadd.f32 %v4714_v43, %v3079_v25  ;;  %v2308_v44 = vadd.f32 %v4716_v6, %v2050_v55  ;;  %v5250_v6 = vld [vmem:[#allocation84_spill] sm:$0xff] }
 0x410   : > { %v3211_v54 = vmax.f32 %v3179_v9, 0.0  ;;  %3039 = vmatmul.f32.gmra.mxu3 %v2129_v20  ;;  %v4773_v20 = vpop.f32.mrf.mxu2 }
 0x411   : > { %v4761_v0 = vpop.f32.mrf.mxu1 }
 0x412   : > { %3243 = vst [vmem:[%s4731_s23 + $0x18] sm:$0xff] %v3211_v54  ;;  %v4768_v58 = vpop.f32.mrf.mxu0 }
 0x413   : > { %v2992_v40 = vpop.f32.mrf.mxu3 }
 0x414   : > { %v3080_v8 = vadd.f32 %v2992_v40, %v2822_v13  ;;  %2282 = vmatmul.f32.gmra.mxu0 %v2133_v60  ;;  %v5249_v13 = vld [vmem:[#allocation36_spill] sm:$0xff] }
 0x415   : > { %v1793_v40 = vadd.f32 %v5249_v13, %v1535_v2 }
 0x416   : > { %v3180_v63 = vadd.f32 %v4714_v43, %v3080_v8  ;;  %v2567_v8 = vadd.f32 %v4588_v50, %v2308_v44 }
 0x418   : > { %v3212_v45 = vmax.f32 %v3180_v63, 0.0  ;;  %3042 = vmatmul.f32.gmra.mxu3 %v2130_v56  ;;  %v2566_v56 = vadd.f32 %v4579_v24, %v2307_v12  ;;  %v4794_v25 = vpop.f32.mrf.mxu2  ;;  %v1536_v63 = vadd.f32 %v5251_v53, %v1278_v19  ;;  %v2825_v17 = vadd.f32 %v4706_v57, %v2567_v8  ;;  %v2137_v19 = vld [vmem:[#allocation2 + $0x182] sm:$0xff] }
 0x419   : > { %v4777_v42 = vpop.f32.mrf.mxu1 }
 0x41a   : > { %3244 = vst [vmem:[%s4731_s23 + $0x20] sm:$0xff] %v3212_v45  ;;  %v4784_v3 = vpop.f32.mrf.mxu0  ;;  %v2824_v24 = vadd.f32 %v4689_v59, %v2566_v56  ;;  %v2051_v59 = vadd.f32 %v5250_v6, %v1793_v40  ;;  %v1794_v21 = vadd.f32 %v5254_v47, %v1536_v63 }
 0x41b   : > { %v2995_v49 = vpop.f32.mrf.mxu3 }
 0x41c   : > { %v3081_v16 = vadd.f32 %v2995_v49, %v2823_v22  ;;  %2285 = vmatmul.f32.gmra.mxu0 %v2134_v51  ;;  %v2309_v45 = vadd.f32 %v4735_v29, %v2051_v59  ;;  %v5252_v22 = vld [vmem:[#allocation27_spill] sm:$0xff]  ;;  %v5253_v49 = vld [vmem:[#allocation69_spill] sm:$0xff]  ;;  %v5255_v29 = vld [vmem:[#allocation88_spill] sm:$0xff] }
 0x41d   : > { %v2052_v57 = vadd.f32 %v5255_v29, %v1794_v21  ;;  %v5267_v29 = vld [vmem:[#allocation42_spill] sm:$0xff] }
 0x41e   : > { %v3181_v10 = vadd.f32 %v4714_v43, %v3081_v16  ;;  %v1279_v16 = vadd.f32 %v5253_v49, %v5252_v22 }
 0x41f   : > { %v2310_v55 = vadd.f32 %v4754_v18, %v2052_v57 }
 0x420   : > { %v3213_v23 = vmax.f32 %v3181_v10, 0.0  ;;  %3045 = vmatmul.f32.gmra.mxu3 %v4741_v28  ;;  %v2135_v28 = vld [vmem:[#allocation2 + $0x16a] sm:$0xff]  ;;  %v4812_v7 = vpop.f32.mrf.mxu2  ;;  %v5256_v10 = vld [vmem:[#allocation28_spill] sm:$0xff] }
 0x421   : > { %v4791_v61 = vpop.f32.mrf.mxu1  ;;  %v1537_v32 = vadd.f32 %v5256_v10, %v1279_v16 }
 0x422   : > { %3245 = vst [vmem:[%s4731_s23 + $0x28] sm:$0xff] %v3213_v23  ;;  %v4801_v27 = vpop.f32.mrf.mxu0 }
 0x423   : > { %v2998_v9 = vpop.f32.mrf.mxu3  ;;  %v1795_v41 = vadd.f32 %v5259_v34, %v1537_v32  ;;  %v5272_v34 = vld [vmem:[#allocation52_spill] sm:$0xff] }
 0x424   : > { %v3082_v54 = vadd.f32 %v2998_v9, %v2824_v24  ;;  %2288 = vmatmul.f32.gmra.mxu0 %v2135_v28  ;;  %v5257_v24 = vld [vmem:[#allocation30_spill] sm:$0xff]  ;;  %v5258_v9 = vld [vmem:[#allocation72_spill] sm:$0xff] }
 0x426   : > { %v3182_v30 = vadd.f32 %v4714_v43, %v3082_v54  ;;  %v1280_v54 = vadd.f32 %v5258_v9, %v5257_v24  ;;  %v5270_v24 = vld [vmem:[#allocation38_spill] sm:$0xff]  ;;  %v5271_v9 = vld [vmem:[#allocation77_spill] sm:$0xff] }
 0x428   : > { %v3214_v14 = vmax.f32 %v3182_v30, 0.0  ;;  %3048 = vmatmul.f32.gmra.mxu3 %v2132_v15  ;;  %v2568_v15 = vadd.f32 %v4597_v35, %v2309_v45  ;;  %v4831_v35 = vpop.f32.mrf.mxu2  ;;  %v5261_v30 = vld [vmem:[#allocation32_spill] sm:$0xff]  ;;  %v5263_v45 = vld [vmem:[#allocation74_spill] sm:$0xff] }
 0x429   : > { %v4808_v1 = vpop.f32.mrf.mxu1  ;;  %v1538_v6 = vadd.f32 %v5261_v30, %v1280_v54  ;;  %v1282_v54 = vadd.f32 %v5271_v9, %v5270_v24  ;;  %v5275_v30 = vld [vmem:[#allocation14_spill] sm:$0xff] }
 0x42a   : > { %3246 = vst [vmem:[%s4731_s23 + $0x30] sm:$0xff] %v3214_v14  ;;  %v4817_v33 = vpop.f32.mrf.mxu0  ;;  %v2826_v23 = vadd.f32 %v4729_v48, %v2568_v15  ;;  %v5260_v48 = vld [vmem:[#allocation91_spill] sm:$0xff] }
 0x42b   : > { %v3001_v50 = vpop.f32.mrf.mxu3  ;;  %v2053_v40 = vadd.f32 %v5260_v48, %v1795_v41  ;;  %v5273_v41 = vld [vmem:[#allocation129_spill] sm:$0xff] }
 0x42c   : > { %v3083_v12 = vadd.f32 %v3001_v50, %v2825_v17  ;;  %2291 = vmatmul.f32.gmra.mxu0 %v2136_v39  ;;  %v5264_v50 = vld [vmem:[#allocation48_spill] sm:$0xff] }
 0x42d   : > { %v2311_v59 = vadd.f32 %v4768_v58, %v2053_v40 }
 0x42e   : > { %v3183_v46 = vadd.f32 %v4714_v43, %v3083_v12  ;;  %v1796_v12 = vadd.f32 %v5264_v50, %v1538_v6 }
 0x42f   : > { %v2570_v49 = vadd.f32 %v4613_v38, %v2311_v59 }
 0x430   : > { %v3215_v56 = vmax.f32 %v3183_v46, 0.0  ;;  %3051 = vmatmul.f32.gmra.mxu3 %v2133_v60  ;;  %v2569_v60 = vadd.f32 %v4606_v52, %v2310_v55  ;;  %v5262_v52 = vld [vmem:[#allocation34_spill] sm:$0xff]  ;;  %v4850_v22 = vpop.f32.mrf.mxu2 }
 0x431   : > { %v4824_v4 = vpop.f32.mrf.mxu1  ;;  %v1281_v17 = vadd.f32 %v5263_v45, %v5262_v52  ;;  %v5266_v46 = vld [vmem:[#allocation10_spill] sm:$0xff]  ;;  %v2828_v38 = vadd.f32 %v4773_v20, %v2570_v49  ;;  %v5277_v45 = vld [vmem:[#allocation61_spill] sm:$0xff] }
 0x432   : > { %3247 = vst [vmem:[%s4731_s23 + $0x38] sm:$0xff] %v3215_v56  ;;  %v4833_v44 = vpop.f32.mrf.mxu0  ;;  %v2827_v14 = vadd.f32 %v4752_v62, %v2569_v60  ;;  %v5265_v62 = vld [vmem:[#allocation95_spill] sm:$0xff]  ;;  %v1269_v57 = vadd.f32 %v5267_v29, %v5266_v46  ;;  %v5278_v49 = vld [vmem:[#allocation137_spill] sm:$0xff]  ;;  %v5282_v29 = vld [vmem:[#allocation132_spill] sm:$0xff] }
 0x433   : > { %v3004_v31 = vpop.f32.mrf.mxu3  ;;  %v2054_v21 = vadd.f32 %v5265_v62, %v1796_v12  ;;  %v5268_v56 = vld [vmem:[#allocation35_spill] sm:$0xff]  ;;  %v5279_v62 = vld [vmem:[#allocation12_spill] sm:$0xff] }
 0x434   : > { %v3084_v2 = vadd.f32 %v3004_v31, %v2826_v23  ;;  %2294 = vmatmul.f32.gmra.mxu0 %v2137_v19  ;;  %v1539_v10 = vadd.f32 %v5268_v56, %v1281_v17  ;;  %v5269_v31 = vld [vmem:[#allocation11_spill] sm:$0xff] }
 0x435   : > { %v2312_v32 = vadd.f32 %v4784_v3, %v2054_v21  ;;  %v5274_v3 = vld [vmem:[#allocation99_spill] sm:$0xff] }
 0x436   : > { %v3184_v18 = vadd.f32 %v4714_v43, %v3084_v2  ;;  %v1527_v2 = vadd.f32 %v5269_v31, %v1269_v57 }
 0x437   : > { %v2571_v60 = vadd.f32 %v5273_v41, %v2312_v32  ;;  %v5286_v41 = vld [vmem:[#allocation126_spill] sm:$0xff] }
 0x438   : > { %v3216_v8 = vmax.f32 %v3184_v18, 0.0  ;;  %3054 = vmatmul.f32.gmra.mxu3 %v2134_v51  ;;  %v2138_v51 = vld [vmem:[#allocation2 + $0x18a] sm:$0xff]  ;;  %v1785_v6 = vadd.f32 %v5275_v30, %v1527_v2  ;;  %v5290_v30 = vld [vmem:[#allocation135_spill] sm:$0xff] }
 0x439   : > { %v4840_v13 = vpop.f32.mrf.mxu1  ;;  %v2829_v52 = vadd.f32 %v4794_v25, %v2571_v60 }
 0x43a   : > { %3248 = vst [vmem:[%s4731_s23 + $0x40] sm:$0xff] %v3216_v8  ;;  %v4856_v58 = vpop.f32.mrf.mxu0  ;;  %v4874_v8 = vpop.f32.mrf.mxu2  ;;  %v2043_v17 = vadd.f32 %v5277_v45, %v1785_v6 }
 0x43b   : > { %v3007_v53 = vpop.f32.mrf.mxu3 }
 0x43c   : > { %v3085_v63 = vadd.f32 %v3007_v53, %v2827_v14  ;;  %2297 = vmatmul.f32.gmra.mxu0 %v2138_v51  ;;  %v5276_v14 = vld [vmem:[#allocation39_spill] sm:$0xff] }
 0x43d   : > { %v1540_v53 = vadd.f32 %v5276_v14, %v1282_v54 }
 0x43e   : > { %v3185_v16 = vadd.f32 %v4714_v43, %v3085_v63 }
 0x440   : > { %v3217_v15 = vmax.f32 %v3185_v16, 0.0  ;;  %3057 = vmatmul.f32.gmra.mxu3 %v2135_v28  ;;  %v1797_v28 = vadd.f32 %v5272_v34, %v1539_v10  ;;  %v2301_v16 = vadd.f32 %v5278_v49, %v2043_v17  ;;  %v5283_v10 = vld [vmem:[#allocation102_spill] sm:$0xff] }
 0x441   : > { %v4854_v47 = vpop.f32.mrf.mxu1  ;;  %v5292_v17 = vld [vmem:[#allocation46_spill] sm:$0xff] }
 0x442   : > { %3249 = vst [vmem:[%s4731_s23 + $0x48] sm:$0xff] %v3217_v15  ;;  %v2055_v40 = vadd.f32 %v5274_v3, %v1797_v28  ;;  %v4877_v59 = vpop.f32.mrf.mxu0  ;;  %v5281_v15 = vld [vmem:[#allocation55_spill] sm:$0xff]  ;;  %v4895_v2 = vpop.f32.mrf.mxu2 }
 0x443   : > { %v3010_v55 = vpop.f32.mrf.mxu3  ;;  %v1798_v46 = vadd.f32 %v5281_v15, %v1540_v53 }
 0x444   : > { %v3086_v23 = vadd.f32 %v3010_v55, %v2828_v38  ;;  %v2313_v63 = vadd.f32 %v4801_v27, %v2055_v40  ;;  %v5284_v38 = vld [vmem:[#allocation97_spill] sm:$0xff]  ;;  %v5289_v40 = vld [vmem:[#allocation58_spill] sm:$0xff] }
 0x445   : > { %v2056_v25 = vadd.f32 %v5283_v10, %v1798_v46  ;;  %v2560_v55 = vadd.f32 %v5284_v38, %v2301_v16  ;;  %v2912_v46 = vld [vmem:[#allocation2 + $0x19a] sm:$0xff] }
 0x446   : > { %v3186_v18 = vadd.f32 %v4714_v43, %v3086_v23  ;;  %v2572_v57 = vadd.f32 %v5282_v29, %v2313_v63  ;;  %v5285_v23 = vld [vmem:[#allocation43_spill] sm:$0xff] }
 0x447   : > { %v2314_v24 = vadd.f32 %v4817_v33, %v2056_v25  ;;  %v2818_v60 = vadd.f32 %v5286_v41, %v2560_v55  ;;  %v5293_v29 = vld [vmem:[#allocation15_spill] sm:$0xff]  ;;  %v5296_v25 = vld [vmem:[#allocation138_spill] sm:$0xff]  ;;  %v2913_v41 = vld [vmem:[#allocation2 + $0x1a2] sm:$0xff] }
 0x448   : > { %v3218_v20 = vmax.f32 %v3186_v18, 0.0  ;;  %3060 = vmatmul.f32.gmra.mxu3 %v2136_v39  ;;  %v5280_v39 = vld [vmem:[#allocation81_spill] sm:$0xff]  ;;  %v2830_v9 = vadd.f32 %v4812_v7, %v2572_v57  ;;  %v5297_v38 = vld [vmem:[#allocation107_spill] sm:$0xff] }
 0x449   : > { %v4871_v48 = vpop.f32.mrf.mxu1  ;;  %v1283_v21 = vadd.f32 %v5280_v39, %v5279_v62  ;;  %v5287_v18 = vld [vmem:[#allocation13_spill] sm:$0xff]  ;;  %v2573_v6 = vadd.f32 %v5290_v30, %v2314_v24  ;;  %v5302_v30 = vld [vmem:[#allocation140_spill] sm:$0xff] }
 0x44a   : > { %3250 = vst [vmem:[%s4731_s23 + $0x50] sm:$0xff] %v3218_v20  ;;  %v4900_v54 = vpop.f32.mrf.mxu0  ;;  %v5291_v7 = vld [vmem:[#allocation105_spill] sm:$0xff]  ;;  %v2773_v39 = vpop.f32.mrf.mxu2 }
 0x44b   : > { %v3013_v50 = vpop.f32.mrf.mxu3  ;;  %v1541_v31 = vadd.f32 %v5285_v23, %v1283_v21  ;;  %v2831_v49 = vadd.f32 %v4831_v35, %v2573_v6  ;;  %v5294_v57 = vld [vmem:[#allocation89_spill] sm:$0xff] }
 0x44c   : > { %v3087_v12 = vadd.f32 %v3013_v50, %v2829_v52  ;;  %v5298_v23 = vld [vmem:[#allocation49_spill] sm:$0xff] }
 0x44d   : > { %v1799_v20 = vadd.f32 %v5289_v40, %v1541_v31 }
 0x44e   : > { %v3187_v56 = vadd.f32 %v4714_v43, %v3087_v12 }
 0x44f   : > { %v2057_v63 = vadd.f32 %v5291_v7, %v1799_v20 }
 0x450   : > { %v3219_v32 = vmax.f32 %v3187_v56, 0.0  ;;  %3063 = vmatmul.f32.gmra.mxu3 %v2137_v19  ;;  %v5288_v19 = vld [vmem:[#allocation85_spill] sm:$0xff]  ;;  %v5295_v56 = vld [vmem:[#allocation62_spill] sm:$0xff] }
 0x451   : > { %v4890_v27 = vpop.f32.mrf.mxu1  ;;  %v1284_v3 = vadd.f32 %v5288_v19, %v5287_v18  ;;  %v2315_v12 = vadd.f32 %v4833_v44, %v2057_v63  ;;  %v5300_v18 = vld [vmem:[#allocation92_spill] sm:$0xff]  ;;  %v5304_v63 = vld [vmem:[#allocation51_spill] sm:$0xff] }
 0x452   : > { %3251 = vst [vmem:[%s4731_s23 + $0x58] sm:$0xff] %v3219_v32  ;;  %v2259_v15 = vpop.f32.mrf.mxu0  ;;  %v2776_v20 = vpop.f32.mrf.mxu2 }
 0x453   : > { %v3016_v34 = vpop.f32.mrf.mxu3  ;;  %v1542_v50 = vadd.f32 %v5292_v17, %v1284_v3  ;;  %v2574_v32 = vadd.f32 %v5296_v25, %v2315_v12  ;;  %v5301_v3 = vld [vmem:[#allocation65_spill] sm:$0xff]  ;;  %v5305_v12 = vld [vmem:[#allocation18_spill] sm:$0xff] }
 0x454   : > { %v3088_v28 = vadd.f32 %v3016_v34, %v2830_v9 }
 0x455   : > { %v1800_v10 = vadd.f32 %v5295_v56, %v1542_v50  ;;  %v2832_v9 = vadd.f32 %v4850_v22, %v2574_v32 }
 0x456   : > { %v3188_v14 = vadd.f32 %v4714_v43, %v3088_v28 }
 0x457   : > { %v2058_v55 = vadd.f32 %v5297_v38, %v1800_v10 }
 0x458   : > { %v3220_v52 = vmax.f32 %v3188_v14, 0.0  ;;  %3066 = vmatmul.f32.gmra.mxu3 %v2138_v51  ;;  %v1285_v51 = vadd.f32 %v5294_v57, %v5293_v29 }
 0x459   : > { %v2980_v33 = vpop.f32.mrf.mxu1  ;;  %v2316_v24 = vadd.f32 %v4856_v58, %v2058_v55 }
 0x45a   : > { %v3076_v53 = vadd.f32 %v2980_v33, %v2818_v60  ;;  %3252 = vst [vmem:[%s4731_s23 + $0x60] sm:$0xff] %v3220_v52  ;;  %v1543_v31 = vadd.f32 %v5298_v23, %v1285_v51  ;;  %v5299_v60 = vld [vmem:[#allocation16_spill] sm:$0xff]  ;;  %v2262_v33 = vpop.f32.mrf.mxu0  ;;  %v5309_v51 = vld [vmem:[#allocation113_spill] sm:$0xff]  ;;  %v2779_v10 = vpop.f32.mrf.mxu2 }
 0x45b   : > { %v3019_v62 = vpop.f32.mrf.mxu3  ;;  %v1286_v19 = vadd.f32 %v5300_v18, %v5299_v60  ;;  %v2575_v6 = vadd.f32 %v5302_v30, %v2316_v24  ;;  %v5311_v23 = vld [vmem:[#allocation20_spill] sm:$0xff] }
 0x45c   : > { %v3176_v45 = vadd.f32 %v4714_v43, %v3076_v53  ;;  %v3089_v21 = vadd.f32 %v3019_v62, %v2831_v49  ;;  %v1801_v40 = vadd.f32 %v5301_v3, %v1543_v31  ;;  %v5303_v53 = vld [vmem:[#allocation110_spill] sm:$0xff]  ;;  %v5306_v49 = vld [vmem:[#allocation96_spill] sm:$0xff] }
 0x45d   : > { %v1544_v22 = vadd.f32 %v5304_v63, %v1286_v19  ;;  %v5307_v62 = vld [vmem:[#allocation68_spill] sm:$0xff]  ;;  %v5318_v63 = vld [vmem:[#allocation103_spill] sm:$0xff] }
 0x45e   : > { %v3208_v16 = vmax.f32 %v3176_v45, 0.0  ;;  %v3189_v44 = vadd.f32 %v4714_v43, %v3089_v21  ;;  %v2059_v58 = vadd.f32 %v5303_v53, %v1801_v40  ;;  %v2833_v45 = vadd.f32 %v4874_v8, %v2575_v6  ;;  %v5312_v31 = vld [vmem:[#allocation100_spill] sm:$0xff]  ;;  %v5316_v40 = vld [vmem:[#allocation57_spill] sm:$0xff] }
 0x45f   : > { %v1802_v21 = vadd.f32 %v5307_v62, %v1544_v22  ;;  %v1288_v24 = vadd.f32 %v5312_v31, %v5311_v23  ;;  %v5315_v18 = vld [vmem:[#allocation116_spill] sm:$0xff] }
 0x460   : > { %3240 = vst [vmem:[%s4731_s23] sm:$0xff] %v3208_v16  ;;  %v3221_v35 = vmax.f32 %v3189_v44, 0.0  ;;  %3069 = vmatmul.f32.gmra.mxu3 %v2912_v46  ;;  %v2317_v52 = vadd.f32 %v4877_v59, %v2059_v58  ;;  %v1287_v16 = vadd.f32 %v5306_v49, %v5305_v12  ;;  %v5308_v46 = vld [vmem:[#allocation142_spill] sm:$0xff]  ;;  %v5320_v12 = vld [vmem:[#allocation119_spill] sm:$0xff]  ;;  %v5321_v62 = vld [vmem:[#allocation60_spill] sm:$0xff] }
 0x461   : > { %v2060_v56 = vadd.f32 %v5309_v51, %v1802_v21  ;;  %v5310_v59 = vld [vmem:[#allocation54_spill] sm:$0xff]  ;;  %v1546_v30 = vadd.f32 %v5316_v40, %v1288_v24  ;;  %v5327_v24 = vld [vmem:[#allocation63_spill] sm:$0xff] }
 0x462   : > { %3253 = vst [vmem:[%s4731_s23 + $0x68] sm:$0xff] %v3221_v35  ;;  %v2576_v29 = vadd.f32 %v5308_v46, %v2317_v52  ;;  %v2265_v32 = vpop.f32.mrf.mxu0  ;;  %v1545_v44 = vadd.f32 %v5310_v59, %v1287_v16  ;;  %v5319_v52 = vld [vmem:[#allocation75_spill] sm:$0xff] }
 0x463   : > { %v3022_v34 = vpop.f32.mrf.mxu3  ;;  %v2318_v8 = vadd.f32 %v4900_v54, %v2060_v56  ;;  %v2782_v54 = vpop.f32.mrf.mxu2  ;;  %v5322_v56 = vld [vmem:[#allocation26_spill] sm:$0xff] }
 0x464   : > { %v3090_v28 = vadd.f32 %v3022_v34, %v2832_v9  ;;  %v2834_v38 = vadd.f32 %v4895_v2, %v2576_v29  ;;  %v5313_v9 = vld [vmem:[#allocation71_spill] sm:$0xff] }
 0x465   : > { %v1803_v34 = vadd.f32 %v5313_v9, %v1545_v44  ;;  %v5324_v44 = vld [vmem:[#allocation79_spill] sm:$0xff] }
 0x466   : > { %v3190_v14 = vadd.f32 %v4714_v43, %v3090_v28  ;;  %v5314_v28 = vld [vmem:[#allocation144_spill] sm:$0xff] }
 0x467   : > { %v2061_v19 = vadd.f32 %v5315_v18, %v1803_v34 }
 0x468   : > { %v3222_v7 = vmax.f32 %v3190_v14, 0.0  ;;  %3072 = vmatmul.f32.gmra.mxu3 %v2913_v41  ;;  %v2577_v41 = vadd.f32 %v5314_v28, %v2318_v8  ;;  %v5325_v8 = vld [vmem:[#allocation147_spill] sm:$0xff] }
 0x469   : > { %v2319_v6 = vadd.f32 %v2259_v15, %v2061_v19  ;;  %v5330_v19 = vld [vmem:[#allocation83_spill] sm:$0xff] }
 0x46a   : > { %3254 = vst [vmem:[%s4731_s23 + $0x70] sm:$0xff] %v3222_v7  ;;  %v2835_v2 = vadd.f32 %v2773_v39, %v2577_v41  ;;  %v2268_v14 = vpop.f32.mrf.mxu0  ;;  %v5317_v7 = vld [vmem:[#allocation23_spill] sm:$0xff]  ;;  %v5328_v41 = vld [vmem:[#allocation29_spill] sm:$0xff] }
 0x46b   : > { %v3025_v17 = vpop.f32.mrf.mxu3  ;;  %v1289_v22 = vadd.f32 %v5318_v63, %v5317_v7  ;;  %v2785_v29 = vpop.f32.mrf.mxu2  ;;  %v5332_v63 = vld [vmem:[#allocation64_spill] sm:$0xff] }
 0x46c   : > { %v3091_v50 = vadd.f32 %v3025_v17, %v2833_v45  ;;  %v1804_v45 = vadd.f32 %v5319_v52, %v1546_v30  ;;  %v2578_v17 = vadd.f32 %v4679_v36, %v2319_v6 }
 0x46d   : > { %v1547_v21 = vadd.f32 %v5321_v62, %v1289_v22 }
 0x46e   : > { %v3191_v57 = vadd.f32 %v4714_v43, %v3091_v50  ;;  %v2062_v49 = vadd.f32 %v5320_v12, %v1804_v45  ;;  %v2836_v39 = vadd.f32 %v2776_v20, %v2578_v17  ;;  %v5333_v17 = vld [vmem:[#allocation33_spill] sm:$0xff] }
 0x46f   : > { %v1805_v36 = vadd.f32 %v5324_v44, %v1547_v21  ;;  %v5336_v21 = vld [vmem:[#allocation127_spill] sm:$0xff] }
 0x470   : > { %v3223_v25 = vmax.f32 %v3191_v57, 0.0  ;;  %v2320_v15 = vadd.f32 %v2262_v33, %v2062_v49  ;;  %v5335_v49 = vld [vmem:[#allocation87_spill] sm:$0xff] }
 0x472   : > { %3255 = vst [vmem:[%s4731_s23 + $0x78] sm:$0xff] %v3223_v25  ;;  %v2271_v51 = vpop.f32.mrf.mxu0  ;;  %v5323_v25 = vld [vmem:[#allocation106_spill] sm:$0xff] }
 0x473   : > { %v3028_v55 = vpop.f32.mrf.mxu3  ;;  %v1290_v59 = vadd.f32 %v5323_v25, %v5322_v56  ;;  %v2788_v40 = vpop.f32.mrf.mxu2  ;;  %v5337_v56 = vld [vmem:[#allocation67_spill] sm:$0xff] }
 0x474   : > { %v3092_v35 = vadd.f32 %v3028_v55, %v2834_v38  ;;  %v2579_v38 = vadd.f32 %v5325_v8, %v2320_v15  ;;  %v5339_v8 = vld [vmem:[#allocation114_spill] sm:$0xff] }
 0x475   : > { %v1548_v33 = vadd.f32 %v5327_v24, %v1290_v59 }
 0x476   : > { %v3192_v60 = vadd.f32 %v4714_v43, %v3092_v35  ;;  %v5326_v35 = vld [vmem:[#allocation121_spill] sm:$0xff]  ;;  %v2837_v9 = vadd.f32 %v2779_v10, %v2579_v38 }
 0x477   : > { %v2063_v23 = vadd.f32 %v5326_v35, %v1805_v36  ;;  %v5338_v36 = vld [vmem:[#allocation37_spill] sm:$0xff] }
 0x478   : > { %v3224_v3 = vmax.f32 %v3192_v60, 0.0  ;;  %v5329_v60 = vld [vmem:[#allocation108_spill] sm:$0xff]  ;;  %v1293_v38 = vadd.f32 %v5339_v8, %v5338_v36 }
 0x479   : > { %v2321_v20 = vadd.f32 %v2265_v32, %v2063_v23  ;;  %v1291_v18 = vadd.f32 %v5329_v60, %v5328_v41  ;;  %v5355_v8 = vld [vmem:[#allocation104_spill] sm:$0xff] }
 0x47a   : > { %3256 = vst [vmem:[%s4731_s23 + $0x80] sm:$0xff] %v3224_v3  ;;  %v1806_v3 = vadd.f32 %v5330_v19, %v1548_v33  ;;  %v5344_v19 = vld [vmem:[#allocation117_spill] sm:$0xff] }
 0x47b   : > { %v3031_v53 = vpop.f32.mrf.mxu3  ;;  %v2580_v30 = vadd.f32 %v4703_v26, %v2321_v20  ;;  %v1549_v32 = vadd.f32 %v5332_v63, %v1291_v18  ;;  %v5342_v20 = vld [vmem:[#allocation70_spill] sm:$0xff]  ;;  %v5343_v18 = vld [vmem:[#allocation41_spill] sm:$0xff] }
 0x47c   : > { %v3093_v58 = vadd.f32 %v3031_v53, %v2835_v2  ;;  %v2274_v2 = vpop.f32.mrf.mxu0  ;;  %v5331_v53 = vld [vmem:[#allocation124_spill] sm:$0xff] }
 0x47d   : > { %v2838_v22 = vadd.f32 %v2782_v54, %v2580_v30  ;;  %v5345_v30 = vld [vmem:[#allocation98_spill] sm:$0xff] }
 0x47e   : > { %v3193_v50 = vadd.f32 %v4714_v43, %v3093_v58  ;;  %v2064_v58 = vadd.f32 %v5331_v53, %v1806_v3  ;;  %v1294_v3 = vadd.f32 %v5344_v19, %v5343_v18  ;;  %v5360_v18 = vld [vmem:[#allocation109_spill] sm:$0xff] }
 0x480   : > { %v3225_v16 = vmax.f32 %v3193_v50, 0.0  ;;  %v2322_v10 = vadd.f32 %v2268_v14, %v2064_v58  ;;  %v5334_v50 = vld [vmem:[#allocation111_spill] sm:$0xff]  ;;  %v5346_v58 = vld [vmem:[#allocation133_spill] sm:$0xff] }
 0x481   : > { %v1292_v12 = vadd.f32 %v5334_v50, %v5333_v17  ;;  %v5348_v50 = vld [vmem:[#allocation44_spill] sm:$0xff] }
 0x482   : > { %3257 = vst [vmem:[%s4731_s23 + $0x88] sm:$0xff] %v3225_v16  ;;  %v1807_v16 = vadd.f32 %v5335_v49, %v1549_v32  ;;  %v2581_v26 = vadd.f32 %v4725_v5, %v2322_v10  ;;  %v5347_v32 = vld [vmem:[#allocation73_spill] sm:$0xff] }
 0x483   : > { %v3034_v46 = vpop.f32.mrf.mxu3  ;;  %v1550_v14 = vadd.f32 %v5337_v56, %v1292_v12  ;;  %v1552_v10 = vadd.f32 %v5347_v32, %v1294_v3  ;;  %v5349_v12 = vld [vmem:[#allocation120_spill] sm:$0xff] }
 0x484   : > { %v3094_v57 = vadd.f32 %v3034_v46, %v2836_v39  ;;  %v2065_v15 = vadd.f32 %v5336_v21, %v1807_v16  ;;  %v2791_v39 = vpop.f32.mrf.mxu2  ;;  %v2839_v25 = vadd.f32 %v2785_v29, %v2581_v26  ;;  %v1295_v49 = vadd.f32 %v5349_v12, %v5348_v50  ;;  %v5350_v16 = vld [vmem:[#allocation101_spill] sm:$0xff]  ;;  %v5351_v21 = vld [vmem:[#allocation136_spill] sm:$0xff] }
 0x485   : > { %v5352_v56 = vld [vmem:[#allocation76_spill] sm:$0xff] }
 0x486   : > { %v3194_v55 = vadd.f32 %v4714_v43, %v3094_v57  ;;  %v2277_v57 = vpop.f32.mrf.mxu0  ;;  %v2323_v54 = vadd.f32 %v2271_v51, %v2065_v15 }
 0x488   : > { %v3226_v31 = vmax.f32 %v3194_v55, 0.0  ;;  %v5340_v55 = vld [vmem:[#allocation93_spill] sm:$0xff]  ;;  %v2582_v35 = vadd.f32 %v4744_v11, %v2323_v54 }
 0x489   : > { %v1808_v5 = vadd.f32 %v5340_v55, %v1550_v14 }
 0x48a   : > { %3258 = vst [vmem:[%s4731_s23 + $0x90] sm:$0xff] %v3226_v31  ;;  %v5341_v31 = vld [vmem:[#allocation130_spill] sm:$0xff]  ;;  %v2840_v29 = vadd.f32 %v2788_v40, %v2582_v35 }
 0x48b   : > { %v3037_v34 = vpop.f32.mrf.mxu3  ;;  %v2066_v24 = vadd.f32 %v5341_v31, %v1808_v5 }
 0x48c   : > { %v3095_v28 = vadd.f32 %v3037_v34, %v2837_v9  ;;  %v1551_v9 = vadd.f32 %v5342_v20, %v1293_v38  ;;  %v2794_v51 = vpop.f32.mrf.mxu2 }
 0x48d   : > { %v2324_v34 = vadd.f32 %v2274_v2, %v2066_v24 }
 0x48e   : > { %v3195_v6 = vadd.f32 %v4714_v43, %v3095_v28  ;;  %v2280_v28 = vpop.f32.mrf.mxu0  ;;  %v1809_v11 = vadd.f32 %v5345_v30, %v1551_v9  ;;  %v5361_v30 = vld [vmem:[#allocation141_spill] sm:$0xff] }
 0x490   : > { %v3227_v7 = vmax.f32 %v3195_v6, 0.0  ;;  %v2583_v6 = vadd.f32 %v4761_v0, %v2324_v34  ;;  %v1810_v0 = vadd.f32 %v5350_v16, %v1552_v10 }
 0x492   : > { %3259 = vst [vmem:[%s4731_s23 + $0x98] sm:$0xff] %v3227_v7  ;;  %v2067_v7 = vadd.f32 %v5346_v58, %v1809_v11  ;;  %v2841_v40 = vadd.f32 %v2791_v39, %v2583_v6  ;;  %v2068_v15 = vadd.f32 %v5351_v21, %v1810_v0 }
 0x493   : > { %v3040_v52 = vpop.f32.mrf.mxu3 }
 0x494   : > { %v3096_v45 = vadd.f32 %v3040_v52, %v2838_v22  ;;  %v2325_v2 = vadd.f32 %v2277_v57, %v2067_v7  ;;  %v2797_v52 = vpop.f32.mrf.mxu2  ;;  %v1553_v57 = vadd.f32 %v5352_v56, %v1295_v49  ;;  %v2326_v39 = vadd.f32 %v2280_v28, %v2068_v15  ;;  %v5358_v28 = vld [vmem:[#allocation50_spill] sm:$0xff]  ;;  %v5366_v49 = vld [vmem:[#allocation143_spill] sm:$0xff] }
 0x495   : > { %v5362_v7 = vld [vmem:[#allocation82_spill] sm:$0xff] }
 0x496   : > { %v3196_v62 = vadd.f32 %v4714_v43, %v3096_v45  ;;  %v2283_v17 = vpop.f32.mrf.mxu0  ;;  %v2584_v26 = vadd.f32 %v4777_v42, %v2325_v2  ;;  %v1811_v38 = vadd.f32 %v5355_v8, %v1553_v57  ;;  %v2585_v42 = vadd.f32 %v4791_v61, %v2326_v39  ;;  %v5371_v8 = vld [vmem:[#allocation145_spill] sm:$0xff] }
 0x498   : > { %v3228_v46 = vmax.f32 %v3196_v62, 0.0  ;;  %v2842_v14 = vadd.f32 %v2794_v51, %v2584_v26  ;;  %v2843_v51 = vadd.f32 %v2797_v52, %v2585_v42  ;;  %v5364_v52 = vld [vmem:[#allocation128_spill] sm:$0xff]  ;;  %v5367_v26 = vld [vmem:[#allocation86_spill] sm:$0xff] }
 0x499   : > { %v5372_v42 = vld [vmem:[#allocation90_spill] sm:$0xff] }
 0x49a   : > { %3260 = vst [vmem:[%s4731_s23 + $0xa0] sm:$0xff] %v3228_v46 }
 0x49b   : > { %v3043_v59 = vpop.f32.mrf.mxu3 }
 0x49c   : > { %v3097_v44 = vadd.f32 %v3043_v59, %v2839_v25  ;;  %v5353_v59 = vld [vmem:[#allocation47_spill] sm:$0xff]  ;;  %v2800_v55 = vpop.f32.mrf.mxu2 }
 0x49e   : > { %v3197_v23 = vadd.f32 %v4714_v43, %v3097_v44  ;;  %v5354_v44 = vld [vmem:[#allocation122_spill] sm:$0xff]  ;;  %v2286_v35 = vpop.f32.mrf.mxu0 }
 0x49f   : > { %v1296_v36 = vadd.f32 %v5354_v44, %v5353_v59  ;;  %v5370_v59 = vld [vmem:[#allocation115_spill] sm:$0xff] }
 0x4a0   : > { %v3229_v33 = vmax.f32 %v3197_v23, 0.0  ;;  %v5356_v23 = vld [vmem:[#allocation139_spill] sm:$0xff] }
 0x4a1   : > { %v2069_v31 = vadd.f32 %v5356_v23, %v1811_v38 }
 0x4a2   : > { %3261 = vst [vmem:[%s4731_s23 + $0xa8] sm:$0xff] %v3229_v33  ;;  %v5357_v33 = vld [vmem:[#allocation78_spill] sm:$0xff] }
 0x4a3   : > { %v3046_v41 = vpop.f32.mrf.mxu3  ;;  %v1554_v20 = vadd.f32 %v5357_v33, %v1296_v36  ;;  %v2327_v9 = vadd.f32 %v2283_v17, %v2069_v31  ;;  %v5365_v17 = vld [vmem:[#allocation112_spill] sm:$0xff] }
 0x4a4   : > { %v3098_v60 = vadd.f32 %v3046_v41, %v2840_v29  ;;  %v5359_v41 = vld [vmem:[#allocation125_spill] sm:$0xff]  ;;  %v2803_v6 = vpop.f32.mrf.mxu2 }
 0x4a5   : > { %v1812_v19 = vadd.f32 %v5360_v18, %v1554_v20  ;;  %v2586_v61 = vadd.f32 %v4808_v1, %v2327_v9  ;;  %v5373_v9 = vld [vmem:[#allocation59_spill] sm:$0xff] }
 0x4a6   : > { %v3198_v53 = vadd.f32 %v4714_v43, %v3098_v60  ;;  %v1297_v60 = vadd.f32 %v5359_v41, %v5358_v28  ;;  %v2289_v58 = vpop.f32.mrf.mxu0 }
 0x4a7   : > { %v2070_v11 = vadd.f32 %v5361_v30, %v1812_v19  ;;  %v2844_v10 = vadd.f32 %v2800_v55, %v2586_v61  ;;  %v5377_v61 = vld [vmem:[#allocation94_spill] sm:$0xff] }
 0x4a8   : > { %v3230_v63 = vmax.f32 %v3198_v53, 0.0 }
 0x4a9   : > { %v2328_v32 = vadd.f32 %v2286_v35, %v2070_v11 }
 0x4aa   : > { %3262 = vst [vmem:[%s4731_s23 + $0xb0] sm:$0xff] %v3230_v63  ;;  %v1555_v63 = vadd.f32 %v5362_v7, %v1297_v60  ;;  %v5376_v60 = vld [vmem:[#allocation146_spill] sm:$0xff]  ;;  %v5378_v7 = vld [vmem:[#allocation123_spill] sm:$0xff] }
 0x4ab   : > { %v3049_v22 = vpop.f32.mrf.mxu3  ;;  %v2587_v50 = vadd.f32 %v4824_v4, %v2328_v32 }
 0x4ac   : > { %v3099_v45 = vadd.f32 %v3049_v22, %v2841_v40  ;;  %v5363_v22 = vld [vmem:[#allocation53_spill] sm:$0xff]  ;;  %v1813_v1 = vadd.f32 %v5365_v17, %v1555_v63  ;;  %v2806_v21 = vpop.f32.mrf.mxu2 }
 0x4ae   : > { %v3199_v62 = vadd.f32 %v4714_v43, %v3099_v45  ;;  %v1298_v45 = vadd.f32 %v5364_v52, %v5363_v22  ;;  %v2071_v16 = vadd.f32 %v5366_v49, %v1813_v1  ;;  %v2292_v56 = vpop.f32.mrf.mxu0 }
 0x4b0   : > { %v3231_v46 = vmax.f32 %v3199_v62, 0.0  ;;  %v1556_v62 = vadd.f32 %v5367_v26, %v1298_v45  ;;  %v2329_v15 = vadd.f32 %v2289_v58, %v2071_v16 }
 0x4b2   : > { %3263 = vst [vmem:[%s4731_s23 + $0xb8] sm:$0xff] %v3231_v46  ;;  %v2845_v46 = vadd.f32 %v2803_v6, %v2587_v50  ;;  %v1814_v4 = vadd.f32 %v5370_v59, %v1556_v62  ;;  %v2588_v44 = vadd.f32 %v4840_v13, %v2329_v15 }
 0x4b3   : > { %v3052_v54 = vpop.f32.mrf.mxu3 }
 0x4b4   : > { %v3100_v25 = vadd.f32 %v3052_v54, %v2842_v14  ;;  %v5368_v14 = vld [vmem:[#allocation56_spill] sm:$0xff]  ;;  %v5369_v54 = vld [vmem:[#allocation131_spill] sm:$0xff]  ;;  %v2072_v38 = vadd.f32 %v5371_v8, %v1814_v4  ;;  %v2846_v23 = vadd.f32 %v2806_v21, %v2588_v44  ;;  %v2809_v33 = vpop.f32.mrf.mxu2 }
 0x4b6   : > { %v3200_v5 = vadd.f32 %v4714_v43, %v3100_v25  ;;  %v1299_v25 = vadd.f32 %v5369_v54, %v5368_v14  ;;  %v2330_v35 = vadd.f32 %v2292_v56, %v2072_v38  ;;  %v2295_v20 = vpop.f32.mrf.mxu0 }
 0x4b8   : > { %v3232_v24 = vmax.f32 %v3200_v5, 0.0  ;;  %v1557_v5 = vadd.f32 %v5372_v42, %v1299_v25  ;;  %v2589_v28 = vadd.f32 %v4854_v47, %v2330_v35 }
 0x4ba   : > { %3264 = vst [vmem:[%s4731_s23 + $0xc0] sm:$0xff] %v3232_v24  ;;  %v2847_v11 = vadd.f32 %v2809_v33, %v2589_v28 }
 0x4bb   : > { %v3055_v34 = vpop.f32.mrf.mxu3 }
 0x4bc   : > { %v3101_v29 = vadd.f32 %v3055_v34, %v2843_v51  ;;  %v5374_v51 = vld [vmem:[#allocation134_spill] sm:$0xff]  ;;  %v2812_v58 = vpop.f32.mrf.mxu2 }
 0x4bd   : > { %v1300_v34 = vadd.f32 %v5374_v51, %v5373_v9 }
 0x4be   : > { %v3201_v3 = vadd.f32 %v4714_v43, %v3101_v29  ;;  %v5375_v29 = vld [vmem:[#allocation118_spill] sm:$0xff] }
 0x4bf   : > { %v1815_v13 = vadd.f32 %v5375_v29, %v1557_v5 }
 0x4c0   : > { %v3233_v53 = vmax.f32 %v3201_v3, 0.0  ;;  %v1558_v3 = vadd.f32 %v5377_v61, %v1300_v34 }
 0x4c1   : > { %v2073_v18 = vadd.f32 %v5376_v60, %v1815_v13 }
 0x4c2   : > { %3265 = vst [vmem:[%s4731_s23 + $0xc8] sm:$0xff] %v3233_v53  ;;  %v1816_v63 = vadd.f32 %v5378_v7, %v1558_v3 }
 0x4c3   : > { %v3058_v2 = vpop.f32.mrf.mxu3  ;;  %v2331_v30 = vadd.f32 %v2295_v20, %v2073_v18 }
 0x4c4   : > { %v3102_v40 = vadd.f32 %v3058_v2, %v2844_v10  ;;  %v2298_v10 = vpop.f32.mrf.mxu0  ;;  %v2074_v2 = vadd.f32 %v4695_v37, %v1816_v63 }
 0x4c5   : > { %v2590_v32 = vadd.f32 %v4871_v48, %v2331_v30  ;;  %v2815_v48 = vpop.f32.mrf.mxu2 }
 0x4c6   : > { %v3202_v12 = vadd.f32 %v4714_v43, %v3102_v40  ;;  %v2332_v52 = vadd.f32 %v2298_v10, %v2074_v2 }
 0x4c7   : > { %v2848_v22 = vadd.f32 %v2812_v58, %v2590_v32 }
 0x4c8   : > { %v3234_v0 = vmax.f32 %v3202_v12, 0.0  ;;  %v2591_v1 = vadd.f32 %v4890_v27, %v2332_v52 }
 0x4ca   : > { %3266 = vst [vmem:[%s4731_s23 + $0xd0] sm:$0xff] %v3234_v0  ;;  %v2849_v37 = vadd.f32 %v2815_v48, %v2591_v1 }
 0x4cb   : > { %v3061_v57 = vpop.f32.mrf.mxu3 }
 0x4cc   : > { %v3103_v39 = vadd.f32 %v3061_v57, %v2845_v46 }
 0x4ce   : > { %v3203_v36 = vadd.f32 %v4714_v43, %v3103_v39 }
 0x4d0   : > { %v3235_v55 = vmax.f32 %v3203_v36, 0.0 }
 0x4d2   : > { %3267 = vst [vmem:[%s4731_s23 + $0xd8] sm:$0xff] %v3235_v55 }
 0x4d3   : > { %v3064_v31 = vpop.f32.mrf.mxu3 }
 0x4d4   : > { %v3104_v24 = vadd.f32 %v3064_v31, %v2846_v23 }
 0x4d6   : > { %v3204_v41 = vadd.f32 %v4714_v43, %v3104_v24 }
 0x4d8   : > { %v3236_v19 = vmax.f32 %v3204_v41, 0.0 }
 0x4da   : > { %3268 = vst [vmem:[%s4731_s23 + $0xe0] sm:$0xff] %v3236_v19 }
 0x4db   : > { %v3067_v6 = vpop.f32.mrf.mxu3 }
 0x4dc   : > { %v3105_v53 = vadd.f32 %v3067_v6, %v2847_v11 }
 0x4de   : > { %v3205_v47 = vadd.f32 %v4714_v43, %v3105_v53 }
 0x4e0   : > { %v3237_v40 = vmax.f32 %v3205_v47, 0.0 }
 0x4e2   : > { %3269 = vst [vmem:[%s4731_s23 + $0xe8] sm:$0xff] %v3237_v40 }
 0x4e3   : > { %v3070_v45 = vpop.f32.mrf.mxu3 }
 0x4e4   : > { %v3106_v17 = vadd.f32 %v3070_v45, %v2848_v22 }
 0x4e6   : > { %v3206_v50 = vadd.f32 %v4714_v43, %v3106_v17 }
 0x4e8   : > { %v3238_v12 = vmax.f32 %v3206_v50, 0.0 }
 0x4ea   : > { %3270 = vst [vmem:[%s4731_s23 + $0xf0] sm:$0xff] %v3238_v12 }
 0x4eb   : > { %v3073_v49 = vpop.f32.mrf.mxu3 }
 0x4ec   : > { %v3107_v16 = vadd.f32 %v3073_v49, %v2849_v37 }
 0x4ee   : > { %v3207_v27 = vadd.f32 %v4714_v43, %v3107_v16 }
 0x4f0   : > { %v3239_v0 = vmax.f32 %v3207_v27, 0.0 }
 0x4f2   : > { %3271 = vst [vmem:[%s4731_s23 + $0xf8] sm:$0xff] %v3239_v0 }
 0x4f3   : > { %3566 = shalt.err (!%p3563_p8)
}
 0x4f4   : > { %s3611_s19 = smov 128   ;;  %s3612_s23 = smov 8  }
 0x4f5   : > { %3455 = dma.vmem_to_hbm [thread:$0]  (%p3691_p5), %s3286_s14, 4096, %s3288_s15, %s3273_s28, %s3611_s19, %s3611_s19, %s3612_s23  }
 0x4f6 PF: > { %p3467_p9 = scmp.ge.s32.totalorder %s3605_s27, 2  ;;  %s3302_s8 = sand.u32 1, %s3593_s24  }
 0x4f7   : > { %s3303_s9 = scalar_lea.sflag [#allocation6], %s3302_s8 }
 0x4f8   : > { %p3462_p10 = pnand %p3467_p9, %p3695_p6 }
 0x4fa   : > { %p3463_p11 = pneg %p3462_p10 }
 0x4fc   : > { %3588 = dma.done.wait (%p3463_p11), %s3303_s9, 4096  }
 0x4fd   : > { %3590 = vsyncadd (%p3463_p11), %s3303_s9, 4294963200  ;;  %p18_p12 = scmp.ge.s32.totalorder %s3678_s30, 4   ;;  %s5379_s24 = smov %s3597_s25 }
 0x4fe   : > { %s5380_s25 = smov %s3601_s26  ;;  %s5381_s26 = smov %s3689_s10 }
 0x4ff   : > { %s5382_s27 = smov %s3678_s30  ;;  %20 = sbr.rel (!%p18_p12) target bundleno = 4 (0x4), region = 99 }
 0x504   :  { %3309 = vsyncpa [#allocation5], 1 }
 0x505   :  { %3311 = vsyncpa [#allocation5 + $0x1], 1 }
 0x506   :  { %3312 = vsyncpa [#allocation6], 1 }
 0x507   :  { %3314 = vsyncpa [#allocation6 + $0x1], 1 }

</bundles_post_ra>
